<compile_context>
chip_gen: v7x
topology: tpu7x:2x2x1
jax: 0.10.0
libtpu: 0.0.40
codegen_flags: <defaults>
</compile_context>

<pallas_src>
import jax
import jax.numpy as jnp
from jax.experimental import pallas as pl
from jax.experimental.pallas import tpu as pltpu


# ----------------------------------------------------------------------------
# Fused ConvDownNormal kernel (one grid step == one batch element)
# ----------------------------------------------------------------------------

def _conv_down_normal_kernel(
    x0p_ref, x1_ref,
    w1d_ref, s1d_ref, b1d_ref, w3d_ref, s2d_ref, b2d_ref,
    w1n_ref, s1n_ref, b1n_ref, w3n_ref, s2n_ref, b2n_ref,
    od_ref, on_ref,
):
    # x0p_ref : (1, 4, Hq, Wq, C0)  even/odd planes of the finer-scale input
    # x1_ref  : (1, H2, W2, C1)     coarser-scale input
    # w1*     : bf16 (Cin, Cmid); s1*/b1*: f32 (1, Cmid)   folded BN1 affine
    # w3*     : bf16 (9, Cmid, Ch); s2*/b2*: f32 (1, Ch)   folded BN2 affine
    # od_ref  : (1, H2*W2, Ch) f32  down-branch output
    # on_ref  : (1, H2*W2, Ch) f32  normal-branch output
    _, _, hq, wq, c0 = x0p_ref.shape
    _, h2, w2, c1 = x1_ref.shape
    cmd = w1d_ref.shape[1]
    cmn = w1n_ref.shape[1]
    ch = w3d_ref.shape[2]
    f32, bf16 = jnp.float32, jnp.bfloat16

    # ---- down branch (3x3, stride 2, pad 1) --------------------------------
    def down_scope(pd_ref):
        # pd_ref: (4, Hq+1, Wq+8, Cmd) bf16; data at [1:, 8:, :]; col 7 = left
        # conv pad, row 0 = top conv pad.  Cols 0..6 are never read (the offset
        # keeps the big interior store 8-sublane aligned) and are never touched.
        # 1x1 bottleneck + BN + ReLU on all four planes in one matmul (the 1x1
        # conv is pointwise, so it commutes with even/odd subsampling).
        x0all = x0p_ref[0].reshape(4 * hq * wq, c0)
        hd = jnp.dot(x0all.astype(bf16), w1d_ref[...],
                     preferred_element_type=f32)
        hd = jnp.maximum(hd * s1d_ref[...] + b1d_ref[...], 0.0).astype(bf16)
        hd = hd.reshape(4, hq, wq, cmd)
        for p in range(4):
            pd_ref[p, 1:, 8:, :] = hd[p]
            # border-only zeroing (interior is fully overwritten above)
            pd_ref[p, 0:1, 7:, :] = jnp.zeros((1, wq + 1, cmd), bf16)
            pd_ref[p, 1:, 7:8, :] = jnp.zeros((hq, 1, cmd), bf16)
        # 9 per-tap matmuls accumulated in f32; tap (dy, dx) of the stride-2
        # conv reads plane (a, b) with a=(dy+1)%2, b=(dx+1)%2, shifted by 0/-1.
        acc = jnp.zeros((hq * wq, ch), f32)
        for dy in range(3):
            a = (dy + 1) % 2
            ro = 0 if dy == 0 else 1
            for dx in range(3):
                b = (dx + 1) % 2
                co = 7 if dx == 0 else 8
                t = dy * 3 + dx
                tap = pd_ref[2 * a + b, ro:ro + hq, co:co + wq, :]
                acc = acc + jnp.dot(tap.reshape(hq * wq, cmd), w3d_ref[t],
                                    preferred_element_type=f32)
        od_ref[0, :, :] = jnp.maximum(acc * s2d_ref[...] + b2d_ref[...], 0.0)

    pl.run_scoped(down_scope, pltpu.VMEM((4, hq + 1, wq + 8, cmd), bf16))

    # ---- normal branch (3x3, stride 1, pad 1) ------------------------------
    def normal_scope(pn_ref):
        # pn_ref: (H2+2, W2+9, Cmn) bf16; data at [1:H2+1, 8:W2+8, :];
        # pad rows 0 / H2+1, pad cols 7 / W2+8.  Cols 0..6 never touched.
        x1flat = x1_ref[0].reshape(h2 * w2, c1)
        hn = jnp.dot(x1flat.astype(bf16), w1n_ref[...],
                     preferred_element_type=f32)
        hn = jnp.maximum(hn * s1n_ref[...] + b1n_ref[...], 0.0).astype(bf16)
        pn_ref[1:h2 + 1, 8:8 + w2, :] = hn.reshape(h2, w2, cmn)
        pn_ref[0:1, 7:, :] = jnp.zeros((1, w2 + 2, cmn), bf16)
        pn_ref[h2 + 1:h2 + 2, 7:, :] = jnp.zeros((1, w2 + 2, cmn), bf16)
        pn_ref[1:h2 + 1, 7:8, :] = jnp.zeros((h2, 1, cmn), bf16)
        pn_ref[1:h2 + 1, w2 + 8:w2 + 9, :] = jnp.zeros((h2, 1, cmn), bf16)
        acc = jnp.zeros((h2 * w2, ch), f32)
        for dy in range(3):
            for dx in range(3):
                t = dy * 3 + dx
                tap = pn_ref[dy:dy + h2, dx + 7:dx + 7 + w2, :]
                acc = acc + jnp.dot(tap.reshape(h2 * w2, cmn), w3n_ref[t],
                                    preferred_element_type=f32)
        on_ref[0, :, :] = jnp.maximum(acc * s2n_ref[...] + b2n_ref[...], 0.0)

    pl.run_scoped(normal_scope, pltpu.VMEM((h2 + 2, w2 + 9, cmn), bf16))


# ----------------------------------------------------------------------------
# ConvDownNormal forward (plain-JAX glue around the fused kernel)
# ----------------------------------------------------------------------------

def conv_down_normal_forward(x0_nchw, x1_nchw, params):
    """forward(x) with x = [x0 (finer scale), x1 (coarser scale)], NCHW."""
    bsz, c0, h1, w1 = x0_nchw.shape
    _, c1, h2, w2 = x1_nchw.shape
    assert h1 == 2 * h2 and w1 == 2 * w2, "finer scale must be 2x coarser"
    assert w2 % 8 == 0, "demo assumes coarse width multiple of 8"
    # TODO(synk): spatial widths that are not multiples of 8 (e.g. 14, 7) need
    # padded blocks; not required for this demo.
    hq, wq = h2, w2

    pdn, pno = params["conv_down"], params["conv_normal"]
    cmd = pdn["w1"].shape[1]
    cmn = pno["w1"].shape[1]
    ch = pdn["w3"].shape[3]

    # Single layout op: NCHW -> even/odd NHWC planes (B, 4, Hq, Wq, C0).
    x0p = x0_nchw.reshape(bsz, c0, hq, 2, wq, 2)
    x0p = jnp.transpose(x0p, (0, 3, 5, 2, 4, 1)).reshape(bsz, 4, hq, wq, c0)
    # Coarse input NCHW -> NHWC.
    x1 = jnp.transpose(x1_nchw, (0, 2, 3, 1))

    # bf16 matmul operands; 3x3 weights as (9, Cmid, Ch) for per-tap matmuls.
    w1d = pdn["w1"].astype(jnp.bfloat16)
    w3d = pdn["w3"].reshape(9, cmd, ch).astype(jnp.bfloat16)
    w1n = pno["w1"].astype(jnp.bfloat16)
    w3n = pno["w3"].reshape(9, cmn, ch).astype(jnp.bfloat16)
    s1d = pdn["bn1_scale"].reshape(1, cmd)
    b1d = pdn["bn1_bias"].reshape(1, cmd)
    s2d = pdn["bn2_scale"].reshape(1, ch)
    b2d = pdn["bn2_bias"].reshape(1, ch)
    s1n = pno["bn1_scale"].reshape(1, cmn)
    b1n = pno["bn1_bias"].reshape(1, cmn)
    s2n = pno["bn2_scale"].reshape(1, ch)
    b2n = pno["bn2_bias"].reshape(1, ch)

    full2d = lambda i: (0, 0)
    full3d = lambda i: (0, 0, 0)
    yd, yn = pl.pallas_call(
        _conv_down_normal_kernel,
        out_shape=(jax.ShapeDtypeStruct((bsz, h2 * w2, ch), jnp.float32),
                   jax.ShapeDtypeStruct((bsz, h2 * w2, ch), jnp.float32)),
        grid=(bsz,),
        in_specs=[
            pl.BlockSpec((1, 4, hq, wq, c0), lambda i: (i, 0, 0, 0, 0)),
            pl.BlockSpec((1, h2, w2, c1), lambda i: (i, 0, 0, 0)),
            pl.BlockSpec((c0, cmd), full2d),
            pl.BlockSpec((1, cmd), full2d),
            pl.BlockSpec((1, cmd), full2d),
            pl.BlockSpec((9, cmd, ch), full3d),
            pl.BlockSpec((1, ch), full2d),
            pl.BlockSpec((1, ch), full2d),
            pl.BlockSpec((c1, cmn), full2d),
            pl.BlockSpec((1, cmn), full2d),
            pl.BlockSpec((1, cmn), full2d),
            pl.BlockSpec((9, cmn, ch), full3d),
            pl.BlockSpec((1, ch), full2d),
            pl.BlockSpec((1, ch), full2d),
        ],
        out_specs=(pl.BlockSpec((1, h2 * w2, ch), lambda i: (i, 0, 0)),
                   pl.BlockSpec((1, h2 * w2, ch), lambda i: (i, 0, 0))),
        compiler_params=pltpu.CompilerParams(
            dimension_semantics=("parallel",),
            vmem_limit_bytes=32 * 1024 * 1024),
    )(x0p, x1, w1d, s1d, b1d, w3d, s2d, b2d,
      w1n, s1n, b1n, w3n, s2n, b2n)

    # Concat in NCHW with the untouched x1 (free passthrough, exact identity).
    yd = jnp.transpose(yd.reshape(bsz, h2, w2, ch), (0, 3, 1, 2))
    yn = jnp.transpose(yn.reshape(bsz, h2, w2, ch), (0, 3, 1, 2))
    return jnp.concatenate([x1_nchw, yd, yn], axis=1)


# ----------------------------------------------------------------------------
# Deterministic parameter init (BN folded to eval-mode affine)
# ----------------------------------------------------------------------------

def _fold_bn(gamma, beta, mean, var, eps=1e-5):
    scale = gamma * jax.lax.rsqrt(var + eps)
    return scale, beta - mean * scale


def init_convbn_params(key, n_in, n_out, bn_width, bottleneck=True):
    assert bottleneck, "fused kernel implements the bottleneck ConvBN variant"
    n_inner = min(n_in, bn_width * n_out)
    ks = jax.random.split(key, 10)
    p = {}
    # PyTorch Conv2d weight (n_inner, n_in, 1, 1) stored as (n_in, n_inner)
    p["w1"] = jax.random.normal(ks[0], (n_in, n_inner), jnp.float32) \
        * (2.0 / n_in) ** 0.5
    g1 = 1.0 + 0.1 * jax.random.normal(ks[1], (n_inner,), jnp.float32)
    b1 = 0.1 * jax.random.normal(ks[2], (n_inner,), jnp.float32)
    m1 = 0.1 * jax.random.normal(ks[3], (n_inner,), jnp.float32)
    v1 = 1.0 + 0.1 * jnp.abs(jax.random.normal(ks[4], (n_inner,), jnp.float32))
    p["bn1_scale"], p["bn1_bias"] = _fold_bn(g1, b1, m1, v1)
    # PyTorch Conv2d weight (n_out, n_inner, 3, 3) stored as (3, 3, n_inner, n_out)
    p["w3"] = jax.random.normal(ks[5], (3, 3, n_inner, n_out), jnp.float32) \
        * (2.0 / (9 * n_inner)) ** 0.5
    g2 = 1.0 + 0.1 * jax.random.normal(ks[6], (n_out,), jnp.float32)
    b2 = 0.1 * jax.random.normal(ks[7], (n_out,), jnp.float32)
    m2 = 0.1 * jax.random.normal(ks[8], (n_out,), jnp.float32)
    v2 = 1.0 + 0.1 * jnp.abs(jax.random.normal(ks[9], (n_out,), jnp.float32))
    p["bn2_scale"], p["bn2_bias"] = _fold_bn(g2, b2, m2, v2)
    return p


# ----------------------------------------------------------------------------
# Pure-JAX reference (fp32 HIGHEST precision, for correctness check)
# ----------------------------------------------------------------------------

def _ref_convbn(x_nhwc, p, stride):
    h = jnp.einsum("bhwc,cd->bhwd", x_nhwc, p["w1"],
                   precision=jax.lax.Precision.HIGHEST)
    h = jnp.maximum(h * p["bn1_scale"] + p["bn1_bias"], 0.0)
    y = jax.lax.conv_general_dilated(
        h, p["w3"], window_strides=(stride, stride),
        padding=((1, 1), (1, 1)),
        dimension_numbers=("NHWC", "HWIO", "NHWC"),
        precision=jax.lax.Precision.HIGHEST)
    return jnp.maximum(y * p["bn2_scale"] + p["bn2_bias"], 0.0)


def reference_forward(x0_nchw, x1_nchw, params):
    x0 = jnp.transpose(x0_nchw, (0, 2, 3, 1))
    x1 = jnp.transpose(x1_nchw, (0, 2, 3, 1))
    y_down = _ref_convbn(x0, params["conv_down"], 2)
    y_norm = _ref_convbn(x1, params["conv_normal"], 1)
    out = jnp.concatenate([x1, y_down, y_norm], axis=-1)
    return jnp.transpose(out, (0, 3, 1, 2))


# ----------------------------------------------------------------------------
# Demo
# ----------------------------------------------------------------------------

if __name__ == "__main__":
    key = jax.random.PRNGKey(0)
    kx0, kx1, kp1, kp2 = jax.random.split(key, 4)

    B = 2
    nIn1, nIn2, nOut = 4, 8, 8           # ConvDownNormal(nIn1, nIn2, nOut, ...)
    bnWidth1, bnWidth2 = 1, 2
    H1 = W1 = 16                          # finer scale (goes through 'down')
    H2 = W2 = 8                           # coarser scale ('normal' branch)

    # x = [x0, x1] in NCHW, matching PyTorch conventions
    x0 = jax.random.normal(kx0, (B, nIn1, H1, W1), jnp.float32)
    x1 = jax.random.normal(kx1, (B, nIn2, H2, W2), jnp.float32)

    params = {
        "conv_down": init_convbn_params(kp1, nIn1, nOut // 2, bnWidth1,
                                        bottleneck=True),
        "conv_normal": init_convbn_params(kp2, nIn2, nOut // 2, bnWidth2,
                                          bottleneck=True),
    }

    out = jax.jit(conv_down_normal_forward)(x0, x1, params)
    out = jax.block_until_ready(out)

    expected_shape = (B, nIn2 + nOut, H2, W2)   # cat([x1, down, normal], dim=1)
    assert out.shape == expected_shape, (out.shape, expected_shape)

    ref = reference_forward(x0, x1, params)
    max_err = float(jnp.max(jnp.abs(out - ref)))
    # bf16 operands + f32 accumulation vs fp32-HIGHEST reference
    assert jnp.allclose(out, ref, atol=5e-2, rtol=5e-2), max_err

    print("KERNEL_OK")
</pallas_src>

<mosaic_0001>
module attributes {stable_mosaic.version = 11 : i64} {
  func.func @_conv_down_normal_kernel(%arg0: i32, %arg1: memref<1x4x8x8x4xf32, #tpu.memory_space<vmem>>, %arg2: memref<1x8x8x8xf32, #tpu.memory_space<vmem>>, %arg3: memref<4x4xbf16, #tpu.memory_space<vmem>>, %arg4: memref<1x4xf32, #tpu.memory_space<vmem>>, %arg5: memref<1x4xf32, #tpu.memory_space<vmem>>, %arg6: memref<9x4x4xbf16, #tpu.memory_space<vmem>>, %arg7: memref<1x4xf32, #tpu.memory_space<vmem>>, %arg8: memref<1x4xf32, #tpu.memory_space<vmem>>, %arg9: memref<8x8xbf16, #tpu.memory_space<vmem>>, %arg10: memref<1x8xf32, #tpu.memory_space<vmem>>, %arg11: memref<1x8xf32, #tpu.memory_space<vmem>>, %arg12: memref<9x8x4xbf16, #tpu.memory_space<vmem>>, %arg13: memref<1x4xf32, #tpu.memory_space<vmem>>, %arg14: memref<1x4xf32, #tpu.memory_space<vmem>>, %arg15: memref<1x64x4xf32, #tpu.memory_space<vmem>>, %arg16: memref<1x64x4xf32, #tpu.memory_space<vmem>>) attributes {dimension_semantics = [#tpu.dimension_semantics<parallel>], iteration_bounds = array<i64: 2>, scalar_prefetch = 0 : i64, scratch_operands = 0 : i64, tpu.core_type = #tpu.core_type<tc>, window_params = [{transform_indices = @transform_0, window_bounds = array<i64: 1, 4, 8, 8, 4>}, {transform_indices = @transform_1, window_bounds = array<i64: 1, 8, 8, 8>}, {pipeline_mode = #tpu.pipeline_mode<synchronous>, transform_indices = @transform_2, window_bounds = array<i64: 4, 4>}, {pipeline_mode = #tpu.pipeline_mode<synchronous>, transform_indices = @transform_3, window_bounds = array<i64: 1, 4>}, {pipeline_mode = #tpu.pipeline_mode<synchronous>, transform_indices = @transform_4, window_bounds = array<i64: 1, 4>}, {pipeline_mode = #tpu.pipeline_mode<synchronous>, transform_indices = @transform_5, window_bounds = array<i64: 9, 4, 4>}, {pipeline_mode = #tpu.pipeline_mode<synchronous>, transform_indices = @transform_6, window_bounds = array<i64: 1, 4>}, {pipeline_mode = #tpu.pipeline_mode<synchronous>, transform_indices = @transform_7, window_bounds = array<i64: 1, 4>}, {pipeline_mode = #tpu.pipeline_mode<synchronous>, transform_indices = @transform_8, window_bounds = array<i64: 8, 8>}, {pipeline_mode = #tpu.pipeline_mode<synchronous>, transform_indices = @transform_9, window_bounds = array<i64: 1, 8>}, {pipeline_mode = #tpu.pipeline_mode<synchronous>, transform_indices = @transform_10, window_bounds = array<i64: 1, 8>}, {pipeline_mode = #tpu.pipeline_mode<synchronous>, transform_indices = @transform_11, window_bounds = array<i64: 9, 8, 4>}, {pipeline_mode = #tpu.pipeline_mode<synchronous>, transform_indices = @transform_12, window_bounds = array<i64: 1, 4>}, {pipeline_mode = #tpu.pipeline_mode<synchronous>, transform_indices = @transform_13, window_bounds = array<i64: 1, 4>}, {transform_indices = @transform_14, window_bounds = array<i64: 1, 64, 4>}, {transform_indices = @transform_15, window_bounds = array<i64: 1, 64, 4>}]} {
    "tpu.region"() ({
      %alloca = memref.alloca() : memref<4x9x16x4xbf16, #tpu.memory_space<vmem>>
      %c0 = arith.constant 0 : index
      %c0_0 = arith.constant 0 : index
      %c0_1 = arith.constant 0 : index
      %c0_2 = arith.constant 0 : index
      %c0_3 = arith.constant 0 : index
      %0 = vector.load %arg1[%c0, %c0_0, %c0_1, %c0_2, %c0_3] : memref<1x4x8x8x4xf32, #tpu.memory_space<vmem>>, vector<1x4x8x8x4xf32>
      %1 = vector.shape_cast %0 : vector<1x4x8x8x4xf32> to vector<4x8x8x4xf32>
      %2 = vector.shape_cast %1 : vector<4x8x8x4xf32> to vector<256x4xf32>
      %3 = arith.truncf %2 : vector<256x4xf32> to vector<256x4xbf16>
      %c0_4 = arith.constant 0 : index
      %c0_5 = arith.constant 0 : index
      %4 = vector.load %arg3[%c0_4, %c0_5] : memref<4x4xbf16, #tpu.memory_space<vmem>>, vector<4x4xbf16>
      %cst = arith.constant dense<0.000000e+00> : vector<256x4xf32>
      %5 = tpu.matmul %3, %4, %cst {dimension_numbers = #tpu.dot_dimension_numbers<[1], [0], [0], [1], [0, 0, 1, 1], [], []>} : vector<256x4xbf16>, vector<4x4xbf16>, vector<256x4xf32> -> vector<256x4xf32>
      %c0_6 = arith.constant 0 : index
      %c0_7 = arith.constant 0 : index
      %6 = vector.load %arg4[%c0_6, %c0_7] : memref<1x4xf32, #tpu.memory_space<vmem>>, vector<1x4xf32>
      %7 = vector.broadcast %6 : vector<1x4xf32> to vector<256x4xf32>
      %8 = arith.mulf %5, %7 : vector<256x4xf32>
      %c0_8 = arith.constant 0 : index
      %c0_9 = arith.constant 0 : index
      %9 = vector.load %arg5[%c0_8, %c0_9] : memref<1x4xf32, #tpu.memory_space<vmem>>, vector<1x4xf32>
      %10 = vector.broadcast %9 : vector<1x4xf32> to vector<256x4xf32>
      %11 = arith.addf %8, %10 : vector<256x4xf32>
      %cst_10 = arith.constant 0.000000e+00 : f32
      %12 = vector.broadcast %cst_10 : f32 to vector<256x4xf32>
      %13 = arith.maximumf %11, %12 : vector<256x4xf32>
      %14 = arith.truncf %13 : vector<256x4xf32> to vector<256x4xbf16>
      %15 = vector.shape_cast %14 : vector<256x4xbf16> to vector<4x8x8x4xbf16>
      %16 = vector.extract_strided_slice %15 {offsets = [0, 0, 0, 0], sizes = [1, 8, 8, 4], strides = [1, 1, 1, 1]} : vector<4x8x8x4xbf16> to vector<1x8x8x4xbf16>
      %17 = vector.shape_cast %16 : vector<1x8x8x4xbf16> to vector<8x8x4xbf16>
      %c0_11 = arith.constant 0 : index
      %c1 = arith.constant 1 : index
      %c8 = arith.constant 8 : index
      %c0_12 = arith.constant 0 : index
      %18 = vector.load %alloca[%c0_11, %c1, %c8, %c0_12] : memref<4x9x16x4xbf16, #tpu.memory_space<vmem>>, vector<1x8x8x4xbf16>
      %19 = vector.shape_cast %18 : vector<1x8x8x4xbf16> to vector<8x8x4xbf16>
      %20 = vector.shape_cast %17 : vector<8x8x4xbf16> to vector<1x8x8x4xbf16>
      tpu.vector_store %alloca[%c0_11, %c1, %c8, %c0_12], %20 {strides = array<i32>} : memref<4x9x16x4xbf16, #tpu.memory_space<vmem>>, vector<1x8x8x4xbf16>,
      %cst_13 = arith.constant 0.000000e+00 : bf16
      %21 = vector.broadcast %cst_13 : bf16 to vector<1x9x4xbf16>
      %c0_14 = arith.constant 0 : index
      %c0_15 = arith.constant 0 : index
      %c7 = arith.constant 7 : index
      %c0_16 = arith.constant 0 : index
      %22 = vector.load %alloca[%c0_14, %c0_15, %c7, %c0_16] : memref<4x9x16x4xbf16, #tpu.memory_space<vmem>>, vector<1x1x9x4xbf16>
      %23 = vector.shape_cast %22 : vector<1x1x9x4xbf16> to vector<1x9x4xbf16>
      %24 = vector.shape_cast %21 : vector<1x9x4xbf16> to vector<1x1x9x4xbf16>
      tpu.vector_store %alloca[%c0_14, %c0_15, %c7, %c0_16], %24 {strides = array<i32>} : memref<4x9x16x4xbf16, #tpu.memory_space<vmem>>, vector<1x1x9x4xbf16>,
      %cst_17 = arith.constant 0.000000e+00 : bf16
      %25 = vector.broadcast %cst_17 : bf16 to vector<8x1x4xbf16>
      %c0_18 = arith.constant 0 : index
      %c1_19 = arith.constant 1 : index
      %c7_20 = arith.constant 7 : index
      %c0_21 = arith.constant 0 : index
      %26 = vector.load %alloca[%c0_18, %c1_19, %c7_20, %c0_21] : memref<4x9x16x4xbf16, #tpu.memory_space<vmem>>, vector<1x8x1x4xbf16>
      %27 = vector.shape_cast %26 : vector<1x8x1x4xbf16> to vector<8x1x4xbf16>
      %28 = vector.shape_cast %25 : vector<8x1x4xbf16> to vector<1x8x1x4xbf16>
      tpu.vector_store %alloca[%c0_18, %c1_19, %c7_20, %c0_21], %28 {strides = array<i32>} : memref<4x9x16x4xbf16, #tpu.memory_space<vmem>>, vector<1x8x1x4xbf16>,
      %29 = vector.extract_strided_slice %15 {offsets = [1, 0, 0, 0], sizes = [1, 8, 8, 4], strides = [1, 1, 1, 1]} : vector<4x8x8x4xbf16> to vector<1x8x8x4xbf16>
      %30 = vector.shape_cast %29 : vector<1x8x8x4xbf16> to vector<8x8x4xbf16>
      %c1_22 = arith.constant 1 : index
      %c1_23 = arith.constant 1 : index
      %c8_24 = arith.constant 8 : index
      %c0_25 = arith.constant 0 : index
      %31 = vector.load %alloca[%c1_22, %c1_23, %c8_24, %c0_25] : memref<4x9x16x4xbf16, #tpu.memory_space<vmem>>, vector<1x8x8x4xbf16>
      %32 = vector.shape_cast %31 : vector<1x8x8x4xbf16> to vector<8x8x4xbf16>
      %33 = vector.shape_cast %30 : vector<8x8x4xbf16> to vector<1x8x8x4xbf16>
      tpu.vector_store %alloca[%c1_22, %c1_23, %c8_24, %c0_25], %33 {strides = array<i32>} : memref<4x9x16x4xbf16, #tpu.memory_space<vmem>>, vector<1x8x8x4xbf16>,
      %cst_26 = arith.constant 0.000000e+00 : bf16
      %34 = vector.broadcast %cst_26 : bf16 to vector<1x9x4xbf16>
      %c1_27 = arith.constant 1 : index
      %c0_28 = arith.constant 0 : index
      %c7_29 = arith.constant 7 : index
      %c0_30 = arith.constant 0 : index
      %35 = vector.load %alloca[%c1_27, %c0_28, %c7_29, %c0_30] : memref<4x9x16x4xbf16, #tpu.memory_space<vmem>>, vector<1x1x9x4xbf16>
      %36 = vector.shape_cast %35 : vector<1x1x9x4xbf16> to vector<1x9x4xbf16>
      %37 = vector.shape_cast %34 : vector<1x9x4xbf16> to vector<1x1x9x4xbf16>
      tpu.vector_store %alloca[%c1_27, %c0_28, %c7_29, %c0_30], %37 {strides = array<i32>} : memref<4x9x16x4xbf16, #tpu.memory_space<vmem>>, vector<1x1x9x4xbf16>,
      %cst_31 = arith.constant 0.000000e+00 : bf16
      %38 = vector.broadcast %cst_31 : bf16 to vector<8x1x4xbf16>
      %c1_32 = arith.constant 1 : index
      %c1_33 = arith.constant 1 : index
      %c7_34 = arith.constant 7 : index
      %c0_35 = arith.constant 0 : index
      %39 = vector.load %alloca[%c1_32, %c1_33, %c7_34, %c0_35] : memref<4x9x16x4xbf16, #tpu.memory_space<vmem>>, vector<1x8x1x4xbf16>
      %40 = vector.shape_cast %39 : vector<1x8x1x4xbf16> to vector<8x1x4xbf16>
      %41 = vector.shape_cast %38 : vector<8x1x4xbf16> to vector<1x8x1x4xbf16>
      tpu.vector_store %alloca[%c1_32, %c1_33, %c7_34, %c0_35], %41 {strides = array<i32>} : memref<4x9x16x4xbf16, #tpu.memory_space<vmem>>, vector<1x8x1x4xbf16>,
      %42 = vector.extract_strided_slice %15 {offsets = [2, 0, 0, 0], sizes = [1, 8, 8, 4], strides = [1, 1, 1, 1]} : vector<4x8x8x4xbf16> to vector<1x8x8x4xbf16>
      %43 = vector.shape_cast %42 : vector<1x8x8x4xbf16> to vector<8x8x4xbf16>
      %c2 = arith.constant 2 : index
      %c1_36 = arith.constant 1 : index
      %c8_37 = arith.constant 8 : index
      %c0_38 = arith.constant 0 : index
      %44 = vector.load %alloca[%c2, %c1_36, %c8_37, %c0_38] : memref<4x9x16x4xbf16, #tpu.memory_space<vmem>>, vector<1x8x8x4xbf16>
      %45 = vector.shape_cast %44 : vector<1x8x8x4xbf16> to vector<8x8x4xbf16>
      %46 = vector.shape_cast %43 : vector<8x8x4xbf16> to vector<1x8x8x4xbf16>
      tpu.vector_store %alloca[%c2, %c1_36, %c8_37, %c0_38], %46 {strides = array<i32>} : memref<4x9x16x4xbf16, #tpu.memory_space<vmem>>, vector<1x8x8x4xbf16>,
      %cst_39 = arith.constant 0.000000e+00 : bf16
      %47 = vector.broadcast %cst_39 : bf16 to vector<1x9x4xbf16>
      %c2_40 = arith.constant 2 : index
      %c0_41 = arith.constant 0 : index
      %c7_42 = arith.constant 7 : index
      %c0_43 = arith.constant 0 : index
      %48 = vector.load %alloca[%c2_40, %c0_41, %c7_42, %c0_43] : memref<4x9x16x4xbf16, #tpu.memory_space<vmem>>, vector<1x1x9x4xbf16>
      %49 = vector.shape_cast %48 : vector<1x1x9x4xbf16> to vector<1x9x4xbf16>
      %50 = vector.shape_cast %47 : vector<1x9x4xbf16> to vector<1x1x9x4xbf16>
      tpu.vector_store %alloca[%c2_40, %c0_41, %c7_42, %c0_43], %50 {strides = array<i32>} : memref<4x9x16x4xbf16, #tpu.memory_space<vmem>>, vector<1x1x9x4xbf16>,
      %cst_44 = arith.constant 0.000000e+00 : bf16
      %51 = vector.broadcast %cst_44 : bf16 to vector<8x1x4xbf16>
      %c2_45 = arith.constant 2 : index
      %c1_46 = arith.constant 1 : index
      %c7_47 = arith.constant 7 : index
      %c0_48 = arith.constant 0 : index
      %52 = vector.load %alloca[%c2_45, %c1_46, %c7_47, %c0_48] : memref<4x9x16x4xbf16, #tpu.memory_space<vmem>>, vector<1x8x1x4xbf16>
      %53 = vector.shape_cast %52 : vector<1x8x1x4xbf16> to vector<8x1x4xbf16>
      %54 = vector.shape_cast %51 : vector<8x1x4xbf16> to vector<1x8x1x4xbf16>
      tpu.vector_store %alloca[%c2_45, %c1_46, %c7_47, %c0_48], %54 {strides = array<i32>} : memref<4x9x16x4xbf16, #tpu.memory_space<vmem>>, vector<1x8x1x4xbf16>,
      %55 = vector.extract_strided_slice %15 {offsets = [3, 0, 0, 0], sizes = [1, 8, 8, 4], strides = [1, 1, 1, 1]} : vector<4x8x8x4xbf16> to vector<1x8x8x4xbf16>
      %56 = vector.shape_cast %55 : vector<1x8x8x4xbf16> to vector<8x8x4xbf16>
      %c3 = arith.constant 3 : index
      %c1_49 = arith.constant 1 : index
      %c8_50 = arith.constant 8 : index
      %c0_51 = arith.constant 0 : index
      %57 = vector.load %alloca[%c3, %c1_49, %c8_50, %c0_51] : memref<4x9x16x4xbf16, #tpu.memory_space<vmem>>, vector<1x8x8x4xbf16>
      %58 = vector.shape_cast %57 : vector<1x8x8x4xbf16> to vector<8x8x4xbf16>
      %59 = vector.shape_cast %56 : vector<8x8x4xbf16> to vector<1x8x8x4xbf16>
      tpu.vector_store %alloca[%c3, %c1_49, %c8_50, %c0_51], %59 {strides = array<i32>} : memref<4x9x16x4xbf16, #tpu.memory_space<vmem>>, vector<1x8x8x4xbf16>,
      %cst_52 = arith.constant 0.000000e+00 : bf16
      %60 = vector.broadcast %cst_52 : bf16 to vector<1x9x4xbf16>
      %c3_53 = arith.constant 3 : index
      %c0_54 = arith.constant 0 : index
      %c7_55 = arith.constant 7 : index
      %c0_56 = arith.constant 0 : index
      %61 = vector.load %alloca[%c3_53, %c0_54, %c7_55, %c0_56] : memref<4x9x16x4xbf16, #tpu.memory_space<vmem>>, vector<1x1x9x4xbf16>
      %62 = vector.shape_cast %61 : vector<1x1x9x4xbf16> to vector<1x9x4xbf16>
      %63 = vector.shape_cast %60 : vector<1x9x4xbf16> to vector<1x1x9x4xbf16>
      tpu.vector_store %alloca[%c3_53, %c0_54, %c7_55, %c0_56], %63 {strides = array<i32>} : memref<4x9x16x4xbf16, #tpu.memory_space<vmem>>, vector<1x1x9x4xbf16>,
      %cst_57 = arith.constant 0.000000e+00 : bf16
      %64 = vector.broadcast %cst_57 : bf16 to vector<8x1x4xbf16>
      %c3_58 = arith.constant 3 : index
      %c1_59 = arith.constant 1 : index
      %c7_60 = arith.constant 7 : index
      %c0_61 = arith.constant 0 : index
      %65 = vector.load %alloca[%c3_58, %c1_59, %c7_60, %c0_61] : memref<4x9x16x4xbf16, #tpu.memory_space<vmem>>, vector<1x8x1x4xbf16>
      %66 = vector.shape_cast %65 : vector<1x8x1x4xbf16> to vector<8x1x4xbf16>
      %67 = vector.shape_cast %64 : vector<8x1x4xbf16> to vector<1x8x1x4xbf16>
      tpu.vector_store %alloca[%c3_58, %c1_59, %c7_60, %c0_61], %67 {strides = array<i32>} : memref<4x9x16x4xbf16, #tpu.memory_space<vmem>>, vector<1x8x1x4xbf16>,
      %cst_62 = arith.constant 0.000000e+00 : f32
      %68 = vector.broadcast %cst_62 : f32 to vector<64x4xf32>
      %c3_63 = arith.constant 3 : index
      %c0_64 = arith.constant 0 : index
      %c7_65 = arith.constant 7 : index
      %c0_66 = arith.constant 0 : index
      %69 = vector.load %alloca[%c3_63, %c0_64, %c7_65, %c0_66] : memref<4x9x16x4xbf16, #tpu.memory_space<vmem>>, vector<1x8x8x4xbf16>
      %70 = vector.shape_cast %69 : vector<1x8x8x4xbf16> to vector<8x8x4xbf16>
      %71 = vector.shape_cast %70 : vector<8x8x4xbf16> to vector<64x4xbf16>
      %c0_67 = arith.constant 0 : index
      %c0_68 = arith.constant 0 : index
      %c0_69 = arith.constant 0 : index
      %72 = vector.load %arg6[%c0_67, %c0_68, %c0_69] : memref<9x4x4xbf16, #tpu.memory_space<vmem>>, vector<1x4x4xbf16>
      %73 = vector.shape_cast %72 : vector<1x4x4xbf16> to vector<4x4xbf16>
      %cst_70 = arith.constant dense<0.000000e+00> : vector<64x4xf32>
      %74 = tpu.matmul %71, %73, %cst_70 {dimension_numbers = #tpu.dot_dimension_numbers<[1], [0], [0], [1], [0, 0, 1, 1], [], []>} : vector<64x4xbf16>, vector<4x4xbf16>, vector<64x4xf32> -> vector<64x4xf32>
      %75 = arith.addf %68, %74 : vector<64x4xf32>
      %c2_71 = arith.constant 2 : index
      %c0_72 = arith.constant 0 : index
      %c8_73 = arith.constant 8 : index
      %c0_74 = arith.constant 0 : index
      %76 = vector.load %alloca[%c2_71, %c0_72, %c8_73, %c0_74] : memref<4x9x16x4xbf16, #tpu.memory_space<vmem>>, vector<1x8x8x4xbf16>
      %77 = vector.shape_cast %76 : vector<1x8x8x4xbf16> to vector<8x8x4xbf16>
      %78 = vector.shape_cast %77 : vector<8x8x4xbf16> to vector<64x4xbf16>
      %c1_75 = arith.constant 1 : index
      %c0_76 = arith.constant 0 : index
      %c0_77 = arith.constant 0 : index
      %79 = vector.load %arg6[%c1_75, %c0_76, %c0_77] : memref<9x4x4xbf16, #tpu.memory_space<vmem>>, vector<1x4x4xbf16>
      %80 = vector.shape_cast %79 : vector<1x4x4xbf16> to vector<4x4xbf16>
      %cst_78 = arith.constant dense<0.000000e+00> : vector<64x4xf32>
      %81 = tpu.matmul %78, %80, %cst_78 {dimension_numbers = #tpu.dot_dimension_numbers<[1], [0], [0], [1], [0, 0, 1, 1], [], []>} : vector<64x4xbf16>, vector<4x4xbf16>, vector<64x4xf32> -> vector<64x4xf32>
      %82 = arith.addf %75, %81 : vector<64x4xf32>
      %c3_79 = arith.constant 3 : index
      %c0_80 = arith.constant 0 : index
      %c8_81 = arith.constant 8 : index
      %c0_82 = arith.constant 0 : index
      %83 = vector.load %alloca[%c3_79, %c0_80, %c8_81, %c0_82] : memref<4x9x16x4xbf16, #tpu.memory_space<vmem>>, vector<1x8x8x4xbf16>
      %84 = vector.shape_cast %83 : vector<1x8x8x4xbf16> to vector<8x8x4xbf16>
      %85 = vector.shape_cast %84 : vector<8x8x4xbf16> to vector<64x4xbf16>
      %c2_83 = arith.constant 2 : index
      %c0_84 = arith.constant 0 : index
      %c0_85 = arith.constant 0 : index
      %86 = vector.load %arg6[%c2_83, %c0_84, %c0_85] : memref<9x4x4xbf16, #tpu.memory_space<vmem>>, vector<1x4x4xbf16>
      %87 = vector.shape_cast %86 : vector<1x4x4xbf16> to vector<4x4xbf16>
      %cst_86 = arith.constant dense<0.000000e+00> : vector<64x4xf32>
      %88 = tpu.matmul %85, %87, %cst_86 {dimension_numbers = #tpu.dot_dimension_numbers<[1], [0], [0], [1], [0, 0, 1, 1], [], []>} : vector<64x4xbf16>, vector<4x4xbf16>, vector<64x4xf32> -> vector<64x4xf32>
      %89 = arith.addf %82, %88 : vector<64x4xf32>
      %c1_87 = arith.constant 1 : index
      %c1_88 = arith.constant 1 : index
      %c7_89 = arith.constant 7 : index
      %c0_90 = arith.constant 0 : index
      %90 = vector.load %alloca[%c1_87, %c1_88, %c7_89, %c0_90] : memref<4x9x16x4xbf16, #tpu.memory_space<vmem>>, vector<1x8x8x4xbf16>
      %91 = vector.shape_cast %90 : vector<1x8x8x4xbf16> to vector<8x8x4xbf16>
      %92 = vector.shape_cast %91 : vector<8x8x4xbf16> to vector<64x4xbf16>
      %c3_91 = arith.constant 3 : index
      %c0_92 = arith.constant 0 : index
      %c0_93 = arith.constant 0 : index
      %93 = vector.load %arg6[%c3_91, %c0_92, %c0_93] : memref<9x4x4xbf16, #tpu.memory_space<vmem>>, vector<1x4x4xbf16>
      %94 = vector.shape_cast %93 : vector<1x4x4xbf16> to vector<4x4xbf16>
      %cst_94 = arith.constant dense<0.000000e+00> : vector<64x4xf32>
      %95 = tpu.matmul %92, %94, %cst_94 {dimension_numbers = #tpu.dot_dimension_numbers<[1], [0], [0], [1], [0, 0, 1, 1], [], []>} : vector<64x4xbf16>, vector<4x4xbf16>, vector<64x4xf32> -> vector<64x4xf32>
      %96 = arith.addf %89, %95 : vector<64x4xf32>
      %c0_95 = arith.constant 0 : index
      %c1_96 = arith.constant 1 : index
      %c8_97 = arith.constant 8 : index
      %c0_98 = arith.constant 0 : index
      %97 = vector.load %alloca[%c0_95, %c1_96, %c8_97, %c0_98] : memref<4x9x16x4xbf16, #tpu.memory_space<vmem>>, vector<1x8x8x4xbf16>
      %98 = vector.shape_cast %97 : vector<1x8x8x4xbf16> to vector<8x8x4xbf16>
      %99 = vector.shape_cast %98 : vector<8x8x4xbf16> to vector<64x4xbf16>
      %c4 = arith.constant 4 : index
      %c0_99 = arith.constant 0 : index
      %c0_100 = arith.constant 0 : index
      %100 = vector.load %arg6[%c4, %c0_99, %c0_100] : memref<9x4x4xbf16, #tpu.memory_space<vmem>>, vector<1x4x4xbf16>
      %101 = vector.shape_cast %100 : vector<1x4x4xbf16> to vector<4x4xbf16>
      %cst_101 = arith.constant dense<0.000000e+00> : vector<64x4xf32>
      %102 = tpu.matmul %99, %101, %cst_101 {dimension_numbers = #tpu.dot_dimension_numbers<[1], [0], [0], [1], [0, 0, 1, 1], [], []>} : vector<64x4xbf16>, vector<4x4xbf16>, vector<64x4xf32> -> vector<64x4xf32>
      %103 = arith.addf %96, %102 : vector<64x4xf32>
      %c1_102 = arith.constant 1 : index
      %c1_103 = arith.constant 1 : index
      %c8_104 = arith.constant 8 : index
      %c0_105 = arith.constant 0 : index
      %104 = vector.load %alloca[%c1_102, %c1_103, %c8_104, %c0_105] : memref<4x9x16x4xbf16, #tpu.memory_space<vmem>>, vector<1x8x8x4xbf16>
      %105 = vector.shape_cast %104 : vector<1x8x8x4xbf16> to vector<8x8x4xbf16>
      %106 = vector.shape_cast %105 : vector<8x8x4xbf16> to vector<64x4xbf16>
      %c5 = arith.constant 5 : index
      %c0_106 = arith.constant 0 : index
      %c0_107 = arith.constant 0 : index
      %107 = vector.load %arg6[%c5, %c0_106, %c0_107] : memref<9x4x4xbf16, #tpu.memory_space<vmem>>, vector<1x4x4xbf16>
      %108 = vector.shape_cast %107 : vector<1x4x4xbf16> to vector<4x4xbf16>
      %cst_108 = arith.constant dense<0.000000e+00> : vector<64x4xf32>
      %109 = tpu.matmul %106, %108, %cst_108 {dimension_numbers = #tpu.dot_dimension_numbers<[1], [0], [0], [1], [0, 0, 1, 1], [], []>} : vector<64x4xbf16>, vector<4x4xbf16>, vector<64x4xf32> -> vector<64x4xf32>
      %110 = arith.addf %103, %109 : vector<64x4xf32>
      %c3_109 = arith.constant 3 : index
      %c1_110 = arith.constant 1 : index
      %c7_111 = arith.constant 7 : index
      %c0_112 = arith.constant 0 : index
      %111 = vector.load %alloca[%c3_109, %c1_110, %c7_111, %c0_112] : memref<4x9x16x4xbf16, #tpu.memory_space<vmem>>, vector<1x8x8x4xbf16>
      %112 = vector.shape_cast %111 : vector<1x8x8x4xbf16> to vector<8x8x4xbf16>
      %113 = vector.shape_cast %112 : vector<8x8x4xbf16> to vector<64x4xbf16>
      %c6 = arith.constant 6 : index
      %c0_113 = arith.constant 0 : index
      %c0_114 = arith.constant 0 : index
      %114 = vector.load %arg6[%c6, %c0_113, %c0_114] : memref<9x4x4xbf16, #tpu.memory_space<vmem>>, vector<1x4x4xbf16>
      %115 = vector.shape_cast %114 : vector<1x4x4xbf16> to vector<4x4xbf16>
      %cst_115 = arith.constant dense<0.000000e+00> : vector<64x4xf32>
      %116 = tpu.matmul %113, %115, %cst_115 {dimension_numbers = #tpu.dot_dimension_numbers<[1], [0], [0], [1], [0, 0, 1, 1], [], []>} : vector<64x4xbf16>, vector<4x4xbf16>, vector<64x4xf32> -> vector<64x4xf32>
      %117 = arith.addf %110, %116 : vector<64x4xf32>
      %c2_116 = arith.constant 2 : index
      %c1_117 = arith.constant 1 : index
      %c8_118 = arith.constant 8 : index
      %c0_119 = arith.constant 0 : index
      %118 = vector.load %alloca[%c2_116, %c1_117, %c8_118, %c0_119] : memref<4x9x16x4xbf16, #tpu.memory_space<vmem>>, vector<1x8x8x4xbf16>
      %119 = vector.shape_cast %118 : vector<1x8x8x4xbf16> to vector<8x8x4xbf16>
      %120 = vector.shape_cast %119 : vector<8x8x4xbf16> to vector<64x4xbf16>
      %c7_120 = arith.constant 7 : index
      %c0_121 = arith.constant 0 : index
      %c0_122 = arith.constant 0 : index
      %121 = vector.load %arg6[%c7_120, %c0_121, %c0_122] : memref<9x4x4xbf16, #tpu.memory_space<vmem>>, vector<1x4x4xbf16>
      %122 = vector.shape_cast %121 : vector<1x4x4xbf16> to vector<4x4xbf16>
      %cst_123 = arith.constant dense<0.000000e+00> : vector<64x4xf32>
      %123 = tpu.matmul %120, %122, %cst_123 {dimension_numbers = #tpu.dot_dimension_numbers<[1], [0], [0], [1], [0, 0, 1, 1], [], []>} : vector<64x4xbf16>, vector<4x4xbf16>, vector<64x4xf32> -> vector<64x4xf32>
      %124 = arith.addf %117, %123 : vector<64x4xf32>
      %c3_124 = arith.constant 3 : index
      %c1_125 = arith.constant 1 : index
      %c8_126 = arith.constant 8 : index
      %c0_127 = arith.constant 0 : index
      %125 = vector.load %alloca[%c3_124, %c1_125, %c8_126, %c0_127] : memref<4x9x16x4xbf16, #tpu.memory_space<vmem>>, vector<1x8x8x4xbf16>
      %126 = vector.shape_cast %125 : vector<1x8x8x4xbf16> to vector<8x8x4xbf16>
      %127 = vector.shape_cast %126 : vector<8x8x4xbf16> to vector<64x4xbf16>
      %c8_128 = arith.constant 8 : index
      %c0_129 = arith.constant 0 : index
      %c0_130 = arith.constant 0 : index
      %128 = vector.load %arg6[%c8_128, %c0_129, %c0_130] : memref<9x4x4xbf16, #tpu.memory_space<vmem>>, vector<1x4x4xbf16>
      %129 = vector.shape_cast %128 : vector<1x4x4xbf16> to vector<4x4xbf16>
      %cst_131 = arith.constant dense<0.000000e+00> : vector<64x4xf32>
      %130 = tpu.matmul %127, %129, %cst_131 {dimension_numbers = #tpu.dot_dimension_numbers<[1], [0], [0], [1], [0, 0, 1, 1], [], []>} : vector<64x4xbf16>, vector<4x4xbf16>, vector<64x4xf32> -> vector<64x4xf32>
      %131 = arith.addf %124, %130 : vector<64x4xf32>
      %c0_132 = arith.constant 0 : index
      %c0_133 = arith.constant 0 : index
      %132 = vector.load %arg7[%c0_132, %c0_133] : memref<1x4xf32, #tpu.memory_space<vmem>>, vector<1x4xf32>
      %133 = vector.broadcast %132 : vector<1x4xf32> to vector<64x4xf32>
      %134 = arith.mulf %131, %133 : vector<64x4xf32>
      %c0_134 = arith.constant 0 : index
      %c0_135 = arith.constant 0 : index
      %135 = vector.load %arg8[%c0_134, %c0_135] : memref<1x4xf32, #tpu.memory_space<vmem>>, vector<1x4xf32>
      %136 = vector.broadcast %135 : vector<1x4xf32> to vector<64x4xf32>
      %137 = arith.addf %134, %136 : vector<64x4xf32>
      %cst_136 = arith.constant 0.000000e+00 : f32
      %138 = vector.broadcast %cst_136 : f32 to vector<64x4xf32>
      %139 = arith.maximumf %137, %138 : vector<64x4xf32>
      %c0_137 = arith.constant 0 : index
      %c0_138 = arith.constant 0 : index
      %c0_139 = arith.constant 0 : index
      %140 = vector.load %arg15[%c0_137, %c0_138, %c0_139] : memref<1x64x4xf32, #tpu.memory_space<vmem>>, vector<1x64x4xf32>
      %141 = vector.shape_cast %140 : vector<1x64x4xf32> to vector<64x4xf32>
      %142 = vector.shape_cast %139 : vector<64x4xf32> to vector<1x64x4xf32>
      tpu.vector_store %arg15[%c0_137, %c0_138, %c0_139], %142 {strides = array<i32>} : memref<1x64x4xf32, #tpu.memory_space<vmem>>, vector<1x64x4xf32>,
      tpu.yield
    }) : () -> ()
    "tpu.region"() ({
      %alloca = memref.alloca() : memref<10x17x8xbf16, #tpu.memory_space<vmem>>
      %c0 = arith.constant 0 : index
      %c0_0 = arith.constant 0 : index
      %c0_1 = arith.constant 0 : index
      %c0_2 = arith.constant 0 : index
      %0 = vector.load %arg2[%c0, %c0_0, %c0_1, %c0_2] : memref<1x8x8x8xf32, #tpu.memory_space<vmem>>, vector<1x8x8x8xf32>
      %1 = vector.shape_cast %0 : vector<1x8x8x8xf32> to vector<8x8x8xf32>
      %2 = vector.shape_cast %1 : vector<8x8x8xf32> to vector<64x8xf32>
      %3 = arith.truncf %2 : vector<64x8xf32> to vector<64x8xbf16>
      %c0_3 = arith.constant 0 : index
      %c0_4 = arith.constant 0 : index
      %4 = vector.load %arg9[%c0_3, %c0_4] : memref<8x8xbf16, #tpu.memory_space<vmem>>, vector<8x8xbf16>
      %cst = arith.constant dense<0.000000e+00> : vector<64x8xf32>
      %5 = tpu.matmul %3, %4, %cst {dimension_numbers = #tpu.dot_dimension_numbers<[1], [0], [0], [1], [0, 0, 1, 1], [], []>} : vector<64x8xbf16>, vector<8x8xbf16>, vector<64x8xf32> -> vector<64x8xf32>
      %c0_5 = arith.constant 0 : index
      %c0_6 = arith.constant 0 : index
      %6 = vector.load %arg10[%c0_5, %c0_6] : memref<1x8xf32, #tpu.memory_space<vmem>>, vector<1x8xf32>
      %7 = vector.broadcast %6 : vector<1x8xf32> to vector<64x8xf32>
      %8 = arith.mulf %5, %7 : vector<64x8xf32>
      %c0_7 = arith.constant 0 : index
      %c0_8 = arith.constant 0 : index
      %9 = vector.load %arg11[%c0_7, %c0_8] : memref<1x8xf32, #tpu.memory_space<vmem>>, vector<1x8xf32>
      %10 = vector.broadcast %9 : vector<1x8xf32> to vector<64x8xf32>
      %11 = arith.addf %8, %10 : vector<64x8xf32>
      %cst_9 = arith.constant 0.000000e+00 : f32
      %12 = vector.broadcast %cst_9 : f32 to vector<64x8xf32>
      %13 = arith.maximumf %11, %12 : vector<64x8xf32>
      %14 = arith.truncf %13 : vector<64x8xf32> to vector<64x8xbf16>
      %15 = vector.shape_cast %14 : vector<64x8xbf16> to vector<8x8x8xbf16>
      %c1 = arith.constant 1 : index
      %c8 = arith.constant 8 : index
      %c0_10 = arith.constant 0 : index
      %16 = vector.load %alloca[%c1, %c8, %c0_10] : memref<10x17x8xbf16, #tpu.memory_space<vmem>>, vector<8x8x8xbf16>
      tpu.vector_store %alloca[%c1, %c8, %c0_10], %15 {strides = array<i32>} : memref<10x17x8xbf16, #tpu.memory_space<vmem>>, vector<8x8x8xbf16>,
      %cst_11 = arith.constant 0.000000e+00 : bf16
      %17 = vector.broadcast %cst_11 : bf16 to vector<1x10x8xbf16>
      %c0_12 = arith.constant 0 : index
      %c7 = arith.constant 7 : index
      %c0_13 = arith.constant 0 : index
      %18 = vector.load %alloca[%c0_12, %c7, %c0_13] : memref<10x17x8xbf16, #tpu.memory_space<vmem>>, vector<1x10x8xbf16>
      tpu.vector_store %alloca[%c0_12, %c7, %c0_13], %17 {strides = array<i32>} : memref<10x17x8xbf16, #tpu.memory_space<vmem>>, vector<1x10x8xbf16>,
      %cst_14 = arith.constant 0.000000e+00 : bf16
      %19 = vector.broadcast %cst_14 : bf16 to vector<1x10x8xbf16>
      %c9 = arith.constant 9 : index
      %c7_15 = arith.constant 7 : index
      %c0_16 = arith.constant 0 : index
      %20 = vector.load %alloca[%c9, %c7_15, %c0_16] : memref<10x17x8xbf16, #tpu.memory_space<vmem>>, vector<1x10x8xbf16>
      tpu.vector_store %alloca[%c9, %c7_15, %c0_16], %19 {strides = array<i32>} : memref<10x17x8xbf16, #tpu.memory_space<vmem>>, vector<1x10x8xbf16>,
      %cst_17 = arith.constant 0.000000e+00 : bf16
      %21 = vector.broadcast %cst_17 : bf16 to vector<8x1x8xbf16>
      %c1_18 = arith.constant 1 : index
      %c7_19 = arith.constant 7 : index
      %c0_20 = arith.constant 0 : index
      %22 = vector.load %alloca[%c1_18, %c7_19, %c0_20] : memref<10x17x8xbf16, #tpu.memory_space<vmem>>, vector<8x1x8xbf16>
      tpu.vector_store %alloca[%c1_18, %c7_19, %c0_20], %21 {strides = array<i32>} : memref<10x17x8xbf16, #tpu.memory_space<vmem>>, vector<8x1x8xbf16>,
      %cst_21 = arith.constant 0.000000e+00 : bf16
      %23 = vector.broadcast %cst_21 : bf16 to vector<8x1x8xbf16>
      %c1_22 = arith.constant 1 : index
      %c16 = arith.constant 16 : index
      %c0_23 = arith.constant 0 : index
      %24 = vector.load %alloca[%c1_22, %c16, %c0_23] : memref<10x17x8xbf16, #tpu.memory_space<vmem>>, vector<8x1x8xbf16>
      tpu.vector_store %alloca[%c1_22, %c16, %c0_23], %23 {strides = array<i32>} : memref<10x17x8xbf16, #tpu.memory_space<vmem>>, vector<8x1x8xbf16>,
      %cst_24 = arith.constant 0.000000e+00 : f32
      %25 = vector.broadcast %cst_24 : f32 to vector<64x4xf32>
      %c0_25 = arith.constant 0 : index
      %c7_26 = arith.constant 7 : index
      %c0_27 = arith.constant 0 : index
      %26 = vector.load %alloca[%c0_25, %c7_26, %c0_27] : memref<10x17x8xbf16, #tpu.memory_space<vmem>>, vector<8x8x8xbf16>
      %27 = vector.shape_cast %26 : vector<8x8x8xbf16> to vector<64x8xbf16>
      %c0_28 = arith.constant 0 : index
      %c0_29 = arith.constant 0 : index
      %c0_30 = arith.constant 0 : index
      %28 = vector.load %arg12[%c0_28, %c0_29, %c0_30] : memref<9x8x4xbf16, #tpu.memory_space<vmem>>, vector<1x8x4xbf16>
      %29 = vector.shape_cast %28 : vector<1x8x4xbf16> to vector<8x4xbf16>
      %cst_31 = arith.constant dense<0.000000e+00> : vector<64x4xf32>
      %30 = tpu.matmul %27, %29, %cst_31 {dimension_numbers = #tpu.dot_dimension_numbers<[1], [0], [0], [1], [0, 0, 1, 1], [], []>} : vector<64x8xbf16>, vector<8x4xbf16>, vector<64x4xf32> -> vector<64x4xf32>
      %31 = arith.addf %25, %30 : vector<64x4xf32>
      %c0_32 = arith.constant 0 : index
      %c8_33 = arith.constant 8 : index
      %c0_34 = arith.constant 0 : index
      %32 = vector.load %alloca[%c0_32, %c8_33, %c0_34] : memref<10x17x8xbf16, #tpu.memory_space<vmem>>, vector<8x8x8xbf16>
      %33 = vector.shape_cast %32 : vector<8x8x8xbf16> to vector<64x8xbf16>
      %c1_35 = arith.constant 1 : index
      %c0_36 = arith.constant 0 : index
      %c0_37 = arith.constant 0 : index
      %34 = vector.load %arg12[%c1_35, %c0_36, %c0_37] : memref<9x8x4xbf16, #tpu.memory_space<vmem>>, vector<1x8x4xbf16>
      %35 = vector.shape_cast %34 : vector<1x8x4xbf16> to vector<8x4xbf16>
      %cst_38 = arith.constant dense<0.000000e+00> : vector<64x4xf32>
      %36 = tpu.matmul %33, %35, %cst_38 {dimension_numbers = #tpu.dot_dimension_numbers<[1], [0], [0], [1], [0, 0, 1, 1], [], []>} : vector<64x8xbf16>, vector<8x4xbf16>, vector<64x4xf32> -> vector<64x4xf32>
      %37 = arith.addf %31, %36 : vector<64x4xf32>
      %c0_39 = arith.constant 0 : index
      %c9_40 = arith.constant 9 : index
      %c0_41 = arith.constant 0 : index
      %38 = vector.load %alloca[%c0_39, %c9_40, %c0_41] : memref<10x17x8xbf16, #tpu.memory_space<vmem>>, vector<8x8x8xbf16>
      %39 = vector.shape_cast %38 : vector<8x8x8xbf16> to vector<64x8xbf16>
      %c2 = arith.constant 2 : index
      %c0_42 = arith.constant 0 : index
      %c0_43 = arith.constant 0 : index
      %40 = vector.load %arg12[%c2, %c0_42, %c0_43] : memref<9x8x4xbf16, #tpu.memory_space<vmem>>, vector<1x8x4xbf16>
      %41 = vector.shape_cast %40 : vector<1x8x4xbf16> to vector<8x4xbf16>
      %cst_44 = arith.constant dense<0.000000e+00> : vector<64x4xf32>
      %42 = tpu.matmul %39, %41, %cst_44 {dimension_numbers = #tpu.dot_dimension_numbers<[1], [0], [0], [1], [0, 0, 1, 1], [], []>} : vector<64x8xbf16>, vector<8x4xbf16>, vector<64x4xf32> -> vector<64x4xf32>
      %43 = arith.addf %37, %42 : vector<64x4xf32>
      %c1_45 = arith.constant 1 : index
      %c7_46 = arith.constant 7 : index
      %c0_47 = arith.constant 0 : index
      %44 = vector.load %alloca[%c1_45, %c7_46, %c0_47] : memref<10x17x8xbf16, #tpu.memory_space<vmem>>, vector<8x8x8xbf16>
      %45 = vector.shape_cast %44 : vector<8x8x8xbf16> to vector<64x8xbf16>
      %c3 = arith.constant 3 : index
      %c0_48 = arith.constant 0 : index
      %c0_49 = arith.constant 0 : index
      %46 = vector.load %arg12[%c3, %c0_48, %c0_49] : memref<9x8x4xbf16, #tpu.memory_space<vmem>>, vector<1x8x4xbf16>
      %47 = vector.shape_cast %46 : vector<1x8x4xbf16> to vector<8x4xbf16>
      %cst_50 = arith.constant dense<0.000000e+00> : vector<64x4xf32>
      %48 = tpu.matmul %45, %47, %cst_50 {dimension_numbers = #tpu.dot_dimension_numbers<[1], [0], [0], [1], [0, 0, 1, 1], [], []>} : vector<64x8xbf16>, vector<8x4xbf16>, vector<64x4xf32> -> vector<64x4xf32>
      %49 = arith.addf %43, %48 : vector<64x4xf32>
      %c1_51 = arith.constant 1 : index
      %c8_52 = arith.constant 8 : index
      %c0_53 = arith.constant 0 : index
      %50 = vector.load %alloca[%c1_51, %c8_52, %c0_53] : memref<10x17x8xbf16, #tpu.memory_space<vmem>>, vector<8x8x8xbf16>
      %51 = vector.shape_cast %50 : vector<8x8x8xbf16> to vector<64x8xbf16>
      %c4 = arith.constant 4 : index
      %c0_54 = arith.constant 0 : index
      %c0_55 = arith.constant 0 : index
      %52 = vector.load %arg12[%c4, %c0_54, %c0_55] : memref<9x8x4xbf16, #tpu.memory_space<vmem>>, vector<1x8x4xbf16>
      %53 = vector.shape_cast %52 : vector<1x8x4xbf16> to vector<8x4xbf16>
      %cst_56 = arith.constant dense<0.000000e+00> : vector<64x4xf32>
      %54 = tpu.matmul %51, %53, %cst_56 {dimension_numbers = #tpu.dot_dimension_numbers<[1], [0], [0], [1], [0, 0, 1, 1], [], []>} : vector<64x8xbf16>, vector<8x4xbf16>, vector<64x4xf32> -> vector<64x4xf32>
      %55 = arith.addf %49, %54 : vector<64x4xf32>
      %c1_57 = arith.constant 1 : index
      %c9_58 = arith.constant 9 : index
      %c0_59 = arith.constant 0 : index
      %56 = vector.load %alloca[%c1_57, %c9_58, %c0_59] : memref<10x17x8xbf16, #tpu.memory_space<vmem>>, vector<8x8x8xbf16>
      %57 = vector.shape_cast %56 : vector<8x8x8xbf16> to vector<64x8xbf16>
      %c5 = arith.constant 5 : index
      %c0_60 = arith.constant 0 : index
      %c0_61 = arith.constant 0 : index
      %58 = vector.load %arg12[%c5, %c0_60, %c0_61] : memref<9x8x4xbf16, #tpu.memory_space<vmem>>, vector<1x8x4xbf16>
      %59 = vector.shape_cast %58 : vector<1x8x4xbf16> to vector<8x4xbf16>
      %cst_62 = arith.constant dense<0.000000e+00> : vector<64x4xf32>
      %60 = tpu.matmul %57, %59, %cst_62 {dimension_numbers = #tpu.dot_dimension_numbers<[1], [0], [0], [1], [0, 0, 1, 1], [], []>} : vector<64x8xbf16>, vector<8x4xbf16>, vector<64x4xf32> -> vector<64x4xf32>
      %61 = arith.addf %55, %60 : vector<64x4xf32>
      %c2_63 = arith.constant 2 : index
      %c7_64 = arith.constant 7 : index
      %c0_65 = arith.constant 0 : index
      %62 = vector.load %alloca[%c2_63, %c7_64, %c0_65] : memref<10x17x8xbf16, #tpu.memory_space<vmem>>, vector<8x8x8xbf16>
      %63 = vector.shape_cast %62 : vector<8x8x8xbf16> to vector<64x8xbf16>
      %c6 = arith.constant 6 : index
      %c0_66 = arith.constant 0 : index
      %c0_67 = arith.constant 0 : index
      %64 = vector.load %arg12[%c6, %c0_66, %c0_67] : memref<9x8x4xbf16, #tpu.memory_space<vmem>>, vector<1x8x4xbf16>
      %65 = vector.shape_cast %64 : vector<1x8x4xbf16> to vector<8x4xbf16>
      %cst_68 = arith.constant dense<0.000000e+00> : vector<64x4xf32>
      %66 = tpu.matmul %63, %65, %cst_68 {dimension_numbers = #tpu.dot_dimension_numbers<[1], [0], [0], [1], [0, 0, 1, 1], [], []>} : vector<64x8xbf16>, vector<8x4xbf16>, vector<64x4xf32> -> vector<64x4xf32>
      %67 = arith.addf %61, %66 : vector<64x4xf32>
      %c2_69 = arith.constant 2 : index
      %c8_70 = arith.constant 8 : index
      %c0_71 = arith.constant 0 : index
      %68 = vector.load %alloca[%c2_69, %c8_70, %c0_71] : memref<10x17x8xbf16, #tpu.memory_space<vmem>>, vector<8x8x8xbf16>
      %69 = vector.shape_cast %68 : vector<8x8x8xbf16> to vector<64x8xbf16>
      %c7_72 = arith.constant 7 : index
      %c0_73 = arith.constant 0 : index
      %c0_74 = arith.constant 0 : index
      %70 = vector.load %arg12[%c7_72, %c0_73, %c0_74] : memref<9x8x4xbf16, #tpu.memory_space<vmem>>, vector<1x8x4xbf16>
      %71 = vector.shape_cast %70 : vector<1x8x4xbf16> to vector<8x4xbf16>
      %cst_75 = arith.constant dense<0.000000e+00> : vector<64x4xf32>
      %72 = tpu.matmul %69, %71, %cst_75 {dimension_numbers = #tpu.dot_dimension_numbers<[1], [0], [0], [1], [0, 0, 1, 1], [], []>} : vector<64x8xbf16>, vector<8x4xbf16>, vector<64x4xf32> -> vector<64x4xf32>
      %73 = arith.addf %67, %72 : vector<64x4xf32>
      %c2_76 = arith.constant 2 : index
      %c9_77 = arith.constant 9 : index
      %c0_78 = arith.constant 0 : index
      %74 = vector.load %alloca[%c2_76, %c9_77, %c0_78] : memref<10x17x8xbf16, #tpu.memory_space<vmem>>, vector<8x8x8xbf16>
      %75 = vector.shape_cast %74 : vector<8x8x8xbf16> to vector<64x8xbf16>
      %c8_79 = arith.constant 8 : index
      %c0_80 = arith.constant 0 : index
      %c0_81 = arith.constant 0 : index
      %76 = vector.load %arg12[%c8_79, %c0_80, %c0_81] : memref<9x8x4xbf16, #tpu.memory_space<vmem>>, vector<1x8x4xbf16>
      %77 = vector.shape_cast %76 : vector<1x8x4xbf16> to vector<8x4xbf16>
      %cst_82 = arith.constant dense<0.000000e+00> : vector<64x4xf32>
      %78 = tpu.matmul %75, %77, %cst_82 {dimension_numbers = #tpu.dot_dimension_numbers<[1], [0], [0], [1], [0, 0, 1, 1], [], []>} : vector<64x8xbf16>, vector<8x4xbf16>, vector<64x4xf32> -> vector<64x4xf32>
      %79 = arith.addf %73, %78 : vector<64x4xf32>
      %c0_83 = arith.constant 0 : index
      %c0_84 = arith.constant 0 : index
      %80 = vector.load %arg13[%c0_83, %c0_84] : memref<1x4xf32, #tpu.memory_space<vmem>>, vector<1x4xf32>
      %81 = vector.broadcast %80 : vector<1x4xf32> to vector<64x4xf32>
      %82 = arith.mulf %79, %81 : vector<64x4xf32>
      %c0_85 = arith.constant 0 : index
      %c0_86 = arith.constant 0 : index
      %83 = vector.load %arg14[%c0_85, %c0_86] : memref<1x4xf32, #tpu.memory_space<vmem>>, vector<1x4xf32>
      %84 = vector.broadcast %83 : vector<1x4xf32> to vector<64x4xf32>
      %85 = arith.addf %82, %84 : vector<64x4xf32>
      %cst_87 = arith.constant 0.000000e+00 : f32
      %86 = vector.broadcast %cst_87 : f32 to vector<64x4xf32>
      %87 = arith.maximumf %85, %86 : vector<64x4xf32>
      %c0_88 = arith.constant 0 : index
      %c0_89 = arith.constant 0 : index
      %c0_90 = arith.constant 0 : index
      %88 = vector.load %arg16[%c0_88, %c0_89, %c0_90] : memref<1x64x4xf32, #tpu.memory_space<vmem>>, vector<1x64x4xf32>
      %89 = vector.shape_cast %88 : vector<1x64x4xf32> to vector<64x4xf32>
      %90 = vector.shape_cast %87 : vector<64x4xf32> to vector<1x64x4xf32>
      tpu.vector_store %arg16[%c0_88, %c0_89, %c0_90], %90 {strides = array<i32>} : memref<1x64x4xf32, #tpu.memory_space<vmem>>, vector<1x64x4xf32>,
      tpu.yield
    }) : () -> ()
    return
  }
  func.func @transform_0(%arg0: i32) -> (i32, i32, i32, i32, i32) {
    %c0_i32 = arith.constant 0 : i32
    %c0_i32_0 = arith.constant 0 : i32
    %c0_i32_1 = arith.constant 0 : i32
    %c0_i32_2 = arith.constant 0 : i32
    %c0_i32_3 = arith.constant 0 : i32
    return %arg0, %c0_i32, %c0_i32_0, %c0_i32_1, %c0_i32_2 : i32, i32, i32, i32, i32
  }
  func.func @transform_1(%arg0: i32) -> (i32, i32, i32, i32) {
    %c0_i32 = arith.constant 0 : i32
    %c0_i32_0 = arith.constant 0 : i32
    %c0_i32_1 = arith.constant 0 : i32
    %c0_i32_2 = arith.constant 0 : i32
    return %arg0, %c0_i32, %c0_i32_0, %c0_i32_1 : i32, i32, i32, i32
  }
  func.func @transform_2(%arg0: i32) -> (i32, i32) {
    %c0_i32 = arith.constant 0 : i32
    %c0_i32_0 = arith.constant 0 : i32
    %c0_i32_1 = arith.constant 0 : i32
    return %c0_i32, %c0_i32_0 : i32, i32
  }
  func.func @transform_3(%arg0: i32) -> (i32, i32) {
    %c0_i32 = arith.constant 0 : i32
    %c0_i32_0 = arith.constant 0 : i32
    %c0_i32_1 = arith.constant 0 : i32
    return %c0_i32, %c0_i32_0 : i32, i32
  }
  func.func @transform_4(%arg0: i32) -> (i32, i32) {
    %c0_i32 = arith.constant 0 : i32
    %c0_i32_0 = arith.constant 0 : i32
    %c0_i32_1 = arith.constant 0 : i32
    return %c0_i32, %c0_i32_0 : i32, i32
  }
  func.func @transform_5(%arg0: i32) -> (i32, i32, i32) {
    %c0_i32 = arith.constant 0 : i32
    %c0_i32_0 = arith.constant 0 : i32
    %c0_i32_1 = arith.constant 0 : i32
    %c0_i32_2 = arith.constant 0 : i32
    return %c0_i32, %c0_i32_0, %c0_i32_1 : i32, i32, i32
  }
  func.func @transform_6(%arg0: i32) -> (i32, i32) {
    %c0_i32 = arith.constant 0 : i32
    %c0_i32_0 = arith.constant 0 : i32
    %c0_i32_1 = arith.constant 0 : i32
    return %c0_i32, %c0_i32_0 : i32, i32
  }
  func.func @transform_7(%arg0: i32) -> (i32, i32) {
    %c0_i32 = arith.constant 0 : i32
    %c0_i32_0 = arith.constant 0 : i32
    %c0_i32_1 = arith.constant 0 : i32
    return %c0_i32, %c0_i32_0 : i32, i32
  }
  func.func @transform_8(%arg0: i32) -> (i32, i32) {
    %c0_i32 = arith.constant 0 : i32
    %c0_i32_0 = arith.constant 0 : i32
    %c0_i32_1 = arith.constant 0 : i32
    return %c0_i32, %c0_i32_0 : i32, i32
  }
  func.func @transform_9(%arg0: i32) -> (i32, i32) {
    %c0_i32 = arith.constant 0 : i32
    %c0_i32_0 = arith.constant 0 : i32
    %c0_i32_1 = arith.constant 0 : i32
    return %c0_i32, %c0_i32_0 : i32, i32
  }
  func.func @transform_10(%arg0: i32) -> (i32, i32) {
    %c0_i32 = arith.constant 0 : i32
    %c0_i32_0 = arith.constant 0 : i32
    %c0_i32_1 = arith.constant 0 : i32
    return %c0_i32, %c0_i32_0 : i32, i32
  }
  func.func @transform_11(%arg0: i32) -> (i32, i32, i32) {
    %c0_i32 = arith.constant 0 : i32
    %c0_i32_0 = arith.constant 0 : i32
    %c0_i32_1 = arith.constant 0 : i32
    %c0_i32_2 = arith.constant 0 : i32
    return %c0_i32, %c0_i32_0, %c0_i32_1 : i32, i32, i32
  }
  func.func @transform_12(%arg0: i32) -> (i32, i32) {
    %c0_i32 = arith.constant 0 : i32
    %c0_i32_0 = arith.constant 0 : i32
    %c0_i32_1 = arith.constant 0 : i32
    return %c0_i32, %c0_i32_0 : i32, i32
  }
  func.func @transform_13(%arg0: i32) -> (i32, i32) {
    %c0_i32 = arith.constant 0 : i32
    %c0_i32_0 = arith.constant 0 : i32
    %c0_i32_1 = arith.constant 0 : i32
    return %c0_i32, %c0_i32_0 : i32, i32
  }
  func.func @transform_14(%arg0: i32) -> (i32, i32, i32) {
    %c0_i32 = arith.constant 0 : i32
    %c0_i32_0 = arith.constant 0 : i32
    %c0_i32_1 = arith.constant 0 : i32
    return %arg0, %c0_i32, %c0_i32_0 : i32, i32, i32
  }
  func.func @transform_15(%arg0: i32) -> (i32, i32, i32) {
    %c0_i32 = arith.constant 0 : i32
    %c0_i32_0 = arith.constant 0 : i32
    %c0_i32_1 = arith.constant 0 : i32
    return %arg0, %c0_i32, %c0_i32_0 : i32, i32, i32
  }
}

</mosaic_0001>

<bundles_post_ra>
// kernel: conv_down_normal_forward.1
= control target key start
LH: loop header
LB: loop body
LE: loop exit
PB: predicated region body
PF: predicated region fallthrough
CT: control target
= control target key end

     0   :  { %s5803_s18 = smov 0   ;;  %s6678_s0 = inlined_call_operand.vmem [shape: f32[2,4,8,8,4], index: 0, kind: input, shape index: {}]   ;;  %s6679_s1 = inlined_call_operand.vmem [shape: f32[2,8,8,8], index: 1, kind: input, shape index: {}]   ;;  %s6680_s2 = inlined_call_operand.vmem [shape: bf16[4,4], index: 2, kind: input, shape index: {}]   ;;  %s6681_s3 = inlined_call_operand.vmem [shape: f32[1,4], index: 3, kind: input, shape index: {}]   ;;  %s6682_s4 = inlined_call_operand.vmem [shape: f32[1,4], index: 4, kind: input, shape index: {}]   ;;  %s6683_s5 = inlined_call_operand.vmem [shape: bf16[9,4,4], index: 5, kind: input, shape index: {}]   ;;  %s6684_s6 = inlined_call_operand.vmem [shape: f32[1,4], index: 6, kind: input, shape index: {}]   ;;  %s6685_s7 = inlined_call_operand.vmem [shape: f32[1,4], index: 7, kind: input, shape index: {}]   ;;  %s6686_s8 = inlined_call_operand.vmem [shape: bf16[8,8], index: 8, kind: input, shape index: {}]   ;;  %s6687_s9 = inlined_call_operand.vmem [shape: f32[1,8], index: 9, kind: input, shape index: {}]   ;;  %s6688_s10 = inlined_call_operand.vmem [shape: f32[1,8], index: 10, kind: input, shape index: {}]   ;;  %s6689_s11 = inlined_call_operand.vmem [shape: bf16[9,8,4], index: 11, kind: input, shape index: {}]   ;;  %s6690_s12 = inlined_call_operand.vmem [shape: f32[1,4], index: 12, kind: input, shape index: {}]   ;;  %s6691_s13 = inlined_call_operand.vmem [shape: f32[1,4], index: 13, kind: input, shape index: {}]   ;;  %s6692_s14 = inlined_call_operand.vmem [shape: f32[2,64,4], index: 14, kind: output, shape index: {0}]   ;;  %s6693_s15 = inlined_call_operand.vmem [shape: f32[2,64,4], index: 15, kind: output, shape index: {1}]  }
   0x1   :  { %6695 = sst [smem:[#allocation5_spill]] %s6691_s13 }
   0x2 LB: > { %6696 = sst [smem:[#allocation4_spill]] %s5720_s18  ;;  %s4751_s19 = sadd.s32 4294967295, %s5720_s18   ;;  %s5720_s18 = sphi %s5803_s18, %s26_s18  }
   0x3   : > { %p4755_p0 = scmp.ge.s32.totalorder %s5720_s18, 1  ;;  %p450_p1 = scmp.lt.s32.totalorder %s5720_s18, 3 }
   0x5   : > { %p451_p2 = pnand %p4755_p0, %p450_p1 }
   0x6   : > { %p508_p3 = scmp.lt.s32.totalorder (!%p451_p2), %s4751_s19, 1 }
   0x7   : > { %454 = sbr.rel (%p451_p2) target bundleno = 1228 (0x4cc), region = 76 }
   0xe   : > { %s6712_s19 = smov (!%p508_p3, %s4751_s19), 1 }
   0xf   : > { %s5090_s20 = sshll.u32 %s6712_s19, 8  ;;  %s5091_s21 = sshll.u32 %s6712_s19, 6 }
  0x10   : > { %s5814_s24 = scalar_lea.vmem %s6678_s0, %s5090_s20  ;;  %s5819_s27 = scalar_lea.vmem %s6679_s1, %s5091_s21 }
  0x11   : > { %s5824_s30 = scalar_lea.vmem %s6692_s14, %s5091_s21  ;;  %s5829_s18 = scalar_lea.vmem %s6693_s15, %s5091_s21 }
  0x12   : > { %v577_v0 = vld [vmem:[%s6680_s2] sm:$0x3]  ;;  %vm627_vm0 = vcmask 1041408   ;;  %v542_v2 = vld [vmem:[%s5814_s24 + $0x68] sm:$0xff]  ;;  %vm578_vm1 = vcmask 31744   ;;  %v543_v5 = vld [vmem:[%s5814_s24 + $0x70] sm:$0xff] }
  0x13   : > { %v541_v1 = vld [vmem:[%s5814_s24 + $0x60] sm:$0xff]  ;;  %5601 = vmatprep.subr.msk.bf16.mxu1 %vm627_vm0, %v577_v0  ;;  %v629_v3 = vsel %vm627_vm0, %v577_v0, 0  ;;  %v544_v6 = vld [vmem:[%s5814_s24 + $0x78] sm:$0xff]  ;;  %5600 = vmatprep.subr.msk.bf16.mxu0 %vm627_vm0, %v577_v0  ;;  %v546_v9 = vld [vmem:[%s5814_s24 + $0x88] sm:$0xff]  ;;  %vm993_vm2 = vsmask.f32 7950 }
  0x14   : > { %v567_v4 = vpack.c.bf16 %v542_v2, %v541_v1  ;;  %v545_v7 = vld [vmem:[%s5814_s24 + $0x80] sm:$0xff]  ;;  %5471 = vmatpush3.bf16.msra.mxu1 %v629_v3  ;;  %v568_v8 = vpack.c.bf16 %v544_v6, %v543_v5  ;;  %5247 = vmatpush3.bf16.msra.mxu0 %v629_v3  ;;  %v547_v11 = vld [vmem:[%s5814_s24 + $0x90] sm:$0xff]  ;;  %v548_v12 = vld [vmem:[%s5814_s24 + $0x98] sm:$0xff]  ;;  %vm998_vm3 = vcmask 27651   ;;  %vm992_vm5 = vcmask 31747  }
  0x15   : > { %v569_v10 = vpack.c.bf16 %v546_v9, %v545_v7  ;;  %v549_v13 = vld [vmem:[%s5814_s24 + $0xa0] sm:$0xff]  ;;  %v550_v14 = vld [vmem:[%s5814_s24 + $0xa8] sm:$0xff]  ;;  %v531_v17 = vld [vmem:[%s5814_s24 + $0x10] sm:$0xff]  ;;  %v570_v22 = vpack.c.bf16 %v548_v12, %v547_v11  ;;  %vm983_vm7 = vcmask 31748   ;;  %vm1231_vm8 = vsmask.f32 256 }
  0x16   : > { %5260 = vmatprep.mubr.msk.bf16.mxu1 %vm578_vm1, %v567_v4  ;;  %v529_v15 = vld [vmem:[%s5814_s24] sm:$0xff]  ;;  %v530_v16 = vld [vmem:[%s5814_s24 + $0x8] sm:$0xff]  ;;  %v532_v19 = vld [vmem:[%s5814_s24 + $0x18] sm:$0xff]  ;;  %v571_v25 = vpack.c.bf16 %v550_v14, %v549_v13  ;;  %vm1232_vm9 = vsmask.f32 4368 }
  0x17   : > { %5261 = vmatmul.mubr.msk.bf16.vlgmr.msra.gmra.mrb[0].mxu1 %vm578_vm1, %v568_v8  ;;  %v561_v18 = vpack.c.bf16 %v530_v16, %v529_v15  ;;  %v533_v20 = vld [vmem:[%s5814_s24 + $0x20] sm:$0xff]  ;;  %v534_v21 = vld [vmem:[%s5814_s24 + $0x28] sm:$0xff]  ;;  %v562_v23 = vpack.c.bf16 %v532_v19, %v531_v17  ;;  %v535_v27 = vld [vmem:[%s5814_s24 + $0x30] sm:$0xff] }
  0x18   : > { %5264 = vmatprep.mubr.msk.bf16.mxu1 %vm578_vm1, %v569_v10  ;;  %v563_v24 = vpack.c.bf16 %v534_v21, %v533_v20  ;;  %v4838_v26 = vld [vmem:[%s6683_s5 + $0x2] sm:$0x3]  ;;  %v536_v28 = vld [vmem:[%s5814_s24 + $0x38] sm:$0xff]  ;;  %v538_v31 = vld [vmem:[%s5814_s24 + $0x48] sm:$0xff] }
  0x19   : > { %5248 = vmatprep.mubr.msk.bf16.mxu0 %vm578_vm1, %v561_v18  ;;  %5602 = vmatprep.subr.msk.bf16.mxu1 %vm627_vm0, %v4838_v26  ;;  %v1382_v29 = vsel %vm627_vm0, %v4838_v26, 0  ;;  %v537_v30 = vld [vmem:[%s5814_s24 + $0x40] sm:$0xff]  ;;  %v551_v32 = vld [vmem:[%s5814_s24 + $0xb0] sm:$0xff]  ;;  %v552_v33 = vld [vmem:[%s5814_s24 + $0xb8] sm:$0xff]  ;;  %v564_v36 = vpack.c.bf16 %v536_v28, %v535_v27 }
  0x1a   : > { %5249 = vmatmul.mubr.msk.bf16.vlgmr.msra.gmra.mrb[0].mxu0 %vm578_vm1, %v562_v23  ;;  %5281 = vmatpush3.bf16.msra.mxu1 %v1382_v29  ;;  %v553_v34 = vld [vmem:[%s5814_s24 + $0xc0] sm:$0xff]  ;;  %v554_v35 = vld [vmem:[%s5814_s24 + $0xc8] sm:$0xff]  ;;  %v565_v37 = vpack.c.bf16 %v538_v31, %v537_v30  ;;  %v572_v38 = vpack.c.bf16 %v552_v33, %v551_v32  ;;  %v539_v40 = vld [vmem:[%s5814_s24 + $0x50] sm:$0xff] }
  0x1b   : > { %5252 = vmatprep.mubr.msk.bf16.mxu0 %vm578_vm1, %v563_v24  ;;  %v573_v39 = vpack.c.bf16 %v554_v35, %v553_v34  ;;  %v540_v41 = vld [vmem:[%s5814_s24 + $0x58] sm:$0xff]  ;;  %v555_v42 = vld [vmem:[%s5814_s24 + $0xd0] sm:$0xff]  ;;  %v557_v44 = vld [vmem:[%s5814_s24 + $0xe0] sm:$0xff] }
  0x1c   : > { %v556_v43 = vld [vmem:[%s5814_s24 + $0xd8] sm:$0xff]  ;;  %v558_v45 = vld [vmem:[%s5814_s24 + $0xe8] sm:$0xff]  ;;  %v566_v46 = vpack.c.bf16 %v540_v41, %v539_v40  ;;  %v559_v49 = vld [vmem:[%s5814_s24 + $0xf0] sm:$0xff] }
  0x1d   : > { %v574_v47 = vpack.c.bf16 %v556_v43, %v555_v42  ;;  %v575_v48 = vpack.c.bf16 %v558_v45, %v557_v44  ;;  %v560_v50 = vld [vmem:[%s5814_s24 + $0xf8] sm:$0xff]  ;;  %vm5891_vm4 = vmand %vm998_vm3, %vm993_vm2  ;;  %v1065_v53 = vld [vmem:[#allocation2 + $0x70] sm:$0x8] }
  0x1e   : > { %v576_v51 = vpack.c.bf16 %v560_v50, %v559_v49  ;;  %v1066_v54 = vsel %vm5891_vm4, 0, %v1065_v53  ;;  %v1068_v55 = vld [vmem:[#allocation2 + $0x78] sm:$0x8]  ;;  %vm5900_vm6 = vmand %vm992_vm5, %vm993_vm2  ;;  %v1103_v58 = vld [vmem:[#allocation2 + $0x90] sm:$0xf8] }
  0x1f   : > { %5265 = vmatmul.mubr.msk.bf16.gmra.mrb[4].mxu1 %vm578_vm1, %v570_v22  ;;  %1067 = vst [vmem:[#allocation2 + $0x70] sm:$0x8] %v1066_v54  ;;  %v1069_v56 = vsel %vm5891_vm4, 0, %v1068_v55  ;;  %v1104_v59 = vsel %vm5900_vm6, 0, %v1103_v58  ;;  %v1165_v60 = vld [vmem:[#allocation2 + $0xf0] sm:$0x8]  ;;  %vm6111_vm10 = vmor %vm1231_vm8, %vm1232_vm9 }
  0x20   : > { %5268 = vmatprep.mubr.msk.bf16.mxu1 %vm578_vm1, %v571_v25  ;;  %1070 = vst [vmem:[#allocation2 + $0x78] sm:$0x8] %v1069_v56  ;;  %1105 = vst [vmem:[#allocation2 + $0x90] sm:$0xf8] %v1104_v59  ;;  %v1156_v61 = vld [vmem:[#allocation2 + $0xd8] sm:$0xf8] }
  0x21   : > { %v1159_v62 = vld [vmem:[#allocation2 + $0xe0] sm:$0x8]  ;;  %v1166_v63 = vsel %vm5891_vm4, 0, %v1165_v60  ;;  %v1157_v0 = vsel %vm5900_vm6, 0, %v1156_v61  ;;  %v1162_v2 = vld [vmem:[#allocation2 + $0xe8] sm:$0x8] }
  0x22   : > { %5253 = vmatmul.mubr.msk.bf16.gmra.mrb[4].mxu0 %vm578_vm1, %v564_v36  ;;  %v1160_v1 = vsel %vm5891_vm4, 0, %v1159_v62  ;;  %1167 = vst [vmem:[#allocation2 + $0xf0] sm:$0x8] %v1166_v63  ;;  %1158 = vst [vmem:[#allocation2 + $0xd8] sm:$0xf8] %v1157_v0  ;;  %v1163_v4 = vsel %vm5891_vm4, 0, %v1162_v2 }
  0x23   : > { %5256 = vmatprep.mubr.msk.bf16.mxu0 %vm578_vm1, %v565_v37  ;;  %1161 = vst [vmem:[#allocation2 + $0xe0] sm:$0x8] %v1160_v1  ;;  %v1168_v3 = vld [vmem:[#allocation2 + $0xf8] sm:$0x8]  ;;  %v995_v6 = vld [vmem:[#allocation2] sm:$0xf8] }
  0x24   : > { %v1169_v5 = vsel %vm5891_vm4, 0, %v1168_v3  ;;  %v1000_v7 = vld [vmem:[#allocation2 + $0x8] sm:$0x8]  ;;  %v1003_v8 = vld [vmem:[#allocation2 + $0x10] sm:$0x8]  ;;  %v996_v9 = vsel %vm5900_vm6, 0, %v995_v6 }
  0x25   : > { %1164 = vst [vmem:[#allocation2 + $0xe8] sm:$0x8] %v1163_v4  ;;  %1170 = vst [vmem:[#allocation2 + $0xf8] sm:$0x8] %v1169_v5  ;;  %v1001_v10 = vsel %vm5891_vm4, 0, %v1000_v7  ;;  %v1004_v11 = vsel %vm5891_vm4, 0, %v1003_v8 }
  0x26   : > { %v1006_v12 = vld [vmem:[#allocation2 + $0x18] sm:$0x8]  ;;  %997 = vst [vmem:[#allocation2] sm:$0xf8] %v996_v9  ;;  %1002 = vst [vmem:[#allocation2 + $0x8] sm:$0x8] %v1001_v10 }
  0x27   : > { %5269 = vmatmul.mubr.msk.bf16.gmra.mrb[8].mxu1 %vm578_vm1, %v572_v38  ;;  %1005 = vst [vmem:[#allocation2 + $0x10] sm:$0x8] %v1004_v11  ;;  %v1007_v13 = vsel %vm5891_vm4, 0, %v1006_v12  ;;  %v1009_v14 = vld [vmem:[#allocation2 + $0x20] sm:$0x8] }
  0x28   : > { %5272 = vmatprep.mubr.msk.bf16.mxu1 %vm578_vm1, %v573_v39  ;;  %v1012_v15 = vld [vmem:[#allocation2 + $0x28] sm:$0x8]  ;;  %1008 = vst [vmem:[#allocation2 + $0x18] sm:$0x8] %v1007_v13  ;;  %v1010_v16 = vsel %vm5891_vm4, 0, %v1009_v14 }
  0x29   : > { %v1013_v17 = vsel %vm5891_vm4, 0, %v1012_v15  ;;  %v1015_v18 = vld [vmem:[#allocation2 + $0x30] sm:$0x8]  ;;  %v1018_v19 = vld [vmem:[#allocation2 + $0x38] sm:$0x8] }
  0x2a   : > { %5257 = vmatmul.mubr.msk.bf16.gmra.mrb[8].mxu0 %vm578_vm1, %v566_v46  ;;  %1011 = vst [vmem:[#allocation2 + $0x20] sm:$0x8] %v1010_v16  ;;  %1014 = vst [vmem:[#allocation2 + $0x28] sm:$0x8] %v1013_v17  ;;  %v1016_v20 = vsel %vm5891_vm4, 0, %v1015_v18  ;;  %v1019_v21 = vsel %vm5891_vm4, 0, %v1018_v19 }
  0x2b   : > { %v1021_v22 = vld [vmem:[#allocation2 + $0x40] sm:$0x8]  ;;  %v1050_v23 = vld [vmem:[#allocation2 + $0x48] sm:$0xf8]  ;;  %1017 = vst [vmem:[#allocation2 + $0x30] sm:$0x8] %v1016_v20 }
  0x2c   : > { %1020 = vst [vmem:[#allocation2 + $0x38] sm:$0x8] %v1019_v21  ;;  %v1022_v24 = vsel %vm5891_vm4, 0, %v1021_v22  ;;  %v1051_v25 = vsel %vm5900_vm6, 0, %v1050_v23  ;;  %v1106_v26 = vld [vmem:[#allocation2 + $0x98] sm:$0x8] }
  0x2d   : > { %v1109_v27 = vld [vmem:[#allocation2 + $0xa0] sm:$0x8]  ;;  %1023 = vst [vmem:[#allocation2 + $0x40] sm:$0x8] %v1022_v24  ;;  %1052 = vst [vmem:[#allocation2 + $0x48] sm:$0xf8] %v1051_v25 }
  0x2e   : > { %v1107_v28 = vsel %vm5891_vm4, 0, %v1106_v26  ;;  %v1110_v29 = vsel %vm5891_vm4, 0, %v1109_v27  ;;  %v1112_v30 = vld [vmem:[#allocation2 + $0xa8] sm:$0x8]  ;;  %v1115_v31 = vld [vmem:[#allocation2 + $0xb0] sm:$0x8] }
  0x2f   : > { %5273 = vmatmul.mubr.msk.bf16.gmra.mrb[12].mxu1 %vm578_vm1, %v574_v47  ;;  %1108 = vst [vmem:[#allocation2 + $0x98] sm:$0x8] %v1107_v28  ;;  %1111 = vst [vmem:[#allocation2 + $0xa0] sm:$0x8] %v1110_v29  ;;  %v1113_v32 = vsel %vm5891_vm4, 0, %v1112_v30  ;;  %v1116_v33 = vsel %vm5891_vm4, 0, %v1115_v31 }
  0x30   : > { %5276 = vmatprep.mubr.msk.bf16.mxu1 %vm578_vm1, %v575_v48  ;;  %v1118_v34 = vld [vmem:[#allocation2 + $0xb8] sm:$0x8]  ;;  %v1121_v35 = vld [vmem:[#allocation2 + $0xc0] sm:$0x8]  ;;  %1114 = vst [vmem:[#allocation2 + $0xa8] sm:$0x8] %v1113_v32 }
  0x31   : > { %1117 = vst [vmem:[#allocation2 + $0xb0] sm:$0x8] %v1116_v33  ;;  %v1119_v36 = vsel %vm5891_vm4, 0, %v1118_v34  ;;  %v1122_v37 = vsel %vm5891_vm4, 0, %v1121_v35  ;;  %v1124_v38 = vld [vmem:[#allocation2 + $0xc8] sm:$0x8] }
  0x32   : > { %v1127_v39 = vld [vmem:[#allocation2 + $0xd0] sm:$0x8]  ;;  %1120 = vst [vmem:[#allocation2 + $0xb8] sm:$0x8] %v1119_v36  ;;  %1123 = vst [vmem:[#allocation2 + $0xc0] sm:$0x8] %v1122_v37 }
  0x33   : > { %v1125_v40 = vsel %vm5891_vm4, 0, %v1124_v38  ;;  %v1128_v41 = vsel %vm5891_vm4, 0, %v1127_v39  ;;  %v1338_v42 = vld [vmem:[%s6683_s5] sm:$0x3]  ;;  %v1171_v43 = vld [vmem:[#allocation2 + $0x100] sm:$0x8] }
  0x34   : > { %1126 = vst [vmem:[#allocation2 + $0xc8] sm:$0x8] %v1125_v40  ;;  %1129 = vst [vmem:[#allocation2 + $0xd0] sm:$0x8] %v1128_v41  ;;  %5603 = vmatprep.subr.msk.bf16.mxu1 %vm627_vm0, %v1338_v42  ;;  %v1174_v44 = vld [vmem:[#allocation2 + $0x108] sm:$0x8] }
  0x35   : > { %v1172_v45 = vsel %vm5891_vm4, 0, %v1171_v43  ;;  %v1175_v46 = vsel %vm5891_vm4, 0, %v1174_v44  ;;  %v1177_v47 = vld [vmem:[#allocation2 + $0x110] sm:$0x8]  ;;  %v1071_v49 = vld [vmem:[#allocation2 + $0x80] sm:$0x8] }
  0x36   : > { %1173 = vst [vmem:[#allocation2 + $0x100] sm:$0x8] %v1172_v45  ;;  %1176 = vst [vmem:[#allocation2 + $0x108] sm:$0x8] %v1175_v46  ;;  %v1178_v48 = vsel %vm5891_vm4, 0, %v1177_v47  ;;  %v1072_v50 = vsel %vm5891_vm4, 0, %v1071_v49 }
  0x37   : > { %5277 = vmatmul.mubr.msk.bf16.gmra.mrb[16].mxu1 %vm578_vm1, %v576_v51  ;;  %1179 = vst [vmem:[#allocation2 + $0x110] sm:$0x8] %v1178_v48  ;;  %1073 = vst [vmem:[#allocation2 + $0x80] sm:$0x8] %v1072_v50  ;;  %v1074_v51 = vld [vmem:[#allocation2 + $0x88] sm:$0x8] }
  0x38   : > { %v1075_v53 = vsel %vm5891_vm4, 0, %v1074_v51  ;;  %v1053_v54 = vld [vmem:[#allocation2 + $0x50] sm:$0x8]  ;;  %v1056_v55 = vld [vmem:[#allocation2 + $0x58] sm:$0x8]  ;;  %v5997_v17 = vsel %vm627_vm0, %v1338_v42, 0 }
  0x39   : > { %1076 = vst [vmem:[#allocation2 + $0x88] sm:$0x8] %v1075_v53  ;;  %v1059_v56 = vld [vmem:[#allocation2 + $0x60] sm:$0x8]  ;;  %v1054_v57 = vsel %vm5891_vm4, 0, %v1053_v54  ;;  %v1057_v58 = vsel %vm5891_vm4, 0, %v1056_v55 }
  0x3a   : > { %v1060_v59 = vsel %vm5891_vm4, 0, %v1059_v56  ;;  %1055 = vst [vmem:[#allocation2 + $0x50] sm:$0x8] %v1054_v57  ;;  %1058 = vst [vmem:[#allocation2 + $0x58] sm:$0x8] %v1057_v58 }
  0x3b   : > { %1061 = vst [vmem:[#allocation2 + $0x60] sm:$0x8] %v1060_v59  ;;  %v1062_v60 = vld [vmem:[#allocation2 + $0x68] sm:$0x8]  ;;  %v1180_v62 = vld [vmem:[#allocation2 + $0x118] sm:$0x8] }
  0x3c   : > { %v1063_v61 = vsel %vm5891_vm4, 0, %v1062_v60  ;;  %v1181_v63 = vsel %vm5891_vm4, 0, %v1180_v62  ;;  %v5979_v0 = vld [vmem:[%s6681_s3] ss:$0 sm:$0xff]  ;;  %v5993_v13 = vld [vmem:[#allocation2 + $0xd8] sm:$0xf8] }
  0x3d   : > { %1064 = vst [vmem:[#allocation2 + $0x68] sm:$0x8] %v1063_v61  ;;  %1182 = vst [vmem:[#allocation2 + $0x118] sm:$0x8] %v1181_v63  ;;  %v5984_v2 = vld [vmem:[%s6682_s4] ss:$0 sm:$0xff]  ;;  %v4814_v22 = vcombine.low %v5993_v13, %v5993_v13  ;;  %v6005_v28 = vcombine.high %v5993_v13, %v5993_v13 }
  0xea   : > { %v5262_v1 = vpop.f32.mrb[0].mxu1 }
  0xeb   : > { %v813_v3 = vmul.f32 %v5262_v1, %v5979_v0  ;;  %v713_v4 = vpop.f32.mrb[1].mxu1 }
  0xec   : > { %v811_v5 = vmul.f32 %v5979_v0, %v713_v4  ;;  %v5263_v6 = vpop.f32.mrb[2].mxu1 }
  0xed   : > { %v852_v52 = vadd.f32 %v5984_v2, %v813_v3  ;;  %v814_v7 = vmul.f32 %v5263_v6, %v5979_v0  ;;  %v716_v8 = vpop.f32.mrb[3].mxu1  ;;  %v5250_v16 = vpop.f32.mrb[0].mxu0 }
  0xee   : > { %v850_v9 = vadd.f32 %v5984_v2, %v811_v5  ;;  %v812_v10 = vmul.f32 %v5979_v0, %v716_v8  ;;  %v801_v20 = vmul.f32 %v5250_v16, %v5979_v0  ;;  %v665_v21 = vpop.f32.mrb[1].mxu0 }
  0xef   : > { %v884_v11 = vmax.f32 %v852_v52, 0.0  ;;  %v853_v12 = vadd.f32 %v5984_v2, %v814_v7  ;;  %v799_v26 = vmul.f32 %v5979_v0, %v665_v21  ;;  %v5251_v27 = vpop.f32.mrb[2].mxu0 }
  0xf0   : > { %v882_v14 = vmax.f32 %v850_v9, 0.0  ;;  %v851_v15 = vadd.f32 %v5984_v2, %v812_v10  ;;  %v840_v32 = vadd.f32 %v5984_v2, %v801_v20  ;;  %v802_v33 = vmul.f32 %v5251_v27, %v5979_v0  ;;  %v668_v34 = vpop.f32.mrb[3].mxu0 }
  0xf1   : > { %v5108_v18 = vpack.c.bf16 %v884_v11, %v884_v11  ;;  %v885_v19 = vmax.f32 %v853_v12, 0.0  ;;  %v838_v38 = vadd.f32 %v5984_v2, %v799_v26  ;;  %v800_v39 = vmul.f32 %v5979_v0, %v668_v34 }
  0xf2   : > { %v5106_v23 = vpack.c.bf16 %v882_v14, %v882_v14  ;;  %v883_v24 = vmax.f32 %v851_v15, 0.0  ;;  %v5266_v25 = vpop.f32.mrb[4].mxu1  ;;  %v872_v43 = vmax.f32 %v840_v32, 0.0  ;;  %v841_v44 = vadd.f32 %v5984_v2, %v802_v33 }
  0xf3   : > { %1047 = vst.msk [vmem:[#allocation2 + $0x80] sm:$0xf0] %vm983_vm7, %v5108_v18  ;;  %v5109_v29 = vpack.c.bf16 %v885_v19, %v885_v19  ;;  %v817_v30 = vmul.f32 %v5266_v25, %v5979_v0  ;;  %v729_v31 = vpop.f32.mrb[5].mxu1  ;;  %v870_v47 = vmax.f32 %v838_v38, 0.0  ;;  %v839_v48 = vadd.f32 %v5984_v2, %v800_v39 }
  0xf4   : > { %1045 = vst.msk [vmem:[#allocation2 + $0x70] sm:$0xf0] %vm983_vm7, %v5106_v23  ;;  %v5107_v35 = vpack.c.bf16 %v883_v24, %v883_v24  ;;  %v815_v36 = vmul.f32 %v5979_v0, %v729_v31  ;;  %v5267_v37 = vpop.f32.mrb[6].mxu1  ;;  %v5096_v51 = vpack.c.bf16 %v872_v43, %v872_v43  ;;  %v873_v53 = vmax.f32 %v841_v44, 0.0 }
  0xf5   : > { %1048 = vst.msk [vmem:[#allocation2 + $0x88] sm:$0xf0] %vm983_vm7, %v5109_v29  ;;  %v856_v40 = vadd.f32 %v5984_v2, %v817_v30  ;;  %v818_v41 = vmul.f32 %v5267_v37, %v5979_v0  ;;  %v732_v42 = vpop.f32.mrb[7].mxu1  ;;  %v5094_v56 = vpack.c.bf16 %v870_v47, %v870_v47  ;;  %v871_v57 = vmax.f32 %v839_v48, 0.0  ;;  %v5254_v58 = vpop.f32.mrb[4].mxu0 }
  0xf6   : > { %1046 = vst.msk [vmem:[#allocation2 + $0x78] sm:$0xf0] %vm983_vm7, %v5107_v35  ;;  %v854_v45 = vadd.f32 %v5984_v2, %v815_v36  ;;  %v816_v46 = vmul.f32 %v5979_v0, %v732_v42  ;;  %986 = vst.msk [vmem:[#allocation2 + $0x18] sm:$0xf0] %vm983_vm7, %v5096_v51  ;;  %v5097_v61 = vpack.c.bf16 %v873_v53, %v873_v53  ;;  %v681_v63 = vpop.f32.mrb[5].mxu0 }
  0xf7   : > { %v888_v49 = vmax.f32 %v856_v40, 0.0  ;;  %v857_v50 = vadd.f32 %v5984_v2, %v818_v41  ;;  %v805_v62 = vmul.f32 %v5254_v58, %v5979_v0  ;;  %984 = vst.msk [vmem:[#allocation2 + $0x8] sm:$0xf0] %vm983_vm7, %v5094_v56  ;;  %v5095_v5 = vpack.c.bf16 %v871_v57, %v871_v57  ;;  %v5255_v52 = vpop.f32.mrb[6].mxu0 }
  0xf8   : > { %v886_v54 = vmax.f32 %v854_v45, 0.0  ;;  %v855_v55 = vadd.f32 %v5984_v2, %v816_v46  ;;  %v803_v6 = vmul.f32 %v5979_v0, %v681_v63  ;;  %987 = vst.msk [vmem:[#allocation2 + $0x20] sm:$0xf0] %vm983_vm7, %v5097_v61  ;;  %v806_v11 = vmul.f32 %v5255_v52, %v5979_v0  ;;  %v684_v12 = vpop.f32.mrb[7].mxu0 }
  0xf9   : > { %v5112_v59 = vpack.c.bf16 %v888_v49, %v888_v49  ;;  %v889_v60 = vmax.f32 %v857_v50, 0.0  ;;  %v844_v10 = vadd.f32 %v5984_v2, %v805_v62  ;;  %985 = vst.msk [vmem:[#allocation2 + $0x10] sm:$0xf0] %vm983_vm7, %v5095_v5  ;;  %v804_v19 = vmul.f32 %v5979_v0, %v684_v12 }
  0xfa   : > { %v5110_v1 = vpack.c.bf16 %v886_v54, %v886_v54  ;;  %v887_v3 = vmax.f32 %v855_v55, 0.0  ;;  %v5270_v4 = vpop.f32.mrb[8].mxu1  ;;  %v842_v18 = vadd.f32 %v5984_v2, %v803_v6  ;;  %v845_v25 = vadd.f32 %v5984_v2, %v806_v11  ;;  %v6075_v11 = vld [vmem:[%s6683_s5 + $0x4] sm:$0x3] }
  0xfb   : > { %1096 = vst.msk [vmem:[#allocation2 + $0xa8] sm:$0xf0] %vm983_vm7, %v5112_v59  ;;  %v5113_v7 = vpack.c.bf16 %v889_v60, %v889_v60  ;;  %v821_v8 = vmul.f32 %v5270_v4, %v5979_v0  ;;  %v745_v9 = vpop.f32.mrb[9].mxu1  ;;  %v876_v24 = vmax.f32 %v844_v10, 0.0  ;;  %v843_v30 = vadd.f32 %v5984_v2, %v804_v19 }
  0xfc   : > { %1094 = vst.msk [vmem:[#allocation2 + $0x98] sm:$0xf0] %vm983_vm7, %v5110_v1  ;;  %v5111_v14 = vpack.c.bf16 %v887_v3, %v887_v3  ;;  %v819_v15 = vmul.f32 %v5979_v0, %v745_v9  ;;  %v5271_v16 = vpop.f32.mrb[10].mxu1  ;;  %v874_v29 = vmax.f32 %v842_v18, 0.0  ;;  %v877_v34 = vmax.f32 %v845_v25, 0.0 }
  0xfd   : > { %1097 = vst.msk [vmem:[#allocation2 + $0xb0] sm:$0xf0] %vm983_vm7, %v5113_v7  ;;  %v860_v20 = vadd.f32 %v5984_v2, %v821_v8  ;;  %v822_v21 = vmul.f32 %v5271_v16, %v5979_v0  ;;  %v748_v23 = vpop.f32.mrb[11].mxu1  ;;  %v5100_v33 = vpack.c.bf16 %v876_v24, %v876_v24  ;;  %v875_v38 = vmax.f32 %v843_v30, 0.0  ;;  %v5258_v39 = vpop.f32.mrb[8].mxu0 }
  0xfe   : > { %1095 = vst.msk [vmem:[#allocation2 + $0xa0] sm:$0xf0] %vm983_vm7, %v5111_v14  ;;  %v858_v26 = vadd.f32 %v5984_v2, %v819_v15  ;;  %v820_v27 = vmul.f32 %v5979_v0, %v748_v23  ;;  %v5098_v37 = vpack.c.bf16 %v874_v29, %v874_v29  ;;  %v5101_v42 = vpack.c.bf16 %v877_v34, %v877_v34  ;;  %v697_v44 = vpop.f32.mrb[9].mxu0 }
  0xff   : > { %v892_v31 = vmax.f32 %v860_v20, 0.0  ;;  %v861_v32 = vadd.f32 %v5984_v2, %v822_v21  ;;  %990 = vst.msk [vmem:[#allocation2 + $0x38] sm:$0xf0] %vm983_vm7, %v5100_v33  ;;  %v809_v43 = vmul.f32 %v5258_v39, %v5979_v0  ;;  %v5099_v48 = vpack.c.bf16 %v875_v38, %v875_v38  ;;  %v5259_v50 = vpop.f32.mrb[10].mxu0 }
 0x100   : > { %v890_v35 = vmax.f32 %v858_v26, 0.0  ;;  %v859_v36 = vadd.f32 %v5984_v2, %v820_v27  ;;  %988 = vst.msk [vmem:[#allocation2 + $0x28] sm:$0xf0] %vm983_vm7, %v5098_v37  ;;  %v807_v49 = vmul.f32 %v5979_v0, %v697_v44  ;;  %991 = vst.msk [vmem:[#allocation2 + $0x40] sm:$0xf0] %vm983_vm7, %v5101_v42  ;;  %v810_v57 = vmul.f32 %v5259_v50, %v5979_v0  ;;  %v700_v58 = vpop.f32.mrb[11].mxu0 }
 0x101   : > { %v5116_v40 = vpack.c.bf16 %v892_v31, %v892_v31  ;;  %v893_v41 = vmax.f32 %v861_v32, 0.0  ;;  %v848_v56 = vadd.f32 %v5984_v2, %v809_v43  ;;  %989 = vst.msk [vmem:[#allocation2 + $0x30] sm:$0xf0] %vm983_vm7, %v5099_v48  ;;  %v808_v63 = vmul.f32 %v5979_v0, %v700_v58 }
 0x102   : > { %v5114_v45 = vpack.c.bf16 %v890_v35, %v890_v35  ;;  %v891_v46 = vmax.f32 %v859_v36, 0.0  ;;  %v5274_v47 = vpop.f32.mrb[12].mxu1  ;;  %v846_v62 = vadd.f32 %v5984_v2, %v807_v49  ;;  %v849_v52 = vadd.f32 %v5984_v2, %v810_v57 }
 0x103   : > { %1100 = vst.msk [vmem:[#allocation2 + $0xc8] sm:$0xf0] %vm983_vm7, %v5116_v40  ;;  %v5117_v51 = vpack.c.bf16 %v893_v41, %v893_v41  ;;  %v825_v53 = vmul.f32 %v5274_v47, %v5979_v0  ;;  %v761_v54 = vpop.f32.mrb[13].mxu1  ;;  %v5630_v55 = vld [vmem:[#allocation2 + $0x94] ss:$8 sps:$4 sm:$0xff]   ;;  %v880_v6 = vmax.f32 %v848_v56, 0.0  ;;  %v847_v10 = vadd.f32 %v5984_v2, %v808_v63 }
 0x104   : > { %1098 = vst.msk [vmem:[#allocation2 + $0xb8] sm:$0xf0] %vm983_vm7, %v5114_v45  ;;  %v5115_v59 = vpack.c.bf16 %v891_v46, %v891_v46  ;;  %v823_v60 = vmul.f32 %v5979_v0, %v761_v54  ;;  %v5275_v61 = vpop.f32.mrb[14].mxu1  ;;  %5282 = vmatprep.mubr.msk.bf16.mxu1 %vm578_vm1, %v5630_v55  ;;  %v878_v9 = vmax.f32 %v846_v62, 0.0  ;;  %v881_v16 = vmax.f32 %v849_v52, 0.0 }
 0x105   : > { %1101 = vst.msk [vmem:[#allocation2 + $0xd0] sm:$0xf0] %vm983_vm7, %v5117_v51  ;;  %v864_v1 = vadd.f32 %v5984_v2, %v825_v53  ;;  %v826_v3 = vmul.f32 %v5275_v61, %v5979_v0  ;;  %v764_v4 = vpop.f32.mrb[15].mxu1  ;;  %v5631_v5 = vld [vmem:[#allocation2 + $0xa4] ss:$8 sps:$4 sm:$0xff]   ;;  %v5104_v15 = vpack.c.bf16 %v880_v6, %v880_v6  ;;  %v879_v21 = vmax.f32 %v847_v10, 0.0 }
 0x106   : > { %1099 = vst.msk [vmem:[#allocation2 + $0xc0] sm:$0xf0] %vm983_vm7, %v5115_v59  ;;  %v862_v7 = vadd.f32 %v5984_v2, %v823_v60  ;;  %v824_v8 = vmul.f32 %v5979_v0, %v764_v4  ;;  %5283 = vmatmul.mubr.msk.bf16.vlgmr.msra.gmra.mrb[20].mxu1 %vm578_vm1, %v5631_v5  ;;  %v5102_v20 = vpack.c.bf16 %v878_v9, %v878_v9  ;;  %v1240_v26 = vshrl.u32 %v6005_v28, 16 }
 0x107   : > { %v896_v12 = vmax.f32 %v864_v1, 0.0  ;;  %v865_v14 = vadd.f32 %v5984_v2, %v826_v3  ;;  %5291 = vmatpush3.bf16.msra.mxu1 %v5997_v17  ;;  %1043 = vst.msk [vmem:[#allocation2 + $0x60] sm:$0xf0] %vm983_vm7, %v5104_v15  ;;  %v5105_v25 = vpack.c.bf16 %v881_v16, %v881_v16  ;;  %v5103_v31 = vpack.c.bf16 %v879_v21, %v879_v21 }
 0x108   : > { %v894_v18 = vmax.f32 %v862_v7, 0.0  ;;  %v863_v19 = vadd.f32 %v5984_v2, %v824_v8  ;;  %5604 = vmatprep.subr.msk.bf16.mxu1 %vm627_vm0, %v6075_v11  ;;  %1041 = vst.msk [vmem:[#allocation2 + $0x50] sm:$0xf0] %vm983_vm7, %v5102_v20  ;;  %v1235_v42 = vshrl.u32 %v4814_v22, 16  ;;  %v1242_v45 = vrot.slane %v1240_v26, 7 }
 0x109   : > { %v5120_v23 = vpack.c.bf16 %v896_v12, %v896_v12  ;;  %v897_v24 = vmax.f32 %v865_v14, 0.0  ;;  %1044 = vst.msk [vmem:[#allocation2 + $0x68] sm:$0xf0] %vm983_vm7, %v5105_v25  ;;  %1042 = vst.msk [vmem:[#allocation2 + $0x58] sm:$0xf0] %vm983_vm7, %v5103_v31  ;;  %v1243_v46 = vshll.u32 %v6005_v28, 16 }
 0x10a   : > { %v5118_v27 = vpack.c.bf16 %v894_v18, %v894_v18  ;;  %v895_v29 = vmax.f32 %v863_v19, 0.0  ;;  %v5278_v30 = vpop.f32.mrb[16].mxu1  ;;  %v4830_v54 = vrot.slane %v1235_v42, 11  ;;  %v1584_v9 = vsel %vm627_vm0, %v6075_v11, 0 }
 0x10b   : > { %1149 = vst.msk [vmem:[#allocation2 + $0xf0] sm:$0xf0] %vm983_vm7, %v5120_v23  ;;  %v5121_v17 = vpack.c.bf16 %v897_v24, %v897_v24  ;;  %v829_v32 = vmul.f32 %v5278_v30, %v5979_v0  ;;  %v777_v33 = vpop.f32.mrb[17].mxu1  ;;  %v5632_v34 = vld [vmem:[#allocation2 + $0xb4] ss:$8 sps:$4 sm:$0xff]   ;;  %v1245_v55 = vor.u32 %v1243_v46, %v1242_v45 }
 0x10c   : > { %1147 = vst.msk [vmem:[#allocation2 + $0xe0] sm:$0xf0] %vm983_vm7, %v5118_v27  ;;  %v5119_v35 = vpack.c.bf16 %v895_v29, %v895_v29  ;;  %v827_v36 = vmul.f32 %v5979_v0, %v777_v33  ;;  %v5279_v37 = vpop.f32.mrb[18].mxu1  ;;  %5286 = vmatprep.mubr.msk.bf16.mxu1 %vm578_vm1, %v5632_v34 }
 0x10d   : > { %1150 = vst.msk [vmem:[#allocation2 + $0xf8] sm:$0xf0] %vm983_vm7, %v5121_v17  ;;  %v868_v38 = vadd.f32 %v5984_v2, %v829_v32  ;;  %v830_v39 = vmul.f32 %v5279_v37, %v5979_v0  ;;  %v780_v40 = vpop.f32.mrb[19].mxu1  ;;  %v5633_v41 = vld [vmem:[#allocation2 + $0xc4] ss:$8 sps:$4 sm:$0xff]   ;;  %v1246_v4 = vsel %vm6111_vm10, %v4830_v54, %v1245_v55 }
 0x10e   : > { %1148 = vst.msk [vmem:[#allocation2 + $0xe8] sm:$0xf0] %vm983_vm7, %v5119_v35  ;;  %v866_v43 = vadd.f32 %v5984_v2, %v827_v36  ;;  %v828_v44 = vmul.f32 %v5979_v0, %v780_v40  ;;  %5287 = vmatmul.mubr.msk.bf16.gmra.mrb[24].mxu1 %vm578_vm1, %v5633_v41 }
 0x10f   : > { %v900_v47 = vmax.f32 %v868_v38, 0.0  ;;  %v869_v48 = vadd.f32 %v5984_v2, %v830_v39 }
 0x110   : > { %v898_v49 = vmax.f32 %v866_v43, 0.0  ;;  %v867_v50 = vadd.f32 %v5984_v2, %v828_v44 }
 0x111   : > { %v5124_v13 = vpack.c.bf16 %v900_v47, %v900_v47  ;;  %v901_v22 = vmax.f32 %v869_v48, 0.0  ;;  %v1659_v48 = vld [vmem:[#allocation2 + $0x50] sm:$0xf8] }
 0x112   : > { %v5122_v51 = vpack.c.bf16 %v898_v49, %v898_v49  ;;  %v899_v53 = vmax.f32 %v867_v50, 0.0  ;;  %v1186_v0 = vld [vmem:[#allocation2 + $0xf0] sm:$0xf8] }
 0x113   : > { %1153 = vst.msk [vmem:[#allocation2 + $0x110] sm:$0xf0] %vm983_vm7, %v5124_v13  ;;  %v5125_v28 = vpack.c.bf16 %v901_v22, %v901_v22  ;;  %v1184_v56 = vld [vmem:[#allocation2 + $0xe0] sm:$0xf8]  ;;  %v4820_v57 = vcombine.low %v1186_v0, %v1186_v0  ;;  %v4821_v58 = vcombine.high %v1186_v0, %v1186_v0  ;;  %v1660_v0 = vld [vmem:[#allocation2 + $0x58] sm:$0xf8] }
 0x114   : > { %1151 = vst.msk [vmem:[#allocation2 + $0x100] sm:$0xf0] %vm983_vm7, %v5122_v51  ;;  %v5123_v59 = vpack.c.bf16 %v899_v53, %v899_v53  ;;  %v4816_v60 = vcombine.low %v1184_v56, %v1184_v56  ;;  %v4817_v2 = vcombine.high %v1184_v56, %v1184_v56  ;;  %v1187_v61 = vld [vmem:[#allocation2 + $0xf8] sm:$0xf8]  ;;  %v4888_v51 = vld [vmem:[%s6683_s5 + $0x6] sm:$0x3] }
 0x115   : > { %1154 = vst.msk [vmem:[#allocation2 + $0x118] sm:$0xf0] %vm983_vm7, %v5125_v28  ;;  %v1185_v63 = vld [vmem:[#allocation2 + $0xe8] sm:$0xf8]  ;;  %v1274_v1 = vshrl.u32 %v4820_v57, 16  ;;  %v1279_v3 = vshrl.u32 %v4821_v58, 16  ;;  %v4823_v10 = vcombine.high %v1187_v61, %v1187_v61  ;;  %v4822_v20 = vcombine.low %v1187_v61, %v1187_v61 }
 0x116   : > { %1152 = vst.msk [vmem:[#allocation2 + $0x108] sm:$0xf0] %vm983_vm7, %v5123_v59  ;;  %v1248_v5 = vshrl.u32 %v4816_v60, 16  ;;  %v1253_v6 = vshrl.u32 %v4817_v2, 16  ;;  %v4818_v52 = vcombine.low %v1185_v63, %v1185_v63  ;;  %v4819_v7 = vcombine.high %v1185_v63, %v1185_v63 }
 0x117   : > { %v1281_v8 = vrot.slane %v1279_v3, 7  ;;  %v1256_v14 = vshll.u32 %v4817_v2, 16  ;;  %v1282_v16 = vshll.u32 %v4821_v58, 16  ;;  %v4833_v19 = vrot.slane %v1274_v1, 11 }
 0x118   : > { %v1255_v12 = vrot.slane %v1253_v6, 7  ;;  %v1261_v15 = vshrl.u32 %v4818_v52, 16  ;;  %v1266_v18 = vshrl.u32 %v4819_v7, 16  ;;  %v1292_v21 = vshrl.u32 %v4823_v10, 16 }
 0x119   : > { %v4831_v23 = vrot.slane %v1248_v5, 11  ;;  %v1269_v26 = vshll.u32 %v4819_v7, 16  ;;  %v1284_v30 = vor.u32 %v1282_v16, %v1281_v8  ;;  %v1295_v37 = vshll.u32 %v4823_v10, 16 }
 0x11a   : > { %v1258_v24 = vor.u32 %v1256_v14, %v1255_v12  ;;  %v4832_v25 = vrot.slane %v1261_v15, 11  ;;  %v1190_v27 = vld [vmem:[#allocation2 + $0x110] sm:$0xf8]  ;;  %v1268_v29 = vrot.slane %v1266_v18, 7  ;;  %v1294_v17 = vrot.slane %v1292_v21, 7 }
 0x11b   : > { %v1188_v31 = vld [vmem:[#allocation2 + $0x100] sm:$0xf8]  ;;  %v4828_v34 = vcombine.low %v1190_v27, %v1190_v27  ;;  %v4829_v39 = vcombine.high %v1190_v27, %v1190_v27  ;;  %v1287_v40 = vshrl.u32 %v4822_v20, 16  ;;  %v1285_v45 = vsel %vm6111_vm10, %v4833_v19, %v1284_v30  ;;  %v1662_v20 = vld [vmem:[#allocation2 + $0x68] sm:$0xf8] }
 0x11c   : > { %v1259_v11 = vsel %vm6111_vm10, %v4831_v23, %v1258_v24  ;;  %v4824_v32 = vcombine.low %v1188_v31, %v1188_v31  ;;  %v4825_v33 = vcombine.high %v1188_v31, %v1188_v31  ;;  %v1271_v36 = vor.u32 %v1269_v26, %v1268_v29  ;;  %v5650_v18 = vld [vmem:[#allocation2 + $0xdc] ss:$8 sps:$4 sm:$0xff]   ;;  %v1663_v21 = vld [vmem:[#allocation2 + $0x70] sm:$0xf8] }
 0x11d   : > { %v4847_v35 = vcombine.low %v1246_v4, %v1259_v11  ;;  %v1189_v38 = vld [vmem:[#allocation2 + $0x108] sm:$0xf8]  ;;  %v1297_v46 = vor.u32 %v1295_v37, %v1294_v17  ;;  %v1326_v22 = vshrl.u32 %v4828_v34, 16  ;;  %v1331_v55 = vshrl.u32 %v4829_v39, 16  ;;  %v1661_v19 = vld [vmem:[#allocation2 + $0x60] sm:$0xf8] }
 0x11e   : > { %v1300_v41 = vshrl.u32 %v4824_v32, 16  ;;  %v1305_v42 = vshrl.u32 %v4825_v33, 16  ;;  %v4826_v43 = vcombine.low %v1189_v38, %v1189_v38  ;;  %v1272_v44 = vsel %vm6111_vm10, %v4832_v25, %v1271_v36  ;;  %v1664_v27 = vld [vmem:[#allocation2 + $0x78] sm:$0xf8]  ;;  %v5651_v36 = vld [vmem:[#allocation2 + $0xec] ss:$8 sps:$4 sm:$0xff]  }
 0x11f   : > { %5292 = vmatprep.mubr.msk.bf16.mxu1 %vm578_vm1, %v4847_v35  ;;  %v4827_v47 = vcombine.high %v1189_v38, %v1189_v38  ;;  %v4848_v49 = vcombine.low %v1272_v44, %v1285_v45  ;;  %v1308_v13 = vshll.u32 %v4825_v33, 16  ;;  %v4834_v28 = vrot.slane %v1287_v40, 11 }
 0x120   : > { %v1307_v50 = vrot.slane %v1305_v42, 7  ;;  %v1313_v53 = vshrl.u32 %v4826_v43, 16  ;;  %v4835_v56 = vrot.slane %v1300_v41, 11  ;;  %v4865_v58 = vcombine.high %v1659_v48, %v1659_v48  ;;  %v5652_v41 = vld [vmem:[#allocation2 + $0xfc] ss:$8 sps:$4 sm:$0xff]  }
 0x121   : > { %v1318_v54 = vshrl.u32 %v4827_v47, 16  ;;  %5293 = vmatmul.mubr.msk.bf16.vlgmr.msra.gmra.mrb[20].mxu1 %vm578_vm1, %v4848_v49  ;;  %v1321_v60 = vshll.u32 %v4827_v47, 16  ;;  %v1333_v2 = vrot.slane %v1331_v55, 7  ;;  %v1334_v61 = vshll.u32 %v4829_v39, 16  ;;  %v4897_v42 = vld [vmem:[%s6683_s5 + $0x8] sm:$0x3] }
 0x122   : > { %v1310_v57 = vor.u32 %v1308_v13, %v1307_v50  ;;  %5301 = vmatpush3.bf16.msra.mxu1 %v1584_v9  ;;  %v1298_v63 = vsel %vm6111_vm10, %v4834_v28, %v1297_v46  ;;  %v4837_v3 = vrot.slane %v1326_v22, 11  ;;  %v4867_v4 = vcombine.high %v1660_v0, %v1660_v0  ;;  %v1666_v46 = vld [vmem:[#allocation2 + $0x88] sm:$0xf8] }
 0x123   : > { %v1320_v59 = vrot.slane %v1318_v54, 7  ;;  %5605 = vmatprep.subr.msk.bf16.mxu1 %vm627_vm0, %v4888_v51  ;;  %v4836_v6 = vrot.slane %v1313_v53, 11  ;;  %v1336_v7 = vor.u32 %v1334_v61, %v1333_v2  ;;  %v4864_v8 = vcombine.low %v1659_v48, %v1659_v48  ;;  %v1665_v53 = vld [vmem:[#allocation2 + $0x80] sm:$0xf8] }
 0x124   : > { %v1311_v1 = vsel %vm6111_vm10, %v4835_v56, %v1310_v57  ;;  %v4866_v12 = vcombine.low %v1660_v0, %v1660_v0  ;;  %v1713_v14 = vshrl.u32 %v4865_v58, 16  ;;  %v1726_v16 = vshrl.u32 %v4867_v4, 16 }
 0x125   : > { %v4849_v5 = vcombine.low %v1298_v63, %v1311_v1  ;;  %v1323_v52 = vor.u32 %v1321_v60, %v1320_v59  ;;  %v1337_v10 = vsel %vm6111_vm10, %v4837_v3, %v1336_v7  ;;  %v1708_v23 = vshrl.u32 %v4864_v8, 16  ;;  %v5653_v60 = vld [vmem:[#allocation2 + $0x10c] ss:$8 sps:$4 sm:$0xff]  }
 0x126   : > { %v1715_v24 = vrot.slane %v1713_v14, 7  ;;  %v1716_v25 = vshll.u32 %v4865_v58, 16  ;;  %v1721_v26 = vshrl.u32 %v4866_v12, 16  ;;  %v1728_v29 = vrot.slane %v1726_v16, 7 }
 0x127   : > { %5296 = vmatprep.mubr.msk.bf16.mxu1 %vm578_vm1, %v4849_v5  ;;  %v1324_v9 = vsel %vm6111_vm10, %v4836_v6, %v1323_v52  ;;  %v1729_v30 = vshll.u32 %v4867_v4, 16  ;;  %v4869_v31 = vcombine.high %v1661_v19, %v1661_v19  ;;  %v4871_v17 = vcombine.high %v1662_v20, %v1662_v20 }
 0x128   : > { %v4850_v15 = vcombine.low %v1324_v9, %v1337_v10  ;;  %v4875_v11 = vcombine.high %v1664_v27, %v1664_v27  ;;  %v1838_v32 = vsel %vm627_vm0, %v4888_v51, 0  ;;  %v4880_v33 = vrot.slane %v1708_v23, 11 }
 0x129   : > { %v4868_v34 = vcombine.low %v1661_v19, %v1661_v19  ;;  %v4873_v35 = vcombine.high %v1663_v21, %v1663_v21  ;;  %v1718_v37 = vor.u32 %v1716_v25, %v1715_v24  ;;  %v4881_v38 = vrot.slane %v1721_v26, 11 }
 0x12a   : > { %5297 = vmatmul.mubr.msk.bf16.gmra.mrb[24].mxu1 %vm578_vm1, %v4850_v15  ;;  %v1731_v39 = vor.u32 %v1729_v30, %v1728_v29  ;;  %v4870_v40 = vcombine.low %v1662_v20, %v1662_v20  ;;  %v1739_v43 = vshrl.u32 %v4869_v31, 16  ;;  %v1752_v44 = vshrl.u32 %v4871_v17, 16 }
 0x12b   : > { %5302 = vmatprep.mubr.msk.bf16.mxu1 %vm578_vm1, %v5650_v18  ;;  %v1778_v45 = vshrl.u32 %v4875_v11, 16  ;;  %v1734_v47 = vshrl.u32 %v4868_v34, 16  ;;  %v4874_v48 = vcombine.low %v1664_v27, %v1664_v27  ;;  %v1765_v49 = vshrl.u32 %v4873_v35, 16 }
 0x12c   : > { %v1719_v50 = vsel %vm6111_vm10, %v4880_v33, %v1718_v37  ;;  %v1732_v13 = vsel %vm6111_vm10, %v4881_v38, %v1731_v39  ;;  %v1742_v22 = vshll.u32 %v4869_v31, 16  ;;  %v1747_v51 = vshrl.u32 %v4870_v40, 16  ;;  %v5670_v39 = vld [vmem:[#allocation2 + $0xc] ss:$8 sps:$4 sm:$0xff]   ;;  %v5671_v40 = vld [vmem:[#allocation2 + $0x1c] ss:$8 sps:$4 sm:$0xff]  }
 0x12d   : > { %v1741_v54 = vrot.slane %v1739_v43, 7  ;;  %v1754_v55 = vrot.slane %v1752_v44, 7  ;;  %v1755_v0 = vshll.u32 %v4871_v17, 16  ;;  %v4879_v28 = vcombine.high %v1666_v46, %v1666_v46  ;;  %v4939_v43 = vld [vmem:[%s6683_s5 + $0xc] sm:$0x3] }
 0x12e   : > { %v4872_v56 = vcombine.low %v1663_v21, %v1663_v21  ;;  %v1780_v57 = vrot.slane %v1778_v45, 7  ;;  %v4889_v58 = vcombine.low %v1719_v50, %v1732_v13  ;;  %v4877_v59 = vcombine.high %v1665_v53, %v1665_v53  ;;  %v2150_v44 = vld [vmem:[#allocation2 + $0xe8] sm:$0xf8]  ;;  %v2149_v45 = vld [vmem:[#allocation2 + $0xe0] sm:$0xf8] }
 0x12f   : > { %v4882_v2 = vrot.slane %v1734_v47, 11  ;;  %v1767_v61 = vrot.slane %v1765_v49, 7  ;;  %v1773_v63 = vshrl.u32 %v4874_v48, 16  ;;  %v1781_v1 = vshll.u32 %v4875_v11, 16  ;;  %v5673_v47 = vld [vmem:[#allocation2 + $0x3c] ss:$8 sps:$4 sm:$0xff]  }
 0x130   : > { %v1744_v3 = vor.u32 %v1742_v22, %v1741_v54  ;;  %v4883_v4 = vrot.slane %v1747_v51, 11  ;;  %v1757_v5 = vor.u32 %v1755_v0, %v1754_v55  ;;  %v1804_v6 = vshrl.u32 %v4879_v28, 16  ;;  %v5674_v49 = vld [vmem:[#allocation2 + $0x54] ss:$8 sps:$4 sm:$0xff]   ;;  %v2154_v22 = vld [vmem:[#allocation2 + $0x108] sm:$0xf8] }
 0x131   : > { %v1760_v52 = vshrl.u32 %v4872_v56, 16  ;;  %v1768_v7 = vshll.u32 %v4873_v35, 16  ;;  %v1783_v8 = vor.u32 %v1781_v1, %v1780_v57  ;;  %v4878_v9 = vcombine.low %v1666_v46, %v1666_v46  ;;  %v2152_v13 = vld [vmem:[#allocation2 + $0xf8] sm:$0xf8]  ;;  %v2151_v54 = vld [vmem:[#allocation2 + $0xf0] sm:$0xf8] }
 0x132   : > { %5303 = vmatmul.mubr.msk.bf16.vlgmr.msra.gmra.mrb[20].mxu1 %vm578_vm1, %v5651_v36  ;;  %v1791_v10 = vshrl.u32 %v4877_v59, 16  ;;  %v4885_v14 = vrot.slane %v1773_v63, 11  ;;  %v1745_v15 = vsel %vm6111_vm10, %v4882_v2, %v1744_v3  ;;  %v1758_v16 = vsel %vm6111_vm10, %v4883_v4, %v1757_v5  ;;  %v5676_v3 = vld [vmem:[#allocation2 + $0x74] ss:$8 sps:$4 sm:$0xff]   ;;  %v4948_v5 = vld [vmem:[%s6683_s5 + $0xe] sm:$0x3] }
 0x133   : > { %5311 = vmatpush3.bf16.msra.mxu1 %v1838_v32  ;;  %5306 = vmatprep.mubr.msk.bf16.mxu1 %vm578_vm1, %v5652_v41  ;;  %v1770_v12 = vor.u32 %v1768_v7, %v1767_v61  ;;  %v4876_v18 = vcombine.low %v1665_v53, %v1665_v53  ;;  %v1806_v19 = vrot.slane %v1804_v6, 7  ;;  %v4884_v20 = vrot.slane %v1760_v52, 11  ;;  %v4906_v32 = vld [vmem:[%s6683_s5 + $0xa] sm:$0x3] }
 0x134   : > { %5606 = vmatprep.subr.msk.bf16.mxu1 %vm627_vm0, %v4897_v42  ;;  %v1784_v21 = vsel %vm6111_vm10, %v4885_v14, %v1783_v8  ;;  %v1793_v23 = vrot.slane %v1791_v10, 7  ;;  %v1799_v24 = vshrl.u32 %v4878_v9, 16  ;;  %v1807_v25 = vshll.u32 %v4879_v28, 16  ;;  %v2153_v28 = vld [vmem:[#allocation2 + $0x100] sm:$0xf8] }
 0x135   : > { %v4890_v26 = vcombine.low %v1745_v15, %v1758_v16  ;;  %v1956_v27 = vsel %vm627_vm0, %v4897_v42, 0  ;;  %v1771_v29 = vsel %vm6111_vm10, %v4884_v20, %v1770_v12  ;;  %v1786_v31 = vshrl.u32 %v4876_v18, 16  ;;  %v5672_v42 = vld [vmem:[#allocation2 + $0x2c] ss:$8 sps:$4 sm:$0xff]   ;;  %v2156_v10 = vld [vmem:[#allocation2 + $0x118] sm:$0xf8] }
 0x136   : > { %v4891_v30 = vcombine.low %v1771_v29, %v1784_v21  ;;  %v1794_v17 = vshll.u32 %v4877_v59, 16  ;;  %v1809_v11 = vor.u32 %v1807_v25, %v1806_v19  ;;  %v4887_v34 = vrot.slane %v1799_v24, 11  ;;  %v2155_v20 = vld [vmem:[#allocation2 + $0x110] sm:$0xf8] }
 0x137   : > { %v4886_v35 = vrot.slane %v1786_v31, 11  ;;  %v2074_v41 = vsel %vm627_vm0, %v4906_v32, 0  ;;  %v4918_v46 = vcombine.high %v2150_v44, %v2150_v44  ;;  %v4916_v48 = vcombine.high %v2149_v45, %v2149_v45 }
 0x138   : > { %v1796_v33 = vor.u32 %v1794_v17, %v1793_v23  ;;  %v1810_v36 = vsel %vm6111_vm10, %v4887_v34, %v1809_v11  ;;  %v4917_v51 = vcombine.low %v2150_v44, %v2150_v44  ;;  %v4915_v55 = vcombine.low %v2149_v45, %v2149_v45 }
 0x139   : > { %v2216_v50 = vshrl.u32 %v4918_v46, 16  ;;  %v2203_v53 = vshrl.u32 %v4916_v48, 16  ;;  %v4922_v0 = vcombine.high %v2152_v13, %v2152_v13  ;;  %v4926_v57 = vcombine.high %v2154_v22, %v2154_v22 }
 0x13a   : > { %5307 = vmatmul.mubr.msk.bf16.gmra.mrb[24].mxu1 %vm578_vm1, %v5653_v60  ;;  %v1797_v37 = vsel %vm6111_vm10, %v4886_v35, %v1796_v33  ;;  %v4920_v59 = vcombine.high %v2151_v54, %v2151_v54  ;;  %v5675_v60 = vld [vmem:[#allocation2 + $0x64] ss:$8 sps:$4 sm:$0xff]   ;;  %v2211_v61 = vshrl.u32 %v4917_v51, 16  ;;  %v2219_v63 = vshll.u32 %v4918_v46, 16 }
 0x13b   : > { %5312 = vmatprep.mubr.msk.bf16.mxu1 %vm578_vm1, %v4889_v58  ;;  %v4892_v38 = vcombine.low %v1797_v37, %v1810_v36  ;;  %v2218_v56 = vrot.slane %v2216_v50, 7  ;;  %v2328_v58 = vsel %vm627_vm0, %v4939_v43, 0  ;;  %v2205_v2 = vrot.slane %v2203_v53, 7 }
 0x13c   : > { %v4924_v1 = vcombine.high %v2153_v28, %v2153_v28  ;;  %v2198_v4 = vshrl.u32 %v4915_v55, 16  ;;  %v2242_v6 = vshrl.u32 %v4922_v0, 16  ;;  %v2206_v52 = vshll.u32 %v4916_v48, 16 }
 0x13d   : > { %v2221_v7 = vor.u32 %v2219_v63, %v2218_v56  ;;  %v4919_v8 = vcombine.low %v2151_v54, %v2151_v54  ;;  %v2268_v9 = vshrl.u32 %v4926_v57, 16  ;;  %v4921_v12 = vcombine.low %v2152_v13, %v2152_v13 }
 0x13e   : > { %v2229_v14 = vshrl.u32 %v4920_v59, 16  ;;  %v2208_v15 = vor.u32 %v2206_v52, %v2205_v2  ;;  %v4932_v16 = vrot.slane %v2211_v61, 11  ;;  %v4925_v18 = vcombine.low %v2154_v22, %v2154_v22 }
 0x13f   : > { %v2255_v19 = vshrl.u32 %v4924_v1, 16  ;;  %v4931_v21 = vrot.slane %v2198_v4, 11  ;;  %v2244_v23 = vrot.slane %v2242_v6, 7  ;;  %v4930_v24 = vcombine.high %v2156_v10, %v2156_v10 }
 0x140   : > { %v2222_v25 = vsel %vm6111_vm10, %v4932_v16, %v2221_v7  ;;  %v2270_v29 = vrot.slane %v2268_v9, 7  ;;  %v2237_v31 = vshrl.u32 %v4921_v12, 16  ;;  %v2245_v17 = vshll.u32 %v4922_v0, 16  ;;  %v5695_v9 = vld [vmem:[#allocation2 + $0xac] ss:$8 sps:$4 sm:$0xff]  }
 0x141   : > { %v4928_v11 = vcombine.high %v2155_v20, %v2155_v20  ;;  %v2209_v33 = vsel %vm6111_vm10, %v4931_v21, %v2208_v15  ;;  %v2257_v34 = vrot.slane %v2255_v19, 7  ;;  %v2263_v35 = vshrl.u32 %v4925_v18, 16  ;;  %v5696_v12 = vld [vmem:[#allocation2 + $0xbc] ss:$8 sps:$4 sm:$0xff]  }
 0x142   : > { %5313 = vmatmul.mubr.msk.bf16.vlgmr.msra.gmra.mrb[20].mxu1 %vm578_vm1, %v4890_v26  ;;  %v2224_v26 = vshrl.u32 %v4919_v8, 16  ;;  %v2271_v36 = vshll.u32 %v4926_v57, 16  ;;  %v4940_v37 = vcombine.low %v2209_v33, %v2222_v25  ;;  %v4934_v45 = vrot.slane %v2237_v31, 11  ;;  %v5694_v8 = vld [vmem:[#allocation2 + $0x9c] ss:$8 sps:$4 sm:$0xff]  }
 0x143   : > { %5321 = vmatpush3.bf16.msra.mxu1 %v1956_v27  ;;  %5316 = vmatprep.mubr.msk.bf16.mxu1 %vm578_vm1, %v4891_v30  ;;  %v4923_v27 = vcombine.low %v2153_v28, %v2153_v28  ;;  %v2231_v30 = vrot.slane %v2229_v14, 7  ;;  %v4929_v46 = vcombine.low %v2156_v10, %v2156_v10  ;;  %v4927_v22 = vcombine.low %v2155_v20, %v2155_v20  ;;  %v5697_v14 = vld [vmem:[#allocation2 + $0xcc] ss:$8 sps:$4 sm:$0xff]   ;;  %v4966_v20 = vld [vmem:[%s6684_s6] ss:$0 sm:$0xff] }
 0x144   : > { %5607 = vmatprep.subr.msk.bf16.mxu1 %vm627_vm0, %v4906_v32  ;;  %v5677_v32 = vld [vmem:[#allocation2 + $0x84] ss:$8 sps:$4 sm:$0xff]   ;;  %v4933_v50 = vrot.slane %v2224_v26, 11  ;;  %v2297_v56 = vshll.u32 %v4930_v24, 16  ;;  %v2284_v61 = vshll.u32 %v4928_v11, 16 }
 0x145   : > { %v2289_v28 = vshrl.u32 %v4929_v46, 16  ;;  %v2276_v2 = vshrl.u32 %v4927_v22, 16  ;;  %v5698_v15 = vld [vmem:[#allocation2 + $0xe4] ss:$8 sps:$4 sm:$0xff]   ;;  %v5699_v16 = vld [vmem:[#allocation2 + $0xf4] ss:$8 sps:$4 sm:$0xff]  }
 0x146   : > { %v5700_v18 = vld [vmem:[#allocation2 + $0x104] ss:$8 sps:$4 sm:$0xff]   ;;  %v5701_v19 = vld [vmem:[#allocation2 + $0x114] ss:$8 sps:$4 sm:$0xff]  }
 0x147   : > { %v4938_v4 = vrot.slane %v2289_v28, 11 }
 0x14a   : > { %5317 = vmatmul.mubr.msk.bf16.gmra.mrb[24].mxu1 %vm578_vm1, %v4892_v38  ;;  %v2232_v38 = vshll.u32 %v4920_v59, 16 }
 0x14b   : > { %5322 = vmatprep.mubr.msk.bf16.mxu1 %vm578_vm1, %v5670_v39  ;;  %v2247_v39 = vor.u32 %v2245_v17, %v2244_v23  ;;  %v4967_v23 = vld [vmem:[%s6685_s7] ss:$0 sm:$0xff] }
 0x14c   : > { %v2234_v44 = vor.u32 %v2232_v38, %v2231_v30 }
 0x14d   : > { %v2248_v13 = vsel %vm6111_vm10, %v4934_v45, %v2247_v39 }
 0x14e   : > { %v2235_v55 = vsel %vm6111_vm10, %v4933_v50, %v2234_v44 }
 0x14f   : > { %v4941_v57 = vcombine.low %v2235_v55, %v2248_v13 }
 0x152   : > { %5323 = vmatmul.mubr.msk.bf16.vlgmr.msra.gmra.mrb[20].mxu1 %vm578_vm1, %v5671_v40  ;;  %v2294_v40 = vshrl.u32 %v4930_v24, 16 }
 0x153   : > { %5331 = vmatpush3.bf16.msra.mxu1 %v2074_v41  ;;  %5326 = vmatprep.mubr.msk.bf16.mxu1 %vm578_vm1, %v5672_v42  ;;  %v2250_v41 = vshrl.u32 %v4923_v27, 16  ;;  %v2258_v42 = vshll.u32 %v4924_v1, 16  ;;  %v4957_v1 = vld [vmem:[%s6683_s5 + $0x10] sm:$0x3] }
 0x154   : > { %5608 = vmatprep.subr.msk.bf16.mxu1 %vm627_vm0, %v4939_v43  ;;  %v2273_v43 = vor.u32 %v2271_v36, %v2270_v29  ;;  %v2296_v51 = vrot.slane %v2294_v40, 7  ;;  %v2564_v10 = vsel %vm627_vm0, %v4957_v1, 0 }
 0x155   : > { %v2260_v48 = vor.u32 %v2258_v42, %v2257_v34  ;;  %v4935_v53 = vrot.slane %v2250_v41, 11 }
 0x156   : > { %v2299_v63 = vor.u32 %v2297_v56, %v2296_v51 }
 0x157   : > { %v2261_v59 = vsel %vm6111_vm10, %v4935_v53, %v2260_v48 }
 0x158   : > { %v2300_v6 = vsel %vm6111_vm10, %v4938_v4, %v2299_v63 }
 0x15a   : > { %5327 = vmatmul.mubr.msk.bf16.gmra.mrb[24].mxu1 %vm578_vm1, %v5673_v47  ;;  %v2281_v47 = vshrl.u32 %v4928_v11, 16 }
 0x15b   : > { %5332 = vmatprep.mubr.msk.bf16.mxu1 %vm578_vm1, %v5674_v49  ;;  %v4936_v49 = vrot.slane %v2263_v35, 11 }
 0x15c   : > { %v2283_v0 = vrot.slane %v2281_v47, 7 }
 0x15d   : > { %v2274_v54 = vsel %vm6111_vm10, %v4936_v49, %v2273_v43 }
 0x162   : > { %5333 = vmatmul.mubr.msk.bf16.vlgmr.msra.gmra.mrb[20].mxu1 %vm578_vm1, %v5675_v60  ;;  %v4942_v60 = vcombine.low %v2261_v59, %v2274_v54 }
 0x163   : > { %5341 = vmatpush3.bf16.msra.mxu1 %v2328_v58  ;;  %5336 = vmatprep.mubr.msk.bf16.mxu1 %vm578_vm1, %v5676_v3  ;;  %v2446_v58 = vsel %vm627_vm0, %v4948_v5, 0  ;;  %v2286_v3 = vor.u32 %v2284_v61, %v2283_v0 }
 0x164   : > { %5609 = vmatprep.subr.msk.bf16.mxu1 %vm627_vm0, %v4948_v5  ;;  %v4937_v5 = vrot.slane %v2276_v2, 11 }
 0x166   : > { %v2287_v52 = vsel %vm6111_vm10, %v4937_v5, %v2286_v3 }
 0x167   : > { %v4943_v7 = vcombine.low %v2287_v52, %v2300_v6 }
 0x16a   : > { %5337 = vmatmul.mubr.msk.bf16.gmra.mrb[24].mxu1 %vm578_vm1, %v5677_v32 }
 0x16b   : > { %5342 = vmatprep.mubr.msk.bf16.mxu1 %vm578_vm1, %v4940_v37 }
 0x172   : > { %5343 = vmatmul.mubr.msk.bf16.vlgmr.msra.gmra.mrb[20].mxu1 %vm578_vm1, %v4941_v57 }
 0x173   : > { %5351 = vmatpush3.bf16.msra.mxu1 %v2446_v58  ;;  %5346 = vmatprep.mubr.msk.bf16.mxu1 %vm578_vm1, %v4942_v60 }
 0x174   : > { %5610 = vmatprep.subr.msk.bf16.mxu1 %vm627_vm0, %v4957_v1 }
 0x17a   : > { %5347 = vmatmul.mubr.msk.bf16.gmra.mrb[24].mxu1 %vm578_vm1, %v4943_v7 }
 0x17b   : > { %5352 = vmatprep.mubr.msk.bf16.mxu1 %vm578_vm1, %v5694_v8 }
 0x182   : > { %5353 = vmatmul.mubr.msk.bf16.vlgmr.msra.gmra.mrb[20].mxu1 %vm578_vm1, %v5695_v9 }
 0x183   : > { %5361 = vmatpush3.bf16.msra.mxu1 %v2564_v10  ;;  %5356 = vmatprep.mubr.msk.bf16.mxu1 %vm578_vm1, %v5696_v12 }
 0x18a   : > { %5357 = vmatmul.mubr.msk.bf16.gmra.mrb[24].mxu1 %vm578_vm1, %v5697_v14 }
 0x18b   : > { %5362 = vmatprep.mubr.msk.bf16.mxu1 %vm578_vm1, %v5698_v15 }
 0x192   : > { %5363 = vmatmul.mubr.msk.bf16.vlgmr.msra.gmra.mrb[20].mxu1 %vm578_vm1, %v5699_v16 }
 0x193   : > { %5366 = vmatprep.mubr.msk.bf16.mxu1 %vm578_vm1, %v5700_v18 }
 0x19a   : > { %5367 = vmatmul.mubr.msk.bf16.gmra.mrb[24].mxu1 %vm578_vm1, %v5701_v19 }
 0x265   : > { %v5364_v21 = vpop.f32.mrb[20].mxu1 }
 0x266   : > { %v2648_v24 = vmul.f32 %v5364_v21, %v4966_v20  ;;  %v2600_v25 = vpop.f32.mrb[21].mxu1 }
 0x267   : > { %v2646_v26 = vmul.f32 %v4966_v20, %v2600_v25  ;;  %v5365_v27 = vpop.f32.mrb[22].mxu1 }
 0x268   : > { %v2663_v29 = vadd.f32 %v4967_v23, %v2648_v24  ;;  %v2649_v30 = vmul.f32 %v5365_v27, %v4966_v20  ;;  %v2603_v31 = vpop.f32.mrb[23].mxu1 }
 0x269   : > { %v2661_v17 = vadd.f32 %v4967_v23, %v2646_v26  ;;  %v2647_v11 = vmul.f32 %v4966_v20, %v2603_v31 }
 0x26a   : > { %v2671_v32 = vmax.f32 %v2663_v29, 0.0  ;;  %v2664_v33 = vadd.f32 %v4967_v23, %v2649_v30 }
 0x26b   : > { %v2669_v34 = vmax.f32 %v2661_v17, 0.0  ;;  %v2662_v35 = vadd.f32 %v4967_v23, %v2647_v11 }
 0x26c   : > { %2679 = vst.msk [vmem:[%s5824_s30 + $0x10] sm:$0xff] %vm578_vm1, %v2671_v32  ;;  %v2672_v36 = vmax.f32 %v2664_v33, 0.0 }
 0x26d   : > { %2677 = vst.msk [vmem:[%s5824_s30] sm:$0xff] %vm578_vm1, %v2669_v34  ;;  %v2670_v37 = vmax.f32 %v2662_v35, 0.0  ;;  %v5368_v38 = vpop.f32.mrb[24].mxu1 }
 0x26e   : > { %2680 = vst.msk [vmem:[%s5824_s30 + $0x18] sm:$0xff] %vm578_vm1, %v2672_v36  ;;  %v2652_v39 = vmul.f32 %v5368_v38, %v4966_v20  ;;  %v2616_v40 = vpop.f32.mrb[25].mxu1 }
 0x26f   : > { %2678 = vst.msk [vmem:[%s5824_s30 + $0x8] sm:$0xff] %vm578_vm1, %v2670_v37  ;;  %v2650_v41 = vmul.f32 %v4966_v20, %v2616_v40  ;;  %v5369_v42 = vpop.f32.mrb[26].mxu1 }
 0x270   : > { %v2667_v43 = vadd.f32 %v4967_v23, %v2652_v39  ;;  %v2653_v44 = vmul.f32 %v5369_v42, %v4966_v20  ;;  %v2619_v45 = vpop.f32.mrb[27].mxu1 }
 0x271   : > { %v2665_v46 = vadd.f32 %v4967_v23, %v2650_v41  ;;  %v2651_v47 = vmul.f32 %v4966_v20, %v2619_v45 }
 0x272   : > { %v2675_v48 = vmax.f32 %v2667_v43, 0.0  ;;  %v2668_v49 = vadd.f32 %v4967_v23, %v2653_v44 }
 0x273   : > { %v2673_v50 = vmax.f32 %v2665_v46, 0.0  ;;  %v2666_v13 = vadd.f32 %v4967_v23, %v2651_v47 }
 0x274   : > { %2683 = vst.msk [vmem:[%s5824_s30 + $0x30] sm:$0xff] %vm578_vm1, %v2675_v48  ;;  %v2676_v22 = vmax.f32 %v2668_v49, 0.0 }
 0x275   : > { %2681 = vst.msk [vmem:[%s5824_s30 + $0x20] sm:$0xff] %vm578_vm1, %v2673_v50  ;;  %v2674_v51 = vmax.f32 %v2666_v13, 0.0 }
 0x276   : > { %2684 = vst.msk [vmem:[%s5824_s30 + $0x38] sm:$0xff] %vm578_vm1, %v2676_v22 }
 0x277   : > { %2682 = vst.msk [vmem:[%s5824_s30 + $0x28] sm:$0xff] %vm578_vm1, %v2674_v51 }
 0x278   : > { %v2697_v53 = vld [vmem:[%s6686_s8] sm:$0xf]  ;;  %vm2711_vm11 = vcmask 1043456   ;;  %v2686_v55 = vld [vmem:[%s5819_s27 + $0x8] sm:$0xff]  ;;  %vm2698_vm12 = vcmask 64512   ;;  %v2687_v56 = vld [vmem:[%s5819_s27 + $0x10] sm:$0xff] }
 0x279   : > { %v2685_v54 = vld [vmem:[%s5819_s27] sm:$0xff]  ;;  %5611 = vmatprep.subr.msk.bf16.mxu0 %vm2711_vm11, %v2697_v53  ;;  %v2713_v0 = vsel %vm2711_vm11, %v2697_v53, 0  ;;  %v2688_v57 = vld [vmem:[%s5819_s27 + $0x18] sm:$0xff]  ;;  %v2690_v60 = vld [vmem:[%s5819_s27 + $0x28] sm:$0xff]  ;;  %vm2851_vm13 = vcmask 60416   ;;  %vm2860_vm14 = vcmask 60419  }
 0x27a   : > { %v2693_v28 = vpack.c.bf16 %v2686_v55, %v2685_v54  ;;  %v2689_v58 = vld [vmem:[%s5819_s27 + $0x20] sm:$0xff]  ;;  %5371 = vmatpush3.bf16.msra.mxu0 %v2713_v0  ;;  %v2694_v59 = vpack.c.bf16 %v2688_v57, %v2687_v56  ;;  %v2691_v61 = vld [vmem:[%s5819_s27 + $0x30] sm:$0xff]  ;;  %v2692_v63 = vld [vmem:[%s5819_s27 + $0x38] sm:$0xff]  ;;  %v5722_v5 = vmov 0   ;;  %vm2867_vm0 = vcmask 57344   ;;  %s6709_s17 = sld [smem:[#allocation5_spill]] }
 0x27b   : > { %v2695_v2 = vpack.c.bf16 %v2690_v60, %v2689_v58  ;;  %v2696_v1 = vpack.c.bf16 %v2692_v63, %v2691_v61  ;;  %vm6268_vm15 = vmand %vm2860_vm14, %vm993_vm2  ;;  %v2887_v4 = vld [vmem:[#allocation3 + $0x24] sm:$0x8]  ;;  %2866 = vst.msk [vmem:[#allocation3 + $0x4] sm:$0xf] %vm2851_vm13, %v5722_v5  ;;  %v2863_v6 = vld [vmem:[#allocation3] sm:$0x8] }
 0x27c   : > { %5372 = vmatprep.mubr.msk.bf16.mxu0 %vm2698_vm12, %v2693_v28  ;;  %2877 = vst.msk [vmem:[#allocation3 + $0x70] sm:$0xf] %vm2851_vm13, %v5722_v5  ;;  %v2881_v52 = vld [vmem:[#allocation3 + $0xc] sm:$0x8]  ;;  %v2888_v7 = vsel %vm6268_vm15, 0, %v2887_v4  ;;  %v2864_v8 = vsel %vm6268_vm15, 0, %v2863_v6  ;;  %vm6281_vm2 = vmand %vm2867_vm0, %vm1231_vm8 }
 0x27d   : > { %5373 = vmatmul.mubr.msk.bf16.vlgmr.msra.gmra.mrb[12].mxu0 %vm2698_vm12, %v2694_v59  ;;  %v2882_v9 = vsel %vm6268_vm15, 0, %v2881_v52  ;;  %2889 = vst [vmem:[#allocation3 + $0x24] sm:$0x8] %v2888_v7  ;;  %v2890_v10 = vld [vmem:[#allocation3 + $0x30] sm:$0x8] }
 0x27e   : > { %5376 = vmatprep.mubr.msk.bf16.mxu0 %vm2698_vm12, %v2695_v2  ;;  %v4990_v14 = vld [vmem:[%s6689_s11 + $0x4] sm:$0xf]  ;;  %2865 = vst [vmem:[#allocation3] sm:$0x8] %v2864_v8  ;;  %2883 = vst [vmem:[#allocation3 + $0xc] sm:$0x8] %v2882_v9 }
 0x27f   : > { %v2884_v15 = vld [vmem:[#allocation3 + $0x18] sm:$0x8]  ;;  %v2891_v16 = vsel %vm6268_vm15, 0, %v2890_v10  ;;  %5612 = vmatprep.subr.msk.bf16.mxu0 %vm2711_vm11, %v4990_v14  ;;  %v3087_v18 = vsel %vm2711_vm11, %v4990_v14, 0  ;;  %v2870_v20 = vld [vmem:[#allocation3 + $0x8] sm:$0x1] }
 0x280   : > { %v2885_v19 = vsel %vm6268_vm15, 0, %v2884_v15  ;;  %2892 = vst [vmem:[#allocation3 + $0x30] sm:$0x8] %v2891_v16  ;;  %v2905_v21 = vld [vmem:[#allocation3 + $0x14] sm:$0x1]  ;;  %5381 = vmatpush3.bf16.msra.mxu0 %v3087_v18  ;;  %v2871_v23 = vsel %vm6281_vm2, 0, %v2870_v20 }
 0x281   : > { %2886 = vst [vmem:[#allocation3 + $0x18] sm:$0x8] %v2885_v19  ;;  %v2906_v24 = vsel %vm6281_vm2, 0, %v2905_v21  ;;  %2872 = vst [vmem:[#allocation3 + $0x8] sm:$0x1] %v2871_v23 }
 0x282   : > { %2907 = vst [vmem:[#allocation3 + $0x14] sm:$0x1] %v2906_v24  ;;  %v2899_v25 = vld [vmem:[#allocation3 + $0x54] sm:$0x8]  ;;  %v2893_v26 = vld [vmem:[#allocation3 + $0x3c] sm:$0x8] }
 0x283   : > { %v2900_v27 = vsel %vm6268_vm15, 0, %v2899_v25  ;;  %v2894_v29 = vsel %vm6268_vm15, 0, %v2893_v26  ;;  %v6305_v30 = vld [vmem:[%s6689_s11] sm:$0xf]  ;;  %v2896_v31 = vld [vmem:[#allocation3 + $0x48] sm:$0x8] }
 0x284   : > { %2901 = vst [vmem:[#allocation3 + $0x54] sm:$0x8] %v2900_v27  ;;  %2895 = vst [vmem:[#allocation3 + $0x3c] sm:$0x8] %v2894_v29  ;;  %5613 = vmatprep.subr.msk.bf16.mxu0 %vm2711_vm11, %v6305_v30  ;;  %v2897_v17 = vsel %vm6268_vm15, 0, %v2896_v31 }
 0x285   : > { %5377 = vmatmul.mubr.msk.bf16.gmra.mrb[16].mxu0 %vm2698_vm12, %v2696_v1  ;;  %v2911_v11 = vld [vmem:[#allocation3 + $0x2c] sm:$0x1]  ;;  %2898 = vst [vmem:[#allocation3 + $0x48] sm:$0x8] %v2897_v17  ;;  %v2908_v32 = vld [vmem:[#allocation3 + $0x20] sm:$0x1] }
 0x286   : > { %v2909_v33 = vsel %vm6281_vm2, 0, %v2908_v32  ;;  %v2912_v34 = vsel %vm6281_vm2, 0, %v2911_v11  ;;  %v2914_v35 = vld [vmem:[#allocation3 + $0x38] sm:$0x1]  ;;  %v2923_v37 = vld [vmem:[#allocation3 + $0x5c] sm:$0x1] }
 0x287   : > { %2910 = vst [vmem:[#allocation3 + $0x20] sm:$0x1] %v2909_v33  ;;  %2913 = vst [vmem:[#allocation3 + $0x2c] sm:$0x1] %v2912_v34  ;;  %v2915_v36 = vsel %vm6281_vm2, 0, %v2914_v35  ;;  %v2924_v39 = vsel %vm6281_vm2, 0, %v2923_v37 }
 0x288   : > { %2916 = vst [vmem:[#allocation3 + $0x38] sm:$0x1] %v2915_v36  ;;  %v2917_v38 = vld [vmem:[#allocation3 + $0x44] sm:$0x1]  ;;  %2925 = vst [vmem:[#allocation3 + $0x5c] sm:$0x1] %v2924_v39 }
 0x289   : > { %v2918_v40 = vsel %vm6281_vm2, 0, %v2917_v38  ;;  %v2920_v41 = vld [vmem:[#allocation3 + $0x50] sm:$0x1]  ;;  %v2902_v43 = vld [vmem:[#allocation3 + $0x60] sm:$0x8] }
 0x28a   : > { %2919 = vst [vmem:[#allocation3 + $0x44] sm:$0x1] %v2918_v40  ;;  %v2921_v42 = vsel %vm6281_vm2, 0, %v2920_v41  ;;  %v2903_v44 = vsel %vm6268_vm15, 0, %v2902_v43  ;;  %v2926_v45 = vld [vmem:[#allocation3 + $0x68] sm:$0x1] }
 0x28b   : > { %2922 = vst [vmem:[#allocation3 + $0x50] sm:$0x1] %v2921_v42  ;;  %2904 = vst [vmem:[#allocation3 + $0x60] sm:$0x8] %v2903_v44  ;;  %v2927_v46 = vsel %vm6281_vm2, 0, %v2926_v45  ;;  %v3179_v43 = vsel %vm2711_vm11, %v6305_v30, 0 }
 0x28c   : > { %2928 = vst [vmem:[#allocation3 + $0x68] sm:$0x1] %v2927_v46  ;;  %v2874_v47 = vld [vmem:[#allocation3 + $0x6c] sm:$0x8]  ;;  %v2878_v49 = vld [vmem:[#allocation3 + $0x74] sm:$0x1] }
 0x28d   : > { %v2875_v48 = vsel %vm6268_vm15, 0, %v2874_v47  ;;  %v2879_v50 = vsel %vm6281_vm2, 0, %v2878_v49  ;;  %v4972_v13 = vld [vmem:[%s6687_s9] ss:$0 sm:$0xff]  ;;  %v6337_v1 = vld [vmem:[#allocation3 + $0x4] sm:$0xf] }
 0x28e   : > { %2876 = vst [vmem:[#allocation3 + $0x6c] sm:$0x8] %v2875_v48  ;;  %2880 = vst [vmem:[#allocation3 + $0x74] sm:$0x1] %v2879_v50  ;;  %v4973_v51 = vld [vmem:[%s6688_s10] ss:$0 sm:$0xff] }
 0x28f   : > { %v2935_v7 = vld [vmem:[#allocation3 + $0x24] sm:$0x8]  ;;  %v2953_v12 = vshrl.u32 %v6337_v1, 16  ;;  %v2929_v18 = vld [vmem:[#allocation3] sm:$0x8]  ;;  %v2956_v26 = vshll.u32 %v6337_v1, 16 }
 0x290   : > { %v2987_v23 = vshrl.u32 %v2935_v7, 16  ;;  %v2931_v27 = vld [vmem:[#allocation3 + $0xc] sm:$0x8]  ;;  %v2948_v17 = vshrl.u32 %v2929_v18, 16  ;;  %v3246_v32 = vld [vmem:[#allocation3 + $0x4] sm:$0xf] }
 0x291   : > { %v2955_v11 = vrot.slane %v2953_v12, 7  ;;  %v2933_v35 = vld [vmem:[#allocation3 + $0x18] sm:$0x8]  ;;  %v2961_v38 = vshrl.u32 %v2931_v27, 16  ;;  %v2937_v40 = vld [vmem:[#allocation3 + $0x30] sm:$0x8] }
 0x292   : > { %v6345_v39 = vrot.slane %v2987_v23, 11  ;;  %v3247_v44 = vld [vmem:[#allocation3 + $0x8] sm:$0x1]  ;;  %v3266_v45 = vshrl.u32 %v3246_v32, 16  ;;  %v6350_v48 = vrot.slane %v2948_v17, 11  ;;  %v2974_v50 = vshrl.u32 %v2933_v35, 16 }
 0x293   : > { %v6352_v49 = vor.u32 %v2956_v26, %v2955_v11  ;;  %v3000_v30 = vshrl.u32 %v2937_v40, 16  ;;  %vm3262_vm3 = vsmask.f32 3328  ;;  %vm3263_vm4 = vsmask.f32 7440 }
 0x294   : > { %vm6411_vm5 = vmor %vm3262_vm3, %vm3263_vm4 }
 0x350   : > { %v5374_v22 = vpop.f32.mrb[12].mxu0 }
 0x351   : > { %v2789_v53 = vmul.f32 %v5374_v22, %v4972_v13  ;;  %v2749_v54 = vpop.f32.mrb[13].mxu0 }
 0x352   : > { %v2787_v55 = vmul.f32 %v4972_v13, %v2749_v54  ;;  %v5375_v0 = vpop.f32.mrb[14].mxu0 }
 0x353   : > { %v2804_v28 = vadd.f32 %v4973_v51, %v2789_v53  ;;  %v2790_v56 = vmul.f32 %v5375_v0, %v4972_v13  ;;  %v2752_v57 = vpop.f32.mrb[15].mxu0  ;;  %v6357_v0 = vld [vmem:[#allocation3 + $0x14] sm:$0x1] }
 0x354   : > { %v2802_v58 = vadd.f32 %v4973_v51, %v2787_v55  ;;  %v2788_v59 = vmul.f32 %v4972_v13, %v2752_v57 }
 0x355   : > { %v2812_v60 = vmax.f32 %v2804_v28, 0.0  ;;  %v2805_v2 = vadd.f32 %v4973_v51, %v2790_v56  ;;  %v3269_v28 = vshll.u32 %v3246_v32, 16  ;;  %v3275_v56 = vshll.u32 %v3247_v44, 16 }
 0x356   : > { %v2810_v61 = vmax.f32 %v2802_v58, 0.0  ;;  %v2803_v63 = vadd.f32 %v4973_v51, %v2788_v59 }
 0x357   : > { %v5128_v3 = vpack.c.bf16 %v2812_v60, %v2812_v60  ;;  %v2813_v4 = vmax.f32 %v2805_v2, 0.0  ;;  %v6361_v2 = vld [vmem:[#allocation3 + $0x54] sm:$0x8]  ;;  %v6379_v18 = vrot.slane %v3275_v56, 5 }
 0x358   : > { %v5126_v5 = vpack.c.bf16 %v2810_v61, %v2810_v61  ;;  %v2811_v6 = vmax.f32 %v2803_v63, 0.0  ;;  %v5378_v52 = vpop.f32.mrb[16].mxu0  ;;  %v3039_v12 = vshrl.u32 %v6361_v2, 16 }
 0x359   : > { %2854 = vst.msk [vmem:[#allocation3 + $0x28] sm:$0xf] %vm2851_vm13, %v5128_v3  ;;  %v5129_v8 = vpack.c.bf16 %v2813_v4, %v2813_v4  ;;  %v2793_v9 = vmul.f32 %v5378_v52, %v4972_v13  ;;  %v2765_v10 = vpop.f32.mrb[17].mxu0  ;;  %v5007_v3 = vld [vmem:[%s6689_s11 + $0x8] sm:$0xf]  ;;  %v2959_v4 = vsel %vm6111_vm10, %v6350_v48, %v6352_v49 }
 0x35a   : > { %2852 = vst.msk [vmem:[#allocation3 + $0x10] sm:$0xf] %vm2851_vm13, %v5126_v5  ;;  %v5127_v14 = vpack.c.bf16 %v2811_v6, %v2811_v6  ;;  %v2791_v15 = vmul.f32 %v4972_v13, %v2765_v10  ;;  %v5379_v16 = vpop.f32.mrb[18].mxu0  ;;  %v4983_v5 = vrot.slane %v2961_v38, 11  ;;  %v2941_v52 = vld [vmem:[#allocation3 + $0x48] sm:$0x8] }
 0x35b   : > { %2855 = vst.msk [vmem:[#allocation3 + $0x34] sm:$0xf] %vm2851_vm13, %v5129_v8  ;;  %v2808_v19 = vadd.f32 %v4973_v51, %v2793_v9  ;;  %v2794_v20 = vmul.f32 %v5379_v16, %v4972_v13  ;;  %v2768_v21 = vpop.f32.mrb[19].mxu0  ;;  %v3268_v8 = vrot.slane %v3266_v45, 4  ;;  %v6371_v9 = vrot.slane %v2974_v50, 11 }
 0x35c   : > { %2853 = vst.msk [vmem:[#allocation3 + $0x1c] sm:$0xf] %vm2851_vm13, %v5127_v14  ;;  %v2806_v24 = vadd.f32 %v4973_v51, %v2791_v15  ;;  %v2792_v25 = vmul.f32 %v4972_v13, %v2768_v21  ;;  %v2939_v13 = vld [vmem:[#allocation3 + $0x3c] sm:$0x8]  ;;  %v6373_v10 = vrot.slane %v3000_v30, 11  ;;  %v3271_v14 = vrot.slane %v3269_v28, 5 }
 0x35d   : > { %v2816_v29 = vmax.f32 %v2808_v19, 0.0  ;;  %v2809_v31 = vadd.f32 %v4973_v51, %v2794_v20  ;;  %v3013_v60 = vshrl.u32 %v2939_v13, 16  ;;  %v3289_v19 = vshll.u32 %v6357_v0, 16 }
 0x35e   : > { %v2814_v33 = vmax.f32 %v2806_v24, 0.0  ;;  %v2807_v34 = vadd.f32 %v4973_v51, %v2792_v25  ;;  %v3026_v24 = vshrl.u32 %v2941_v52, 16 }
 0x35f   : > { %v5132_v36 = vpack.c.bf16 %v2816_v29, %v2816_v29  ;;  %v2817_v37 = vmax.f32 %v2809_v31, 0.0  ;;  %v6377_v16 = vrot.slane %v3013_v60, 11 }
 0x360   : > { %v5130_v41 = vpack.c.bf16 %v2814_v33, %v2814_v33  ;;  %v2815_v42 = vmax.f32 %v2807_v34, 0.0  ;;  %v2936_v54 = vld [vmem:[#allocation3 + $0x28] sm:$0xf]  ;;  %v3272_v34 = vor.u32 %v3271_v14, %v3268_v8 }
 0x361   : > { %2858 = vst.msk [vmem:[#allocation3 + $0x58] sm:$0xf] %vm2851_vm13, %v5132_v36  ;;  %v5133_v46 = vpack.c.bf16 %v2817_v37, %v2817_v37  ;;  %v2932_v47 = vld [vmem:[#allocation3 + $0x10] sm:$0xf]  ;;  %v2992_v63 = vshrl.u32 %v2936_v54, 16  ;;  %v2995_v11 = vshll.u32 %v2936_v54, 16 }
 0x362   : > { %2856 = vst.msk [vmem:[#allocation3 + $0x40] sm:$0xf] %vm2851_vm13, %v5130_v41  ;;  %v5131_v22 = vpack.c.bf16 %v2815_v42, %v2815_v42  ;;  %v2966_v51 = vshrl.u32 %v2932_v47, 16  ;;  %v4991_v53 = vcombine.low %v6337_v1, %v2932_v47  ;;  %v2969_v57 = vshll.u32 %v2932_v47, 16  ;;  %v2938_v1 = vld [vmem:[#allocation3 + $0x34] sm:$0xf] }
 0x363   : > { %2859 = vst.msk [vmem:[#allocation3 + $0x64] sm:$0xf] %vm2851_vm13, %v5133_v46  ;;  %v2934_v55 = vld [vmem:[#allocation3 + $0x1c] sm:$0xf]  ;;  %v3248_v7 = vld [vmem:[#allocation3 + $0x10] sm:$0xf] }
 0x364   : > { %2857 = vst.msk [vmem:[#allocation3 + $0x4c] sm:$0xf] %vm2851_vm13, %v5131_v22  ;;  %5382 = vmatprep.mubr.msk.bf16.mxu0 %vm2698_vm12, %v4991_v53  ;;  %v4992_v58 = vcombine.low %v2934_v55, %v2936_v54  ;;  %v2968_v59 = vrot.slane %v2966_v51, 7  ;;  %v2979_v61 = vshrl.u32 %v2934_v55, 16  ;;  %v3005_v15 = vshrl.u32 %v2938_v1, 16 }
 0x365   : > { %v2994_v23 = vrot.slane %v2992_v63, 7  ;;  %v3280_v25 = vshrl.u32 %v3248_v7, 16  ;;  %v3283_v31 = vshll.u32 %v3248_v7, 16  ;;  %v2982_v17 = vshll.u32 %v2934_v55, 16  ;;  %v3250_v40 = vld [vmem:[#allocation3 + $0x1c] sm:$0xf] }
 0x366   : > { %5383 = vmatmul.mubr.msk.bf16.vlgmr.msra.gmra.mrb[20].mxu0 %vm2698_vm12, %v4992_v58  ;;  %v2971_v6 = vor.u32 %v2969_v57, %v2968_v59  ;;  %v2981_v21 = vrot.slane %v2979_v61, 7  ;;  %v3007_v37 = vrot.slane %v3005_v15, 7  ;;  %v3008_v45 = vshll.u32 %v2938_v1, 16  ;;  %v3252_v49 = vld [vmem:[#allocation3 + $0x28] sm:$0xf] }
 0x367   : > { %5391 = vmatpush3.bf16.msra.mxu0 %v3179_v43  ;;  %v2997_v44 = vor.u32 %v2995_v11, %v2994_v23  ;;  %v3282_v47 = vrot.slane %v3280_v25, 4  ;;  %v3285_v48 = vrot.slane %v3283_v31, 5  ;;  %v6391_v13 = vrot.slane %v3272_v34, 4  ;;  %v3254_v59 = vld [vmem:[#allocation3 + $0x34] sm:$0xf] }
 0x368   : > { %5614 = vmatprep.subr.msk.bf16.mxu0 %vm2711_vm11, %v5007_v3  ;;  %v2972_v29 = vsel %vm6111_vm10, %v4983_v5, %v2971_v6  ;;  %v6384_v33 = vld [vmem:[#allocation3 + $0x58] sm:$0xf]  ;;  %v2984_v43 = vor.u32 %v2982_v17, %v2981_v21  ;;  %v6393_v22 = vrot.slane %v3289_v19, 5  ;;  %v3294_v51 = vshrl.u32 %v3250_v40, 16  ;;  %v3251_v5 = vld [vmem:[#allocation3 + $0x20] sm:$0x1] }
 0x369   : > { %v2940_v20 = vld [vmem:[#allocation3 + $0x40] sm:$0xf]  ;;  %v4999_v42 = vcombine.low %v2959_v4, %v2972_v29  ;;  %v3044_v50 = vshrl.u32 %v6384_v33, 16  ;;  %v3404_v54 = vsel %vm2711_vm11, %v5007_v3, 0  ;;  %v3010_v30 = vor.u32 %v3008_v45, %v3007_v37  ;;  %v3253_v21 = vld [vmem:[#allocation3 + $0x2c] sm:$0x1] }
 0x36a   : > { %v3018_v26 = vshrl.u32 %v2940_v20, 16  ;;  %v4993_v27 = vcombine.low %v2938_v1, %v2940_v20  ;;  %v3021_v35 = vshll.u32 %v2940_v20, 16  ;;  %v3256_v53 = vld [vmem:[#allocation3 + $0x40] sm:$0xf]  ;;  %v4988_v55 = vrot.slane %v3026_v24, 11 }
 0x36b   : > { %v2942_v32 = vld [vmem:[#allocation3 + $0x4c] sm:$0xf]  ;;  %v3297_v0 = vshll.u32 %v3250_v40, 16  ;;  %v2985_v28 = vsel %vm6111_vm10, %v6371_v9, %v2984_v43  ;;  %v2998_v56 = vsel %vm6111_vm10, %v6345_v39, %v2997_v44  ;;  %v3308_v58 = vshrl.u32 %v3252_v49, 16  ;;  %v3260_v37 = vld [vmem:[#allocation3 + $0x58] sm:$0xf] }
 0x36c   : > { %5386 = vmatprep.mubr.msk.bf16.mxu0 %vm2698_vm12, %v4993_v27  ;;  %v4994_v36 = vcombine.low %v2942_v32, %v6384_v33  ;;  %v3020_v38 = vrot.slane %v3018_v26, 7  ;;  %v3031_v41 = vshrl.u32 %v2942_v32, 16  ;;  %v3286_v61 = vor.u32 %v3285_v48, %v3282_v47  ;;  %v6418_v20 = vld [vmem:[%s6689_s11 + $0xc] sm:$0xf] }
 0x36d   : > { %v3336_v63 = vshrl.u32 %v3256_v53, 16  ;;  %v3339_v1 = vshll.u32 %v3256_v53, 16  ;;  %v3034_v3 = vshll.u32 %v2942_v32, 16  ;;  %v3046_v4 = vrot.slane %v3044_v50, 7  ;;  %v3258_v27 = vld [vmem:[#allocation3 + $0x4c] sm:$0xf] }
 0x36e   : > { %5387 = vmatmul.mubr.msk.bf16.gmra.mrb[24].mxu0 %vm2698_vm12, %v4994_v36  ;;  %v3023_v46 = vor.u32 %v3021_v35, %v3020_v38  ;;  %v3033_v57 = vrot.slane %v3031_v41, 7  ;;  %v3296_v6 = vrot.slane %v3294_v51, 4  ;;  %v3311_v52 = vshll.u32 %v3252_v49, 16  ;;  %v3257_v32 = vld [vmem:[#allocation3 + $0x44] sm:$0x1] }
 0x36f   : > { %5392 = vmatprep.mubr.msk.bf16.mxu0 %vm2698_vm12, %v4999_v42  ;;  %v5000_v7 = vcombine.low %v2985_v28, %v2998_v56  ;;  %v3011_v39 = vsel %vm6111_vm10, %v6373_v10, %v3010_v30  ;;  %v3322_v8 = vshrl.u32 %v3254_v59, 16  ;;  %v3325_v9 = vshll.u32 %v3254_v59, 16  ;;  %v3255_v38 = vld [vmem:[#allocation3 + $0x38] sm:$0x1]  ;;  %v3481_v49 = vld [vmem:[#allocation3 + $0x18] sm:$0x8] }
 0x370   : > { %v3024_v60 = vsel %vm6111_vm10, %v6377_v16, %v3023_v46  ;;  %v3047_v14 = vshll.u32 %v6384_v33, 16  ;;  %v3036_v19 = vor.u32 %v3034_v3, %v3033_v57  ;;  %v3299_v23 = vrot.slane %v3297_v0, 5  ;;  %v6437_v50 = vld [vmem:[#allocation3 + $0x1c] sm:$0xf]  ;;  %v3259_v30 = vld [vmem:[#allocation3 + $0x50] sm:$0x1] }
 0x371   : > { %v5001_v15 = vcombine.low %v3011_v39, %v3024_v60  ;;  %v3287_v10 = vrot.slane %v3286_v61, 4  ;;  %v3303_v24 = vshll.u32 %v3251_v5, 16  ;;  %v3338_v25 = vrot.slane %v3336_v63, 4  ;;  %v6439_v56 = vld [vmem:[#allocation3 + $0x10] sm:$0xf] }
 0x372   : > { %v3341_v26 = vrot.slane %v3339_v1, 5  ;;  %v4989_v29 = vrot.slane %v3039_v12, 11  ;;  %v3049_v31 = vor.u32 %v3047_v14, %v3046_v4  ;;  %v3310_v17 = vrot.slane %v3308_v58, 4  ;;  %v3479_v59 = vld [vmem:[#allocation3 + $0xc] sm:$0x8] }
 0x373   : > { %v3313_v11 = vrot.slane %v3311_v52, 5  ;;  %v3278_v33 = vsel %vm6411_vm5, %v6391_v13, %v6379_v18  ;;  %v3317_v34 = vshll.u32 %v3253_v21, 16  ;;  %v3324_v35 = vrot.slane %v3322_v8, 4  ;;  %v3261_v1 = vld [vmem:[#allocation3 + $0x5c] sm:$0x1] }
 0x374   : > { %v3327_v36 = vrot.slane %v3325_v9, 5  ;;  %v3037_v2 = vsel %vm6111_vm10, %v4988_v55, %v3036_v19  ;;  %v3300_v12 = vor.u32 %v3299_v23, %v3296_v6  ;;  %v3350_v40 = vshrl.u32 %v3258_v27, 16  ;;  %v6449_v23 = vld [vmem:[#allocation3 + $0x34] sm:$0xf] }
 0x375   : > { %v3353_v41 = vshll.u32 %v3258_v27, 16  ;;  %v3292_v42 = vsel %vm6411_vm5, %v3287_v10, %v6393_v22  ;;  %v3305_v43 = vrot.slane %v3303_v24, 5  ;;  %v3342_v18 = vor.u32 %v3341_v26, %v3338_v25  ;;  %v3485_v27 = vld [vmem:[#allocation3 + $0x30] sm:$0x8] }
 0x376   : > { %5393 = vmatmul.mubr.msk.bf16.vlgmr.msra.gmra.mrb[20].mxu0 %vm2698_vm12, %v5000_v7  ;;  %v3345_v44 = vshll.u32 %v3257_v32, 16  ;;  %v3050_v45 = vsel %vm6111_vm10, %v4989_v29, %v3049_v31  ;;  %v3314_v46 = vor.u32 %v3313_v11, %v3310_v17  ;;  %v3364_v47 = vshrl.u32 %v3260_v37, 16  ;;  %v6455_v29 = vld [vmem:[#allocation3 + $0x4c] sm:$0xf] }
 0x377   : > { %5401 = vmatpush3.bf16.msra.mxu0 %v3404_v54  ;;  %5396 = vmatprep.mubr.msk.bf16.mxu0 %vm2698_vm12, %v5001_v15  ;;  %v3367_v48 = vshll.u32 %v3260_v37, 16  ;;  %v5002_v13 = vcombine.low %v3037_v2, %v3050_v45  ;;  %v3319_v51 = vrot.slane %v3317_v34, 5  ;;  %v3328_v53 = vor.u32 %v3327_v36, %v3324_v35  ;;  %v6466_v37 = vld [vmem:[#allocation3 + $0x40] sm:$0xf] }
 0x378   : > { %5615 = vmatprep.subr.msk.bf16.mxu0 %vm2711_vm11, %v6418_v20  ;;  %v3331_v54 = vshll.u32 %v3255_v38, 16  ;;  %v5008_v55 = vcombine.low %v3278_v33, %v3292_v42  ;;  %v3301_v0 = vrot.slane %v3300_v12, 4  ;;  %v3352_v22 = vrot.slane %v3350_v40, 4  ;;  %v6460_v33 = vld [vmem:[#allocation3 + $0x28] sm:$0xf] }
 0x379   : > { %v3355_v28 = vrot.slane %v3353_v41, 5  ;;  %v3343_v57 = vrot.slane %v3342_v18, 4  ;;  %v3347_v58 = vrot.slane %v3345_v44, 5  ;;  %v3509_v60 = vshrl.u32 %v3481_v49, 16  ;;  %v3483_v38 = vld [vmem:[#allocation3 + $0x24] sm:$0x8] }
 0x37a   : > { %v3514_v61 = vshrl.u32 %v6437_v50, 16  ;;  %v3315_v63 = vrot.slane %v3314_v46, 4  ;;  %v3359_v3 = vshll.u32 %v3259_v30, 16  ;;  %v3366_v4 = vrot.slane %v3364_v47, 4  ;;  %v3489_v44 = vld [vmem:[#allocation3 + $0x48] sm:$0x8] }
 0x37b   : > { %v3369_v5 = vrot.slane %v3367_v48, 5  ;;  %v3329_v6 = vrot.slane %v3328_v53, 4  ;;  %v3333_v52 = vrot.slane %v3331_v54, 5  ;;  %v3501_v7 = vshrl.u32 %v6439_v56, 16  ;;  %v3487_v47 = vld [vmem:[#allocation3 + $0x3c] sm:$0x8] }
 0x37c   : > { %v3306_v39 = vsel %vm6411_vm5, %v3301_v0, %v3305_v43  ;;  %v3356_v8 = vor.u32 %v3355_v28, %v3352_v22  ;;  %v3496_v9 = vshrl.u32 %v3479_v59, 16  ;;  %v3348_v14 = vsel %vm6411_vm5, %v3343_v57, %v3347_v58  ;;  %v6479_v0 = vld [vmem:[#allocation3 + $0x64] sm:$0xf] }
 0x37d   : > { %v3373_v15 = vshll.u32 %v3261_v1, 16  ;;  %v5017_v19 = vrot.slane %v3509_v60, 11  ;;  %v3516_v21 = vrot.slane %v3514_v61, 7  ;;  %v3320_v10 = vsel %vm6411_vm5, %v3315_v63, %v3319_v51  ;;  %v6487_v1 = vld [vmem:[#allocation3 + $0x58] sm:$0xf] }
 0x37e   : > { %5397 = vmatmul.mubr.msk.bf16.gmra.mrb[24].mxu0 %vm2698_vm12, %v5002_v13  ;;  %v3626_v24 = vsel %vm2711_vm11, %v6418_v20, 0  ;;  %v3361_v25 = vrot.slane %v3359_v3, 5  ;;  %v3370_v26 = vor.u32 %v3369_v5, %v3366_v4  ;;  %v5009_v31 = vcombine.low %v3306_v39, %v3320_v10  ;;  %v5033_v20 = vld [vmem:[%s6689_s11 + $0x10] sm:$0xf]  ;;  %v3491_v10 = vld [vmem:[#allocation3 + $0x54] sm:$0x8] }
 0x37f   : > { %5402 = vmatprep.mubr.msk.bf16.mxu0 %vm2698_vm12, %v5008_v55  ;;  %v3334_v17 = vsel %vm6411_vm5, %v3329_v6, %v3333_v52  ;;  %v3503_v11 = vrot.slane %v3501_v7, 7  ;;  %v3517_v32 = vshll.u32 %v6437_v50, 16  ;;  %v3357_v35 = vrot.slane %v3356_v8, 4  ;;  %v3493_v8 = vld [vmem:[#allocation3 + $0x60] sm:$0x8] }
 0x380   : > { %v5010_v34 = vcombine.low %v3334_v17, %v3348_v14  ;;  %v3540_v36 = vshrl.u32 %v6449_v23, 16  ;;  %v3504_v2 = vshll.u32 %v6439_v56, 16  ;;  %v3535_v40 = vshrl.u32 %v3485_v27, 16 }
 0x381   : > { %v3519_v12 = vor.u32 %v3517_v32, %v3516_v21  ;;  %v3566_v41 = vshrl.u32 %v6455_v29, 16  ;;  %v3371_v42 = vrot.slane %v3370_v26, 4  ;;  %v3375_v43 = vrot.slane %v3373_v15, 5 }
 0x382   : > { %v3527_v18 = vshrl.u32 %v6460_v33, 16  ;;  %v5016_v45 = vrot.slane %v3496_v9, 11  ;;  %v3506_v46 = vor.u32 %v3504_v2, %v3503_v11  ;;  %v3553_v48 = vshrl.u32 %v6466_v37, 16 }
 0x383   : > { %v3362_v49 = vsel %vm6411_vm5, %v3357_v35, %v3361_v25  ;;  %v3522_v13 = vshrl.u32 %v3483_v38, 16  ;;  %v3542_v51 = vrot.slane %v3540_v36, 7  ;;  %v3520_v53 = vsel %vm6111_vm10, %v5017_v19, %v3519_v12 }
 0x384   : > { %v5019_v54 = vrot.slane %v3535_v40, 11  ;;  %v3561_v30 = vshrl.u32 %v3489_v44, 16  ;;  %v3568_v55 = vrot.slane %v3566_v41, 7  ;;  %v3376_v22 = vsel %vm6411_vm5, %v3371_v42, %v3375_v43  ;;  %v5042_v41 = vld [vmem:[%s6689_s11 + $0x14] sm:$0xf] }
 0x385   : > { %v3529_v28 = vrot.slane %v3527_v18, 7  ;;  %v3543_v57 = vshll.u32 %v6449_v23, 16  ;;  %v3548_v58 = vshrl.u32 %v3487_v47, 16  ;;  %v5011_v59 = vcombine.low %v3362_v49, %v3376_v22  ;;  %v3811_v44 = vld [vmem:[#allocation3 + $0x10] sm:$0xf] }
 0x386   : > { %5403 = vmatmul.mubr.msk.bf16.vlgmr.msra.gmra.mrb[20].mxu0 %vm2698_vm12, %v5009_v31  ;;  %v3507_v60 = vsel %vm6111_vm10, %v5016_v45, %v3506_v46  ;;  %v3555_v61 = vrot.slane %v3553_v48, 7  ;;  %v3569_v63 = vshll.u32 %v6455_v29, 16  ;;  %v3530_v4 = vshll.u32 %v6460_v33, 16  ;;  %v3821_v22 = vld [vmem:[#allocation3 + $0x4c] sm:$0xf] }
 0x387   : > { %5411 = vmatpush3.bf16.msra.mxu0 %v3626_v24  ;;  %5406 = vmatprep.mubr.msk.bf16.mxu0 %vm2698_vm12, %v5010_v34  ;;  %v5025_v3 = vcombine.low %v3507_v60, %v3520_v53  ;;  %v3545_v5 = vor.u32 %v3543_v57, %v3542_v51  ;;  %v3592_v6 = vshrl.u32 %v6479_v0, 16  ;;  %v3556_v52 = vshll.u32 %v6466_v37, 16 }
 0x388   : > { %5616 = vmatprep.subr.msk.bf16.mxu0 %vm2711_vm11, %v5033_v20  ;;  %v5021_v7 = vrot.slane %v3561_v30, 11  ;;  %v3571_v39 = vor.u32 %v3569_v63, %v3568_v55  ;;  %v5018_v9 = vrot.slane %v3522_v13, 11  ;;  %v3532_v14 = vor.u32 %v3530_v4, %v3529_v28  ;;  %v3817_v30 = vld [vmem:[#allocation3 + $0x34] sm:$0xf]  ;;  %v3814_v55 = vld [vmem:[#allocation3 + $0x20] sm:$0x1] }
 0x389   : > { %v3579_v15 = vshrl.u32 %v6487_v1, 16  ;;  %v5020_v19 = vrot.slane %v3548_v58, 11  ;;  %v3558_v21 = vor.u32 %v3556_v52, %v3555_v61  ;;  %v3546_v24 = vsel %vm6111_vm10, %v5019_v54, %v3545_v5  ;;  %v3812_v28 = vld [vmem:[#allocation3 + $0x14] sm:$0x1]  ;;  %v3819_v63 = vld [vmem:[#allocation3 + $0x40] sm:$0xf] }
 0x38a   : > { %v3587_v25 = vshrl.u32 %v3493_v8, 16  ;;  %v3594_v26 = vrot.slane %v3592_v6, 7  ;;  %v3572_v27 = vsel %vm6111_vm10, %v5021_v7, %v3571_v39  ;;  %v3533_v31 = vsel %vm6111_vm10, %v5018_v9, %v3532_v14  ;;  %v3816_v9 = vld [vmem:[#allocation3 + $0x2c] sm:$0x1]  ;;  %v3818_v14 = vld [vmem:[#allocation3 + $0x38] sm:$0x1] }
 0x38b   : > { %v3574_v17 = vshrl.u32 %v3491_v10, 16  ;;  %v3581_v11 = vrot.slane %v3579_v15, 7  ;;  %v3595_v32 = vshll.u32 %v6479_v0, 16  ;;  %v5026_v34 = vcombine.low %v3533_v31, %v3546_v24  ;;  %v6528_v10 = vld [vmem:[%s6689_s11 + $0x18] sm:$0xf] }
 0x38c   : > { %v3736_v35 = vsel %vm2711_vm11, %v5033_v20, 0  ;;  %v3559_v36 = vsel %vm6111_vm10, %v5020_v19, %v3558_v21  ;;  %v3582_v12 = vshll.u32 %v6487_v1, 16  ;;  %v5023_v38 = vrot.slane %v3587_v25, 11  ;;  %v3813_v20 = vld [vmem:[#allocation3 + $0x1c] sm:$0xf] }
 0x38d   : > { %v5027_v2 = vcombine.low %v3559_v36, %v3572_v27  ;;  %v3597_v40 = vor.u32 %v3595_v32, %v3594_v26  ;;  %v5022_v42 = vrot.slane %v3574_v17, 11  ;;  %v3842_v45 = vshrl.u32 %v3813_v20, 16  ;;  %v4042_v26 = vld [vmem:[#allocation3 + $0x18] sm:$0x8]  ;;  %v3825_v17 = vld [vmem:[#allocation3 + $0x64] sm:$0xf] }
 0x38e   : > { %5407 = vmatmul.mubr.msk.bf16.gmra.mrb[24].mxu0 %vm2698_vm12, %v5011_v59  ;;  %v3584_v43 = vor.u32 %v3582_v12, %v3581_v11  ;;  %v3845_v46 = vshll.u32 %v3813_v20, 16  ;;  %v3828_v49 = vshrl.u32 %v3811_v44, 16  ;;  %v3831_v13 = vshll.u32 %v3811_v44, 16  ;;  %v3815_v59 = vld [vmem:[#allocation3 + $0x28] sm:$0xf] }
 0x38f   : > { %5412 = vmatprep.mubr.msk.bf16.mxu0 %vm2698_vm12, %v5025_v3  ;;  %v3598_v18 = vsel %vm6111_vm10, %v5023_v38, %v3597_v40  ;;  %v5034_v51 = vcombine.low %v6439_v56, %v6437_v50  ;;  %v3844_v53 = vrot.slane %v3842_v45, 4  ;;  %v3870_v60 = vshrl.u32 %v3817_v30, 16  ;;  %v3822_v32 = vld [vmem:[#allocation3 + $0x50] sm:$0x1]  ;;  %v3823_v12 = vld [vmem:[#allocation3 + $0x58] sm:$0xf] }
 0x390   : > { %v3585_v47 = vsel %vm6111_vm10, %v5022_v42, %v3584_v43  ;;  %v3847_v54 = vrot.slane %v3845_v46, 5  ;;  %v3830_v57 = vrot.slane %v3828_v49, 4  ;;  %v3833_v58 = vrot.slane %v3831_v13, 5  ;;  %v6536_v13 = vld [vmem:[#allocation3 + $0x1c] sm:$0xf] }
 0x391   : > { %v5028_v48 = vcombine.low %v3585_v47, %v3598_v18  ;;  %v3873_v61 = vshll.u32 %v3817_v30, 16  ;;  %v3851_v4 = vshll.u32 %v3814_v55, 16  ;;  %v3898_v5 = vshrl.u32 %v3821_v22, 16  ;;  %v3826_v55 = vld [vmem:[#allocation3 + $0x68] sm:$0x1] }
 0x392   : > { %v3848_v3 = vor.u32 %v3847_v54, %v3844_v53  ;;  %v3901_v50 = vshll.u32 %v3821_v22, 16  ;;  %v3966_v56 = vsel %vm2711_vm11, %v5042_v41, 0  ;;  %v3837_v6 = vshll.u32 %v3812_v28, 16 }
 0x393   : > { %v3856_v52 = vshrl.u32 %v3815_v59, 16  ;;  %v3859_v7 = vshll.u32 %v3815_v59, 16  ;;  %v5035_v39 = vcombine.low %v6460_v33, %v6449_v23  ;;  %v3834_v8 = vor.u32 %v3833_v58, %v3830_v57  ;;  %v6542_v59 = vld [vmem:[#allocation3 + $0x28] sm:$0xf] }
 0x394   : > { %v3884_v15 = vshrl.u32 %v3819_v63, 16  ;;  %v3887_v19 = vshll.u32 %v3819_v63, 16  ;;  %v5036_v21 = vcombine.low %v6466_v37, %v6455_v29  ;;  %v3872_v24 = vrot.slane %v3870_v60, 4 }
 0x395   : > { %v3875_v25 = vrot.slane %v3873_v61, 5  ;;  %v3849_v27 = vrot.slane %v3848_v3, 4  ;;  %v3853_v23 = vrot.slane %v3851_v4, 5  ;;  %v3900_v33 = vrot.slane %v3898_v5, 4  ;;  %v4044_v3 = vld [vmem:[#allocation3 + $0x24] sm:$0x8] }
 0x396   : > { %5413 = vmatmul.mubr.msk.bf16.vlgmr.msra.gmra.mrb[20].mxu0 %vm2698_vm12, %v5026_v34  ;;  %v3903_v31 = vrot.slane %v3901_v50, 5  ;;  %v3858_v11 = vrot.slane %v3856_v52, 4  ;;  %v3861_v29 = vrot.slane %v3859_v7, 5  ;;  %v3879_v37 = vshll.u32 %v3818_v14, 16  ;;  %v3824_v4 = vld [vmem:[#allocation3 + $0x5c] sm:$0x1] }
 0x397   : > { %5421 = vmatpush3.bf16.msra.mxu0 %v3736_v35  ;;  %5416 = vmatprep.mubr.msk.bf16.mxu0 %vm2698_vm12, %v5027_v2  ;;  %v3835_v34 = vrot.slane %v3834_v8, 4  ;;  %v3839_v35 = vrot.slane %v3837_v6, 5  ;;  %v3886_v36 = vrot.slane %v3884_v15, 4  ;;  %v3889_v2 = vrot.slane %v3887_v19, 5 }
 0x398   : > { %5617 = vmatprep.subr.msk.bf16.mxu0 %vm2711_vm11, %v5042_v41  ;;  %v3865_v38 = vshll.u32 %v3816_v9, 16  ;;  %v3876_v40 = vor.u32 %v3875_v25, %v3872_v24  ;;  %v3820_v41 = vld [vmem:[#allocation3 + $0x44] sm:$0x1]  ;;  %v3926_v42 = vshrl.u32 %v3825_v17, 16  ;;  %v3929_v43 = vshll.u32 %v3825_v17, 16 }
 0x399   : > { %v3854_v20 = vsel %vm6411_vm5, %v3849_v27, %v3853_v23  ;;  %v3904_v18 = vor.u32 %v3903_v31, %v3900_v33  ;;  %v3907_v44 = vshll.u32 %v3822_v32, 16  ;;  %v4059_v45 = vshrl.u32 %v4042_v26, 16  ;;  %v6552_v24 = vld [vmem:[#allocation3 + $0x40] sm:$0xf]  ;;  %v6558_v33 = vld [vmem:[#allocation3 + $0x4c] sm:$0xf] }
 0x39a   : > { %v3862_v46 = vor.u32 %v3861_v29, %v3858_v11  ;;  %v3881_v47 = vrot.slane %v3879_v37, 5  ;;  %v3915_v49 = vshll.u32 %v3823_v12, 16  ;;  %v3840_v53 = vsel %vm6411_vm5, %v3835_v34, %v3839_v35  ;;  %v4046_v37 = vld [vmem:[#allocation3 + $0x30] sm:$0x8]  ;;  %v6563_v32 = vld [vmem:[#allocation3 + $0x34] sm:$0xf] }
 0x39b   : > { %v3890_v54 = vor.u32 %v3889_v2, %v3886_v36  ;;  %v3893_v30 = vshll.u32 %v3820_v41, 16  ;;  %v5043_v22 = vcombine.low %v3840_v53, %v3854_v20  ;;  %v3877_v28 = vrot.slane %v3876_v40, 4  ;;  %v4048_v34 = vld [vmem:[#allocation3 + $0x3c] sm:$0x8]  ;;  %v4052_v41 = vld [vmem:[#allocation3 + $0x54] sm:$0x8] }
 0x39c   : > { %v3928_v57 = vrot.slane %v3926_v42, 4  ;;  %v3931_v58 = vrot.slane %v3929_v43, 5  ;;  %v3867_v60 = vrot.slane %v3865_v38, 5  ;;  %v3905_v61 = vrot.slane %v3904_v18, 4  ;;  %v6574_v43 = vld [vmem:[#allocation3 + $0x70] sm:$0xf] }
 0x39d   : > { %v3909_v63 = vrot.slane %v3907_v44, 5  ;;  %v3917_v50 = vrot.slane %v3915_v49, 5  ;;  %v3891_v6 = vrot.slane %v3890_v54, 4  ;;  %v3895_v52 = vrot.slane %v3893_v30, 5 }
 0x39e   : > { %5417 = vmatmul.mubr.msk.bf16.gmra.mrb[24].mxu0 %vm2698_vm12, %v5028_v48  ;;  %v3912_v48 = vshrl.u32 %v3823_v12, 16  ;;  %v4077_v7 = vshrl.u32 %v6542_v59, 16  ;;  %v3932_v8 = vor.u32 %v3931_v58, %v3928_v57  ;;  %v5051_v9 = vrot.slane %v4059_v45, 11  ;;  %v6569_v12 = vld [vmem:[#allocation3 + $0x58] sm:$0xf] }
 0x39f   : > { %5422 = vmatprep.mubr.msk.bf16.mxu0 %vm2698_vm12, %v5034_v51  ;;  %v5037_v51 = vcombine.low %v6487_v1, %v6479_v0  ;;  %v4064_v0 = vshrl.u32 %v6536_v13, 16  ;;  %v3863_v1 = vrot.slane %v3862_v46, 4  ;;  %v3910_v14 = vsel %vm6411_vm5, %v3905_v61, %v3909_v63  ;;  %v4050_v46 = vld [vmem:[#allocation3 + $0x48] sm:$0x8]  ;;  %v6584_v57 = vld [vmem:[#allocation3 + $0x64] sm:$0xf] }
 0x3a0   : > { %v3914_v5 = vrot.slane %v3912_v48, 4  ;;  %v3921_v15 = vshll.u32 %v3824_v4, 16  ;;  %v4189_v26 = vsel %vm2711_vm11, %v6528_v10, 0  ;;  %v3896_v17 = vsel %vm6411_vm5, %v3891_v6, %v3895_v52  ;;  %v4054_v52 = vld [vmem:[#allocation3 + $0x60] sm:$0x8] }
 0x3a1   : > { %v4066_v19 = vrot.slane %v4064_v0, 7  ;;  %v3868_v25 = vsel %vm6411_vm5, %v3863_v1, %v3867_v60  ;;  %v4067_v11 = vshll.u32 %v6536_v13, 16  ;;  %v4079_v29 = vrot.slane %v4077_v7, 7  ;;  %v4056_v7 = vld [vmem:[#allocation3 + $0x6c] sm:$0x8] }
 0x3a2   : > { %v3918_v27 = vor.u32 %v3917_v50, %v3914_v5  ;;  %v5045_v35 = vcombine.low %v3896_v17, %v3910_v14  ;;  %v3933_v36 = vrot.slane %v3932_v8, 4  ;;  %v4103_v2 = vshrl.u32 %v6552_v24, 16 }
 0x3a3   : > { %v4069_v38 = vor.u32 %v4067_v11, %v4066_v19  ;;  %v4080_v40 = vshll.u32 %v6542_v59, 16  ;;  %v4116_v42 = vshrl.u32 %v6558_v33, 16  ;;  %v3923_v18 = vrot.slane %v3921_v15, 5 }
 0x3a4   : > { %v3919_v20 = vrot.slane %v3918_v27, 4  ;;  %v4090_v44 = vshrl.u32 %v6563_v32, 16  ;;  %v4098_v45 = vshrl.u32 %v4048_v34, 16  ;;  %v4129_v49 = vshrl.u32 %v6569_v12, 16 }
 0x3a5   : > { %v4082_v48 = vor.u32 %v4080_v40, %v4079_v29  ;;  %v4085_v53 = vshrl.u32 %v4046_v37, 16  ;;  %v4105_v54 = vrot.slane %v4103_v2, 7  ;;  %v4124_v30 = vshrl.u32 %v4052_v41, 16 }
 0x3a6   : > { %5423 = vmatmul.mubr.msk.bf16.vlgmr.msra.gmra.mrb[20].mxu0 %vm2698_vm12, %v5035_v39  ;;  %v3882_v39 = vsel %vm6411_vm5, %v3877_v28, %v3881_v47  ;;  %v4118_v28 = vrot.slane %v4116_v42, 7  ;;  %v4155_v58 = vshrl.u32 %v6574_v43, 16  ;;  %v3924_v60 = vsel %vm6411_vm5, %v3919_v20, %v3923_v18  ;;  %v5077_v18 = vld [vmem:[%s6689_s11 + $0x20] sm:$0xf] }
 0x3a7   : > { %5431 = vmatpush3.bf16.msra.mxu0 %v3966_v56  ;;  %5426 = vmatprep.mubr.msk.bf16.mxu0 %vm2698_vm12, %v5036_v21  ;;  %v3935_v56 = vshll.u32 %v3826_v55, 16  ;;  %v4072_v21 = vshrl.u32 %v4044_v3, 16  ;;  %v5044_v31 = vcombine.low %v3868_v25, %v3882_v39  ;;  %v4070_v55 = vsel %vm6111_vm10, %v5051_v9, %v4069_v38 }
 0x3a8   : > { %5618 = vmatprep.subr.msk.bf16.mxu0 %vm2711_vm11, %v6528_v10  ;;  %v5068_v10 = vld [vmem:[%s6689_s11 + $0x1c] sm:$0xf]  ;;  %v4092_v61 = vrot.slane %v4090_v44, 7  ;;  %v5054_v63 = vrot.slane %v4098_v45, 11  ;;  %v4106_v3 = vshll.u32 %v6552_v24, 16  ;;  %v4119_v4 = vshll.u32 %v6558_v33, 16 }
 0x3a9   : > { %v3937_v23 = vrot.slane %v3935_v56, 5  ;;  %v5052_v47 = vrot.slane %v4072_v21, 11  ;;  %v4131_v5 = vrot.slane %v4129_v49, 7  ;;  %v4093_v56 = vshll.u32 %v6563_v32, 16  ;;  %v4374_v44 = vld [vmem:[#allocation3 + $0x1c] sm:$0xf] }
 0x3aa   : > { %v4108_v6 = vor.u32 %v4106_v3, %v4105_v54  ;;  %v4142_v39 = vshrl.u32 %v6584_v57, 16  ;;  %v4121_v9 = vor.u32 %v4119_v4, %v4118_v28  ;;  %v4132_v14 = vshll.u32 %v6569_v12, 16  ;;  %v4380_v28 = vld [vmem:[#allocation3 + $0x40] sm:$0xf]  ;;  %v4378_v3 = vld [vmem:[#allocation3 + $0x34] sm:$0xf] }
 0x3ab   : > { %v4083_v1 = vsel %vm6111_vm10, %v5052_v47, %v4082_v48  ;;  %v5053_v15 = vrot.slane %v4085_v53, 11  ;;  %v4095_v19 = vor.u32 %v4093_v56, %v4092_v61  ;;  %v5056_v21 = vrot.slane %v4124_v30, 11  ;;  %v4384_v4 = vld [vmem:[#allocation3 + $0x58] sm:$0xf] }
 0x3ac   : > { %v5060_v50 = vcombine.low %v4070_v55, %v4083_v1  ;;  %v4134_v25 = vor.u32 %v4132_v14, %v4131_v5  ;;  %v4150_v27 = vshrl.u32 %v4056_v7, 16  ;;  %v4157_v17 = vrot.slane %v4155_v58, 7  ;;  %v4377_v58 = vld [vmem:[#allocation3 + $0x2c] sm:$0x1] }
 0x3ad   : > { %v4158_v11 = vshll.u32 %v6574_v43, 16  ;;  %v4096_v37 = vsel %vm6111_vm10, %v5053_v15, %v4095_v19  ;;  %v4145_v34 = vshll.u32 %v6584_v57, 16  ;;  %v4391_v47 = vshrl.u32 %v4374_v44, 16  ;;  %v4388_v15 = vld [vmem:[#allocation3 + $0x70] sm:$0xf] }
 0x3ae   : > { %5427 = vmatmul.mubr.msk.bf16.gmra.mrb[24].mxu0 %vm2698_vm12, %v5037_v51  ;;  %v3938_v51 = vsel %vm6411_vm5, %v3933_v36, %v3937_v23  ;;  %v4109_v23 = vsel %vm6111_vm10, %v5054_v63, %v4108_v6  ;;  %v4299_v36 = vsel %vm2711_vm11, %v5068_v10, 0  ;;  %v4135_v2 = vsel %vm6111_vm10, %v5056_v21, %v4134_v25  ;;  %v4379_v21 = vld [vmem:[#allocation3 + $0x38] sm:$0x1]  ;;  %v4381_v25 = vld [vmem:[#allocation3 + $0x44] sm:$0x1] }
 0x3af   : > { %5432 = vmatprep.mubr.msk.bf16.mxu0 %vm2698_vm12, %v5043_v22  ;;  %v4111_v22 = vshrl.u32 %v4050_v46, 16  ;;  %v5046_v0 = vcombine.low %v3924_v60, %v3938_v51  ;;  %v5058_v42 = vrot.slane %v4150_v27, 11  ;;  %v4160_v20 = vor.u32 %v4158_v11, %v4157_v17  ;;  %v4376_v46 = vld [vmem:[#allocation3 + $0x28] sm:$0xf]  ;;  %v4375_v51 = vld [vmem:[#allocation3 + $0x20] sm:$0x1] }
 0x3b0   : > { %v4394_v48 = vshll.u32 %v4374_v44, 16  ;;  %v4405_v53 = vshrl.u32 %v4376_v46, 16  ;;  %v4408_v54 = vshll.u32 %v4376_v46, 16  ;;  %v5069_v30 = vcombine.low %v6536_v13, %v6542_v59  ;;  %v4382_v60 = vld [vmem:[#allocation3 + $0x4c] sm:$0xf] }
 0x3b1   : > { %v5055_v8 = vrot.slane %v4111_v22, 11  ;;  %v4161_v45 = vsel %vm6111_vm10, %v5058_v42, %v4160_v20  ;;  %v4393_v55 = vrot.slane %v4391_v47, 4  ;;  %v4400_v62 = vshll.u32 %v4375_v51, 16 }
 0x3b2   : > { %v4396_v22 = vrot.slane %v4394_v48, 5  ;;  %v4407_v61 = vrot.slane %v4405_v53, 4  ;;  %v4410_v63 = vrot.slane %v4408_v54, 5  ;;  %v4436_v1 = vshll.u32 %v4380_v28, 16 }
 0x3b3   : > { %v4122_v29 = vsel %vm6111_vm10, %v5055_v8, %v4121_v9  ;;  %v4447_v56 = vshrl.u32 %v4382_v60, 16  ;;  %v4450_v13 = vshll.u32 %v4382_v60, 16  ;;  %v4529_v59 = vsel %vm2711_vm11, %v5077_v18, 0 }
 0x3b4   : > { %v5062_v40 = vcombine.low %v4122_v29, %v4135_v2  ;;  %v4397_v5 = vor.u32 %v4396_v22, %v4393_v55  ;;  %v4402_v6 = vrot.slane %v4400_v62, 5  ;;  %v4422_v7 = vshll.u32 %v4378_v3, 16  ;;  %v4386_v29 = vld [vmem:[#allocation3 + $0x64] sm:$0xf]  ;;  %v4387_v22 = vld [vmem:[#allocation3 + $0x68] sm:$0x1] }
 0x3b5   : > { %v4411_v8 = vor.u32 %v4410_v63, %v4407_v61  ;;  %v4461_v9 = vshrl.u32 %v4384_v4, 16  ;;  %v4464_v14 = vshll.u32 %v4384_v4, 16  ;;  %v5071_v19 = vcombine.low %v6558_v33, %v6569_v12  ;;  %v4389_v61 = vld [vmem:[#allocation3 + $0x74] sm:$0x1] }
 0x3b6   : > { %5433 = vmatmul.mubr.msk.bf16.vlgmr.msra.gmra.mrb[20].mxu0 %vm2698_vm12, %v5044_v31  ;;  %v4144_v31 = vrot.slane %v4142_v39, 7  ;;  %v5070_v39 = vcombine.low %v6563_v32, %v6552_v24  ;;  %v4438_v27 = vrot.slane %v4436_v1, 5  ;;  %v4449_v17 = vrot.slane %v4447_v56, 4 }
 0x3b7   : > { %5441 = vmatpush3.bf16.msra.mxu0 %v4189_v26  ;;  %5436 = vmatprep.mubr.msk.bf16.mxu0 %vm2698_vm12, %v5045_v35  ;;  %v4137_v26 = vshrl.u32 %v4054_v52, 16  ;;  %v5061_v35 = vcombine.low %v4096_v37, %v4109_v23  ;;  %v4419_v52 = vshrl.u32 %v4378_v3, 16  ;;  %v4398_v23 = vrot.slane %v4397_v5, 4  ;;  %v4383_v37 = vld [vmem:[#allocation3 + $0x50] sm:$0x1] }
 0x3b8   : > { %5619 = vmatprep.subr.msk.bf16.mxu0 %vm2711_vm11, %v5068_v10  ;;  %v4147_v41 = vor.u32 %v4145_v34, %v4144_v31  ;;  %v4452_v11 = vrot.slane %v4450_v13, 5  ;;  %v4424_v32 = vrot.slane %v4422_v7, 5  ;;  %v4489_v34 = vshrl.u32 %v4388_v15, 16 }
 0x3b9   : > { %v5057_v38 = vrot.slane %v4137_v26, 11  ;;  %v4421_v24 = vrot.slane %v4419_v52, 4  ;;  %v4412_v33 = vrot.slane %v4411_v8, 4  ;;  %v4442_v12 = vshll.u32 %v4381_v25, 16 }
 0x3ba   : > { %v4463_v2 = vrot.slane %v4461_v9, 4  ;;  %v4478_v42 = vshll.u32 %v4386_v29, 16  ;;  %v4403_v20 = vsel %vm6411_vm5, %v4398_v23, %v4402_v6  ;;  %v4453_v44 = vor.u32 %v4452_v11, %v4449_v17 }
 0x3bb   : > { %v4148_v10 = vsel %vm6111_vm10, %v5057_v38, %v4147_v41  ;;  %v4466_v38 = vrot.slane %v4464_v14, 5  ;;  %v4475_v41 = vshrl.u32 %v4386_v29, 16  ;;  %v4491_v47 = vrot.slane %v4489_v34, 4 }
 0x3bc   : > { %v5063_v49 = vcombine.low %v4148_v10, %v4161_v45  ;;  %v4456_v10 = vshll.u32 %v4383_v37, 16  ;;  %v4425_v45 = vor.u32 %v4424_v32, %v4421_v24  ;;  %v4444_v53 = vrot.slane %v4442_v12, 5 }
 0x3bd   : > { %v4467_v54 = vor.u32 %v4466_v38, %v4463_v2  ;;  %v4454_v62 = vrot.slane %v4453_v44, 4 }
 0x3be   : > { %5437 = vmatmul.mubr.msk.bf16.gmra.mrb[24].mxu0 %vm2698_vm12, %v5046_v0  ;;  %v4433_v0 = vshrl.u32 %v4380_v28, 16  ;;  %v4477_v28 = vrot.slane %v4475_v41, 4  ;;  %v4458_v60 = vrot.slane %v4456_v10, 5  ;;  %v4426_v63 = vrot.slane %v4425_v45, 4 }
 0x3bf   : > { %5442 = vmatprep.mubr.msk.bf16.mxu0 %vm2698_vm12, %v5060_v50  ;;  %v4414_v50 = vshll.u32 %v4377_v58, 16  ;;  %v4480_v58 = vrot.slane %v4478_v42, 5 }
 0x3c0   : > { %v4435_v26 = vrot.slane %v4433_v0, 4  ;;  %v4484_v0 = vshll.u32 %v4387_v22, 16  ;;  %v4459_v56 = vsel %vm6411_vm5, %v4454_v62, %v4458_v60 }
 0x3c1   : > { %v4416_v31 = vrot.slane %v4414_v50, 5  ;;  %v4481_v4 = vor.u32 %v4480_v58, %v4477_v28  ;;  %v4498_v50 = vshll.u32 %v4389_v61, 16 }
 0x3c2   : > { %v4486_v52 = vrot.slane %v4484_v0, 5 }
 0x3c3   : > { %v4417_v51 = vsel %vm6411_vm5, %v4412_v33, %v4416_v31  ;;  %v4500_v9 = vrot.slane %v4498_v50, 5 }
 0x3c6   : > { %5443 = vmatmul.mubr.msk.bf16.vlgmr.msra.gmra.mrb[20].mxu0 %vm2698_vm12, %v5061_v35  ;;  %v4492_v35 = vshll.u32 %v4388_v15, 16 }
 0x3c7   : > { %5451 = vmatpush3.bf16.msra.mxu0 %v4299_v36  ;;  %5446 = vmatprep.mubr.msk.bf16.mxu0 %vm2698_vm12, %v5062_v40  ;;  %v4385_v36 = vld [vmem:[#allocation3 + $0x5c] sm:$0x1]  ;;  %v4439_v40 = vor.u32 %v4438_v27, %v4435_v26  ;;  %v5087_v26 = vld [vmem:[%s6709_s17] ss:$0 sm:$0xff] }
 0x3c8   : > { %5620 = vmatprep.subr.msk.bf16.mxu0 %vm2711_vm11, %v5077_v18  ;;  %v4428_v18 = vshll.u32 %v4379_v21, 16  ;;  %v4470_v46 = vshll.u32 %v4385_v36, 16  ;;  %v4494_v48 = vrot.slane %v4492_v35, 5  ;;  %v5086_v21 = vld [vmem:[%s6690_s12] ss:$0 sm:$0xff] }
 0x3c9   : > { %v4440_v55 = vrot.slane %v4439_v40, 4 }
 0x3ca   : > { %v4430_v3 = vrot.slane %v4428_v18, 5  ;;  %v4495_v5 = vor.u32 %v4494_v48, %v4491_v47 }
 0x3cb   : > { %v4445_v1 = vsel %vm6411_vm5, %v4440_v55, %v4444_v53 }
 0x3cc   : > { %v4431_v13 = vsel %vm6411_vm5, %v4426_v63, %v4430_v3  ;;  %v4496_v8 = vrot.slane %v4495_v5, 4 }
 0x3ce   : > { %5447 = vmatmul.mubr.msk.bf16.gmra.mrb[24].mxu0 %vm2698_vm12, %v5063_v49  ;;  %v5072_v49 = vcombine.low %v6584_v57, %v6574_v43  ;;  %v4468_v43 = vrot.slane %v4467_v54, 4  ;;  %v4472_v57 = vrot.slane %v4470_v46, 5  ;;  %v4501_v15 = vsel %vm6411_vm5, %v4496_v8, %v4500_v9 }
 0x3cf   : > { %5452 = vmatprep.mubr.msk.bf16.mxu0 %vm2698_vm12, %v5069_v30  ;;  %v5078_v30 = vcombine.low %v4403_v20, %v4417_v51 }
 0x3d0   : > { %v4473_v6 = vsel %vm6411_vm5, %v4468_v43, %v4472_v57 }
 0x3d1   : > { %v5080_v7 = vcombine.low %v4459_v56, %v4473_v6 }
 0x3d6   : > { %5453 = vmatmul.mubr.msk.bf16.vlgmr.msra.gmra.mrb[20].mxu0 %vm2698_vm12, %v5070_v39  ;;  %v4482_v39 = vrot.slane %v4481_v4, 4 }
 0x3d7   : > { %5461 = vmatpush3.bf16.msra.mxu0 %v4529_v59  ;;  %5456 = vmatprep.mubr.msk.bf16.mxu0 %vm2698_vm12, %v5071_v19  ;;  %v5079_v59 = vcombine.low %v4431_v13, %v4445_v1 }
 0x3d8   : > { %v4487_v14 = vsel %vm6411_vm5, %v4482_v39, %v4486_v52 }
 0x3d9   : > { %v5081_v19 = vcombine.low %v4487_v14, %v4501_v15 }
 0x3de   : > { %5457 = vmatmul.mubr.msk.bf16.gmra.mrb[24].mxu0 %vm2698_vm12, %v5072_v49 }
 0x3df   : > { %5462 = vmatprep.mubr.msk.bf16.mxu0 %vm2698_vm12, %v5078_v30 }
 0x3e6   : > { %5463 = vmatmul.mubr.msk.bf16.vlgmr.msra.gmra.mrb[20].mxu0 %vm2698_vm12, %v5079_v59 }
 0x3e7   : > { %5466 = vmatprep.mubr.msk.bf16.mxu0 %vm2698_vm12, %v5080_v7 }
 0x3ee   : > { %5467 = vmatmul.mubr.msk.bf16.gmra.mrb[24].mxu0 %vm2698_vm12, %v5081_v19 }
 0x4b9   : > { %v5464_v25 = vpop.f32.mrb[20].mxu0 }
 0x4ba   : > { %v4613_v27 = vmul.f32 %v5464_v25, %v5086_v21  ;;  %v4565_v23 = vpop.f32.mrb[21].mxu0 }
 0x4bb   : > { %v4611_v31 = vmul.f32 %v5086_v21, %v4565_v23  ;;  %v5465_v16 = vpop.f32.mrb[22].mxu0 }
 0x4bc   : > { %v4628_v17 = vadd.f32 %v5087_v26, %v4613_v27  ;;  %v4614_v11 = vmul.f32 %v5465_v16, %v5086_v21  ;;  %v4568_v29 = vpop.f32.mrb[23].mxu0 }
 0x4bd   : > { %v4626_v24 = vadd.f32 %v5087_v26, %v4611_v31  ;;  %v4612_v32 = vmul.f32 %v5086_v21, %v4568_v29 }
 0x4be   : > { %v4636_v37 = vmax.f32 %v4628_v17, 0.0  ;;  %v4629_v34 = vadd.f32 %v5087_v26, %v4614_v11 }
 0x4bf   : > { %v4634_v35 = vmax.f32 %v4626_v24, 0.0  ;;  %v4627_v33 = vadd.f32 %v5087_v26, %v4612_v32 }
 0x4c0   : > { %4645 = vst.msk [vmem:[%s5829_s18 + $0x10] sm:$0xff] %vm578_vm1, %v4636_v37  ;;  %v4637_v12 = vmax.f32 %v4629_v34, 0.0 }
 0x4c1   : > { %4643 = vst.msk [vmem:[%s5829_s18] sm:$0xff] %vm578_vm1, %v4634_v35  ;;  %v4635_v36 = vmax.f32 %v4627_v33, 0.0  ;;  %v5468_v2 = vpop.f32.mrb[24].mxu0 }
 0x4c2   : > { %4646 = vst.msk [vmem:[%s5829_s18 + $0x18] sm:$0xff] %vm578_vm1, %v4637_v12  ;;  %v4617_v38 = vmul.f32 %v5468_v2, %v5086_v21  ;;  %v4581_v40 = vpop.f32.mrb[25].mxu0 }
 0x4c3   : > { %4644 = vst.msk [vmem:[%s5829_s18 + $0x8] sm:$0xff] %vm578_vm1, %v4635_v36  ;;  %v4615_v41 = vmul.f32 %v5086_v21, %v4581_v40  ;;  %v5469_v42 = vpop.f32.mrb[26].mxu0 }
 0x4c4   : > { %v4632_v20 = vadd.f32 %v5087_v26, %v4617_v38  ;;  %v4618_v18 = vmul.f32 %v5469_v42, %v5086_v21  ;;  %v4584_v44 = vpop.f32.mrb[27].mxu0 }
 0x4c5   : > { %v4630_v10 = vadd.f32 %v5087_v26, %v4615_v41  ;;  %v4616_v45 = vmul.f32 %v5086_v21, %v4584_v44 }
 0x4c6   : > { %v4640_v46 = vmax.f32 %v4632_v20, 0.0  ;;  %v4633_v47 = vadd.f32 %v5087_v26, %v4618_v18 }
 0x4c7   : > { %v4638_v48 = vmax.f32 %v4630_v10, 0.0  ;;  %v4631_v49 = vadd.f32 %v5087_v26, %v4616_v45 }
 0x4c8   : > { %4649 = vst.msk [vmem:[%s5829_s18 + $0x30] sm:$0xff] %vm578_vm1, %v4640_v46  ;;  %v4641_v51 = vmax.f32 %v4633_v47, 0.0 }
 0x4c9   : > { %4647 = vst.msk [vmem:[%s5829_s18 + $0x20] sm:$0xff] %vm578_vm1, %v4638_v48  ;;  %v4639_v53 = vmax.f32 %v4631_v49, 0.0 }
 0x4ca   : > { %4650 = vst.msk [vmem:[%s5829_s18 + $0x38] sm:$0xff] %vm578_vm1, %v4641_v51 }
 0x4cb   : > { %4648 = vst.msk [vmem:[%s5829_s18 + $0x28] sm:$0xff] %vm578_vm1, %v4639_v53 }
 0x4cc PF: > { %s6710_s19 = sld [smem:[#allocation4_spill]] }
 0x4d2   : > { %s26_s18 = sadd.s32 1, %s6710_s19  }
 0x4d3   : > { %p23_p4 = scmp.ge.s32.totalorder %s26_s18, 4  }
 0x4d5   :  { %25 = sbr.rel (!%p23_p4) target bundleno = 2 (0x2), region = 149 }

</bundles_post_ra>
